<compile_context>
chip_gen: v7x
topology: tpu7x:2x2x1
jax: 0.10.0
libtpu: 0.0.40
codegen_flags: <defaults>
</compile_context>

<pallas_src>
import functools

import numpy as np
import jax
import jax.numpy as jnp
from jax.experimental import pallas as pl
from jax.experimental.pallas import tpu as pltpu


_VMEM_LIMIT_BYTES = 32 * 1024 * 1024     # fits v7x's 64 MiB VMEM with headroom
_TAIL_TILE_TARGET = 2048                 # lanes per spatial tile in the tail kernel


def _cparams(*semantics):
    return pltpu.CompilerParams(dimension_semantics=tuple(semantics),
                                vmem_limit_bytes=_VMEM_LIMIT_BYTES)


# ----------------------------- Pallas kernels ------------------------------ #

def _lowres_kernel(x_ref, w2_ref, sel_ref, b2_ref,
                   wmax_ref, bmax_ref, w3_ref, b3_ref, w3b_ref, b3b_ref,
                   rwt_ref, rh_ref, o_ref, *, dims):
    """Fused low-resolution branch for one batch element.

    x_ref   : (1, C, H, W)   full-res input plane (VMEM resident)
    w2_ref  : (3f, 3C)       conv2.conv1 folded weights (rows kx-major, cols ky-major)
    sel_ref : (3, W, W2)     0/1 column-selection matrices for the stride-2 taps
    b2_ref  : (f, 1)         folded conv2.conv1 bias
    w*_ref  : (f, 9f)/(f,1)  flattened 3x3 conv weights / biases
    rwt_ref : (Wm, W)        bilinear W-axis interpolation matrix (transposed)
    rh_ref  : (H, Hm)        bilinear H-axis interpolation matrix
    o_ref   : (1, f, H, W)   upsampled c3
    """
    C, H, W, f, H2, W2, Hm, Wm = dims
    xv = x_ref[0]                                            # (C, H, W)
    w2 = w2_ref[...]
    b2 = b2_ref[...]

    # -- c1 = conv2(conv1(x)):  3x3 / stride 2 / valid, folded to act on x ----
    c1_rows = []
    for oy in range(H2):
        r3 = jnp.concatenate([xv[:, 2 * oy + ky, :] for ky in range(3)],
                             axis=0)                         # (3C, W), ky-major
        p = jnp.dot(w2, r3, preferred_element_type=jnp.float32)          # (3f, W)
        acc = b2
        for kx in range(3):
            acc = acc + jnp.dot(p[kx * f:(kx + 1) * f, :], sel_ref[kx],
                                preferred_element_type=jnp.float32)      # (f, W2)
        c1_rows.append(acc)

    # -- v_max = max_pool2d(c1, kernel=7, stride=3) ----------------------------
    vmax_rows = []
    for i in range(Hm):
        rm = c1_rows[3 * i]
        for k in range(1, 7):
            rm = jnp.maximum(rm, c1_rows[3 * i + k])         # (f, W2)
        cols = [jnp.max(rm[:, 3 * j:3 * j + 7], axis=1, keepdims=True)
                for j in range(Wm)]
        vmax_rows.append(jnp.concatenate(cols, axis=1))      # (f, Wm)

    # -- three 3x3 / pad 1 convs on the tiny (f, Hm, Wm) planes ----------------
    def conv3x3_rows(rows, w_flat, b, relu):
        zrow = jnp.zeros_like(rows[0])
        zcol = jnp.zeros((rows[0].shape[0], 1), rows[0].dtype)
        padded = [jnp.concatenate([zcol, r, zcol], axis=1)
                  for r in ([zrow] + rows + [zrow])]         # (f, Wm+2) each
        out = []
        for oy in range(len(rows)):
            taps = [padded[oy + ky][:, kx:kx + Wm]
                    for ky in range(3) for kx in range(3)]
            pat = jnp.concatenate(taps, axis=0)              # (9f, Wm)
            r = jnp.dot(w_flat, pat, preferred_element_type=jnp.float32) + b
            out.append(jnp.maximum(r, 0.0) if relu else r)
        return out

    v_range = conv3x3_rows(vmax_rows, wmax_ref[...], bmax_ref[...], True)
    c3 = conv3x3_rows(v_range, w3_ref[...], b3_ref[...], True)
    c3 = conv3x3_rows(c3, w3b_ref[...], b3b_ref[...], False)

    # -- bilinear upsample (Hm, Wm) -> (H, W), align_corners=False -------------
    rwt = rwt_ref[...]                                       # (Wm, W)
    rh = rh_ref[...]                                         # (H, Hm)
    t1_rows = [jnp.dot(r, rwt, preferred_element_type=jnp.float32)
               for r in c3]                                  # Hm x (f, W)
    for c in range(f):
        t1c = jnp.concatenate([tr[c:c + 1, :] for tr in t1_rows], axis=0)   # (Hm, W)
        o_ref[0, c] = jnp.dot(rh, t1c,
                              preferred_element_type=jnp.float32).astype(o_ref.dtype)


def _tail_kernel(x_ref, c3_ref, wcf_ref, bcf_ref, w4_ref, b4_ref, o_ref):
    """Fused tail:  cf = conv_f(conv1(x)) (folded),  c4 = conv4(c3 + cf),
    out = x * sigmoid(c4).  Channels-first, spatial tile on lanes."""
    xv = x_ref[0]                                                        # (C, TM)
    cf = jnp.dot(wcf_ref[...], xv, preferred_element_type=jnp.float32) + bcf_ref[...]
    s = c3_ref[0] + cf                                                   # (f, TM)
    c4 = jnp.dot(w4_ref[...], s, preferred_element_type=jnp.float32) + b4_ref[...]
    o_ref[0] = (xv * jax.nn.sigmoid(c4)).astype(o_ref.dtype)


# ----------------------------- Pallas wrappers ------------------------------ #

def _lowres_branch(x4, w2f, sel, b2f, wmaxf, bmax, w3f, b3, w3bf, b3b, rwT, rh,
                   dims):
    N = x4.shape[0]
    C, H, W, f, H2, W2, Hm, Wm = dims
    return pl.pallas_call(
        functools.partial(_lowres_kernel, dims=dims),
        out_shape=jax.ShapeDtypeStruct((N, f, H, W), jnp.float32),
        grid=(N,),
        in_specs=[pl.BlockSpec((1, C, H, W), lambda n: (n, 0, 0, 0)),
                  pl.BlockSpec((3 * f, 3 * C), lambda n: (0, 0)),
                  pl.BlockSpec((3, W, W2), lambda n: (0, 0, 0)),
                  pl.BlockSpec((f, 1), lambda n: (0, 0)),
                  pl.BlockSpec((f, 9 * f), lambda n: (0, 0)),
                  pl.BlockSpec((f, 1), lambda n: (0, 0)),
                  pl.BlockSpec((f, 9 * f), lambda n: (0, 0)),
                  pl.BlockSpec((f, 1), lambda n: (0, 0)),
                  pl.BlockSpec((f, 9 * f), lambda n: (0, 0)),
                  pl.BlockSpec((f, 1), lambda n: (0, 0)),
                  pl.BlockSpec((Wm, W), lambda n: (0, 0)),
                  pl.BlockSpec((H, Hm), lambda n: (0, 0))],
        out_specs=pl.BlockSpec((1, f, H, W), lambda n: (n, 0, 0, 0)),
        compiler_params=_cparams("parallel"),
    )(x4, w2f, sel, b2f, wmaxf, bmax, w3f, b3, w3bf, b3b, rwT, rh)


def _tail(x2, c3f, wcf, bcf, w4, b4):
    N, C, M = x2.shape
    f = c3f.shape[1]
    tm = M if M <= _TAIL_TILE_TARGET else _TAIL_TILE_TARGET
    grid = (N, pl.cdiv(M, tm))
    return pl.pallas_call(
        _tail_kernel,
        out_shape=jax.ShapeDtypeStruct((N, C, M), jnp.float32),
        grid=grid,
        in_specs=[pl.BlockSpec((1, C, tm), lambda n, m: (n, 0, m)),
                  pl.BlockSpec((1, f, tm), lambda n, m: (n, 0, m)),
                  pl.BlockSpec((f, C), lambda n, m: (0, 0)),
                  pl.BlockSpec((f, 1), lambda n, m: (0, 0)),
                  pl.BlockSpec((C, f), lambda n, m: (0, 0)),
                  pl.BlockSpec((C, 1), lambda n, m: (0, 0))],
        out_specs=pl.BlockSpec((1, C, tm), lambda n, m: (n, 0, m)),
        compiler_params=_cparams("parallel", "parallel"),
    )(x2, c3f, wcf, bcf.reshape(f, 1), w4, b4.reshape(C, 1))


# ------------------------------ plain glue ---------------------------------- #

def _bilinear_matrix(out_size, in_size):
    """numpy interpolation matrix matching F.interpolate(bilinear, align_corners=False)."""
    scale = in_size / out_size
    dst = np.arange(out_size, dtype=np.float64)
    src = np.maximum((dst + 0.5) * scale - 0.5, 0.0)
    i0 = np.minimum(np.floor(src).astype(np.int64), in_size - 1)
    i1 = np.minimum(i0 + 1, in_size - 1)
    w1 = src - i0
    w0 = 1.0 - w1
    m = np.zeros((out_size, in_size), np.float32)
    m[np.arange(out_size), i0] += w0
    m[np.arange(out_size), i1] += w1
    return m


# --------------------------------- ESA model -------------------------------- #

def init_esa_params(key, n_feats):
    f = n_feats // 4
    ks = jax.random.split(key, 14)

    def w(k, shape):
        fan_in = int(np.prod(shape[1:]))
        return jax.random.normal(k, shape, jnp.float32) / np.sqrt(fan_in)

    def b(k, n):
        return 0.05 * jax.random.normal(k, (n,), jnp.float32)

    return {
        # 1x1 convs stored as (Cout, Cin); 3x3 convs stored OIHW.
        "w1": w(ks[0], (f, n_feats)),        "b1": b(ks[1], f),
        "wf": w(ks[2], (f, f)),              "bf": b(ks[3], f),
        "w4": w(ks[4], (n_feats, f)),        "b4": b(ks[5], n_feats),
        "w2": w(ks[6], (f, f, 3, 3)),        "b2": b(ks[7], f),
        "wmax": w(ks[8], (f, f, 3, 3)),      "bmax": b(ks[9], f),
        "w3": w(ks[10], (f, f, 3, 3)),       "b3": b(ks[11], f),
        "w3_": w(ks[12], (f, f, 3, 3)),      "b3_": b(ks[13], f),
    }


def esa_forward(x, p):
    """ESA forward with Pallas TPU kernels.  x: (N, C, H, W) float32, NCHW."""
    N, C, H, W = x.shape
    f = p["w1"].shape[0]
    x = x.astype(jnp.float32)

    H2 = (H - 3) // 2 + 1
    W2 = (W - 3) // 2 + 1
    assert H2 >= 7 and W2 >= 7, "ESA needs spatial dims >= 17"
    Hm = (H2 - 7) // 3 + 1
    Wm = (W2 - 7) // 3 + 1
    dims = (C, H, W, f, H2, W2, Hm, Wm)

    # ---- folded / reshaped weights (all tiny) --------------------------------
    # conv2 . conv1  ->  one 3x3/stride-2 conv acting directly on x.
    A = jnp.einsum('oiyx,ic->oyxc', p["w2"], p["w1"])                  # (f,3,3,C)
    w2f = jnp.transpose(A, (2, 0, 1, 3)).reshape(3 * f, 3 * C)         # rows kx-major
    b2f = (jnp.einsum('oiyx,i->o', p["w2"], p["b1"]) + p["b2"]).reshape(f, 1)

    # 0/1 column-selection matrices implementing the stride-2 horizontal taps.
    sel = np.zeros((3, W, W2), np.float32)
    ox = np.arange(W2)
    for kx in range(3):
        sel[kx, 2 * ox + kx, ox] = 1.0
    sel = jnp.asarray(sel)

    def flat9(w):   # OIHW (f,f,3,3) -> (f, 9f), (ky,kx,cin)-ordered columns
        return jnp.transpose(w, (0, 2, 3, 1)).reshape(w.shape[0], -1)

    rwT = jnp.asarray(_bilinear_matrix(W, Wm).T)                       # (Wm, W)
    rh = jnp.asarray(_bilinear_matrix(H, Hm))                          # (H, Hm)

    # ---- kernel 1: fused low-resolution branch -> upsampled c3 ---------------
    c3_full = _lowres_branch(
        x, w2f, sel, b2f,
        flat9(p["wmax"]), p["bmax"].reshape(f, 1),
        flat9(p["w3"]), p["b3"].reshape(f, 1),
        flat9(p["w3_"]), p["b3_"].reshape(f, 1),
        rwT, rh, dims)                                                 # (N, f, H, W)

    # ---- kernel 2: fused tail -------------------------------------------------
    wcf = p["wf"] @ p["w1"]                                            # conv_f . conv1
    bcf = p["wf"] @ p["b1"] + p["bf"]
    out2 = _tail(x.reshape(N, C, H * W), c3_full.reshape(N, f, H * W),
                 wcf, bcf, p["w4"], p["b4"])
    return out2.reshape(N, C, H, W)


# --------------------------- pure-XLA reference ----------------------------- #

def esa_reference(x, p):
    hp = jax.lax.Precision.HIGHEST

    def conv1x1(t, w, b):
        return jnp.einsum('oc,nchw->nohw', w, t, precision=hp) + b.reshape(1, -1, 1, 1)

    def conv3x3(t, w, b, stride, pad):
        y = jax.lax.conv_general_dilated(
            t, w, (stride, stride), [(pad, pad), (pad, pad)],
            dimension_numbers=('NCHW', 'OIHW', 'NCHW'), precision=hp)
        return y + b.reshape(1, -1, 1, 1)

    c1_ = conv1x1(x, p["w1"], p["b1"])
    c1 = conv3x3(c1_, p["w2"], p["b2"], 2, 0)
    v_max = jax.lax.reduce_window(c1, -jnp.inf, jax.lax.max,
                                  (1, 1, 7, 7), (1, 1, 3, 3), 'VALID')
    v_range = jax.nn.relu(conv3x3(v_max, p["wmax"], p["bmax"], 1, 1))
    c3 = jax.nn.relu(conv3x3(v_range, p["w3"], p["b3"], 1, 1))
    c3 = conv3x3(c3, p["w3_"], p["b3_"], 1, 1)
    H, W = x.shape[2], x.shape[3]
    rh = jnp.asarray(_bilinear_matrix(H, c3.shape[2]))
    rw = jnp.asarray(_bilinear_matrix(W, c3.shape[3]))
    c3 = jnp.einsum('hm,ncmv,wv->nchw', rh, c3, rw, precision=hp)
    cf = conv1x1(c1_, p["wf"], p["bf"])
    c4 = conv1x1(c3 + cf, p["w4"], p["b4"])
    return x * jax.nn.sigmoid(c4)


if __name__ == "__main__":
    key = jax.random.PRNGKey(0)
    kx_, kp = jax.random.split(key)
    N, C, H, W = 2, 8, 32, 32                   # n_feats=8 -> f=2; H*W=1024 -> one 1024-lane tail tile
    x = jax.random.normal(kx_, (N, C, H, W), jnp.float32)
    params = init_esa_params(kp, C)

    fwd = jax.jit(esa_forward)
    out = jax.block_until_ready(fwd(x, params))

    ref = jax.block_until_ready(jax.jit(esa_reference)(x, params))

    assert out.shape == x.shape and out.dtype == jnp.float32
    if not np.allclose(np.asarray(out), np.asarray(ref), rtol=1e-3, atol=1e-3):
        err = float(np.max(np.abs(np.asarray(out) - np.asarray(ref))))
        raise AssertionError(f"Pallas ESA output mismatch vs reference (max |err| = {err:.3e})")
    print("KERNEL_OK")
</pallas_src>

<mosaic_0001>
module attributes {stable_mosaic.version = 11 : i64} {
  func.func @_lowres_kernel(%arg0: i32, %arg1: memref<1x8x32x32xf32, #tpu.memory_space<vmem>>, %arg2: memref<6x24xf32, #tpu.memory_space<vmem>>, %arg3: memref<3x32x15xf32, #tpu.memory_space<vmem>>, %arg4: memref<2x1xf32, #tpu.memory_space<vmem>>, %arg5: memref<2x18xf32, #tpu.memory_space<vmem>>, %arg6: memref<2x1xf32, #tpu.memory_space<vmem>>, %arg7: memref<2x18xf32, #tpu.memory_space<vmem>>, %arg8: memref<2x1xf32, #tpu.memory_space<vmem>>, %arg9: memref<2x18xf32, #tpu.memory_space<vmem>>, %arg10: memref<2x1xf32, #tpu.memory_space<vmem>>, %arg11: memref<3x32xf32, #tpu.memory_space<vmem>>, %arg12: memref<32x3xf32, #tpu.memory_space<vmem>>, %arg13: memref<1x2x32x32xf32, #tpu.memory_space<vmem>>) attributes {dimension_semantics = [#tpu.dimension_semantics<parallel>], iteration_bounds = array<i64: 2>, scalar_prefetch = 0 : i64, scratch_operands = 0 : i64, tpu.core_type = #tpu.core_type<tc>, window_params = [{transform_indices = @transform_0, window_bounds = array<i64: 1, 8, 32, 32>}, {pipeline_mode = #tpu.pipeline_mode<synchronous>, transform_indices = @transform_1, window_bounds = array<i64: 6, 24>}, {pipeline_mode = #tpu.pipeline_mode<synchronous>, transform_indices = @transform_2, window_bounds = array<i64: 3, 32, 15>}, {pipeline_mode = #tpu.pipeline_mode<synchronous>, transform_indices = @transform_3, window_bounds = array<i64: 2, 1>}, {pipeline_mode = #tpu.pipeline_mode<synchronous>, transform_indices = @transform_4, window_bounds = array<i64: 2, 18>}, {pipeline_mode = #tpu.pipeline_mode<synchronous>, transform_indices = @transform_5, window_bounds = array<i64: 2, 1>}, {pipeline_mode = #tpu.pipeline_mode<synchronous>, transform_indices = @transform_6, window_bounds = array<i64: 2, 18>}, {pipeline_mode = #tpu.pipeline_mode<synchronous>, transform_indices = @transform_7, window_bounds = array<i64: 2, 1>}, {pipeline_mode = #tpu.pipeline_mode<synchronous>, transform_indices = @transform_8, window_bounds = array<i64: 2, 18>}, {pipeline_mode = #tpu.pipeline_mode<synchronous>, transform_indices = @transform_9, window_bounds = array<i64: 2, 1>}, {pipeline_mode = #tpu.pipeline_mode<synchronous>, transform_indices = @transform_10, window_bounds = array<i64: 3, 32>}, {pipeline_mode = #tpu.pipeline_mode<synchronous>, transform_indices = @transform_11, window_bounds = array<i64: 32, 3>}, {transform_indices = @transform_12, window_bounds = array<i64: 1, 2, 32, 32>}]} {
    %c0 = arith.constant 0 : index
    %c0_0 = arith.constant 0 : index
    %c0_1 = arith.constant 0 : index
    %c0_2 = arith.constant 0 : index
    %0 = vector.load %arg1[%c0, %c0_0, %c0_1, %c0_2] : memref<1x8x32x32xf32, #tpu.memory_space<vmem>>, vector<1x8x32x32xf32>
    %1 = vector.shape_cast %0 : vector<1x8x32x32xf32> to vector<8x32x32xf32>
    %c0_3 = arith.constant 0 : index
    %c0_4 = arith.constant 0 : index
    %2 = vector.load %arg2[%c0_3, %c0_4] : memref<6x24xf32, #tpu.memory_space<vmem>>, vector<6x24xf32>
    %c0_5 = arith.constant 0 : index
    %c0_6 = arith.constant 0 : index
    %3 = vector.load %arg4[%c0_5, %c0_6] : memref<2x1xf32, #tpu.memory_space<vmem>>, vector<2x1xf32>
    %4 = vector.extract_strided_slice %1 {offsets = [0, 0, 0], sizes = [8, 1, 32], strides = [1, 1, 1]} : vector<8x32x32xf32> to vector<8x1x32xf32>
    %5 = vector.shape_cast %4 : vector<8x1x32xf32> to vector<8x32xf32>
    %6 = vector.extract_strided_slice %1 {offsets = [0, 1, 0], sizes = [8, 1, 32], strides = [1, 1, 1]} : vector<8x32x32xf32> to vector<8x1x32xf32>
    %7 = vector.shape_cast %6 : vector<8x1x32xf32> to vector<8x32xf32>
    %8 = vector.extract_strided_slice %1 {offsets = [0, 2, 0], sizes = [8, 1, 32], strides = [1, 1, 1]} : vector<8x32x32xf32> to vector<8x1x32xf32>
    %9 = vector.shape_cast %8 : vector<8x1x32xf32> to vector<8x32xf32>
    %10 = tpu.concatenate %5, %7, %9 in 0 : vector<8x32xf32>, vector<8x32xf32>, vector<8x32xf32> -> vector<24x32xf32>
    %cst = arith.constant dense<0.000000e+00> : vector<6x32xf32>
    %11 = tpu.matmul %2, %10, %cst {dimension_numbers = #tpu.dot_dimension_numbers<[1], [0], [0], [1], [0, 0, 1, 1], [], []>} : vector<6x24xf32>, vector<24x32xf32>, vector<6x32xf32> -> vector<6x32xf32>
    %12 = vector.extract_strided_slice %11 {offsets = [0, 0], sizes = [2, 32], strides = [1, 1]} : vector<6x32xf32> to vector<2x32xf32>
    %c0_7 = arith.constant 0 : index
    %c0_8 = arith.constant 0 : index
    %c0_9 = arith.constant 0 : index
    %13 = vector.load %arg3[%c0_7, %c0_8, %c0_9] : memref<3x32x15xf32, #tpu.memory_space<vmem>>, vector<1x32x15xf32>
    %14 = vector.shape_cast %13 : vector<1x32x15xf32> to vector<32x15xf32>
    %cst_10 = arith.constant dense<0.000000e+00> : vector<2x15xf32>
    %15 = tpu.matmul %12, %14, %cst_10 {dimension_numbers = #tpu.dot_dimension_numbers<[1], [0], [0], [1], [0, 0, 1, 1], [], []>} : vector<2x32xf32>, vector<32x15xf32>, vector<2x15xf32> -> vector<2x15xf32>
    %16 = vector.broadcast %3 : vector<2x1xf32> to vector<2x15xf32>
    %17 = arith.addf %16, %15 : vector<2x15xf32>
    %18 = vector.extract_strided_slice %11 {offsets = [2, 0], sizes = [2, 32], strides = [1, 1]} : vector<6x32xf32> to vector<2x32xf32>
    %c1 = arith.constant 1 : index
    %c0_11 = arith.constant 0 : index
    %c0_12 = arith.constant 0 : index
    %19 = vector.load %arg3[%c1, %c0_11, %c0_12] : memref<3x32x15xf32, #tpu.memory_space<vmem>>, vector<1x32x15xf32>
    %20 = vector.shape_cast %19 : vector<1x32x15xf32> to vector<32x15xf32>
    %cst_13 = arith.constant dense<0.000000e+00> : vector<2x15xf32>
    %21 = tpu.matmul %18, %20, %cst_13 {dimension_numbers = #tpu.dot_dimension_numbers<[1], [0], [0], [1], [0, 0, 1, 1], [], []>} : vector<2x32xf32>, vector<32x15xf32>, vector<2x15xf32> -> vector<2x15xf32>
    %22 = arith.addf %17, %21 : vector<2x15xf32>
    %23 = vector.extract_strided_slice %11 {offsets = [4, 0], sizes = [2, 32], strides = [1, 1]} : vector<6x32xf32> to vector<2x32xf32>
    %c2 = arith.constant 2 : index
    %c0_14 = arith.constant 0 : index
    %c0_15 = arith.constant 0 : index
    %24 = vector.load %arg3[%c2, %c0_14, %c0_15] : memref<3x32x15xf32, #tpu.memory_space<vmem>>, vector<1x32x15xf32>
    %25 = vector.shape_cast %24 : vector<1x32x15xf32> to vector<32x15xf32>
    %cst_16 = arith.constant dense<0.000000e+00> : vector<2x15xf32>
    %26 = tpu.matmul %23, %25, %cst_16 {dimension_numbers = #tpu.dot_dimension_numbers<[1], [0], [0], [1], [0, 0, 1, 1], [], []>} : vector<2x32xf32>, vector<32x15xf32>, vector<2x15xf32> -> vector<2x15xf32>
    %27 = arith.addf %22, %26 : vector<2x15xf32>
    %28 = vector.extract_strided_slice %1 {offsets = [0, 2, 0], sizes = [8, 1, 32], strides = [1, 1, 1]} : vector<8x32x32xf32> to vector<8x1x32xf32>
    %29 = vector.shape_cast %28 : vector<8x1x32xf32> to vector<8x32xf32>
    %30 = vector.extract_strided_slice %1 {offsets = [0, 3, 0], sizes = [8, 1, 32], strides = [1, 1, 1]} : vector<8x32x32xf32> to vector<8x1x32xf32>
    %31 = vector.shape_cast %30 : vector<8x1x32xf32> to vector<8x32xf32>
    %32 = vector.extract_strided_slice %1 {offsets = [0, 4, 0], sizes = [8, 1, 32], strides = [1, 1, 1]} : vector<8x32x32xf32> to vector<8x1x32xf32>
    %33 = vector.shape_cast %32 : vector<8x1x32xf32> to vector<8x32xf32>
    %34 = tpu.concatenate %29, %31, %33 in 0 : vector<8x32xf32>, vector<8x32xf32>, vector<8x32xf32> -> vector<24x32xf32>
    %cst_17 = arith.constant dense<0.000000e+00> : vector<6x32xf32>
    %35 = tpu.matmul %2, %34, %cst_17 {dimension_numbers = #tpu.dot_dimension_numbers<[1], [0], [0], [1], [0, 0, 1, 1], [], []>} : vector<6x24xf32>, vector<24x32xf32>, vector<6x32xf32> -> vector<6x32xf32>
    %36 = vector.extract_strided_slice %35 {offsets = [0, 0], sizes = [2, 32], strides = [1, 1]} : vector<6x32xf32> to vector<2x32xf32>
    %c0_18 = arith.constant 0 : index
    %c0_19 = arith.constant 0 : index
    %c0_20 = arith.constant 0 : index
    %37 = vector.load %arg3[%c0_18, %c0_19, %c0_20] : memref<3x32x15xf32, #tpu.memory_space<vmem>>, vector<1x32x15xf32>
    %38 = vector.shape_cast %37 : vector<1x32x15xf32> to vector<32x15xf32>
    %cst_21 = arith.constant dense<0.000000e+00> : vector<2x15xf32>
    %39 = tpu.matmul %36, %38, %cst_21 {dimension_numbers = #tpu.dot_dimension_numbers<[1], [0], [0], [1], [0, 0, 1, 1], [], []>} : vector<2x32xf32>, vector<32x15xf32>, vector<2x15xf32> -> vector<2x15xf32>
    %40 = vector.broadcast %3 : vector<2x1xf32> to vector<2x15xf32>
    %41 = arith.addf %40, %39 : vector<2x15xf32>
    %42 = vector.extract_strided_slice %35 {offsets = [2, 0], sizes = [2, 32], strides = [1, 1]} : vector<6x32xf32> to vector<2x32xf32>
    %c1_22 = arith.constant 1 : index
    %c0_23 = arith.constant 0 : index
    %c0_24 = arith.constant 0 : index
    %43 = vector.load %arg3[%c1_22, %c0_23, %c0_24] : memref<3x32x15xf32, #tpu.memory_space<vmem>>, vector<1x32x15xf32>
    %44 = vector.shape_cast %43 : vector<1x32x15xf32> to vector<32x15xf32>
    %cst_25 = arith.constant dense<0.000000e+00> : vector<2x15xf32>
    %45 = tpu.matmul %42, %44, %cst_25 {dimension_numbers = #tpu.dot_dimension_numbers<[1], [0], [0], [1], [0, 0, 1, 1], [], []>} : vector<2x32xf32>, vector<32x15xf32>, vector<2x15xf32> -> vector<2x15xf32>
    %46 = arith.addf %41, %45 : vector<2x15xf32>
    %47 = vector.extract_strided_slice %35 {offsets = [4, 0], sizes = [2, 32], strides = [1, 1]} : vector<6x32xf32> to vector<2x32xf32>
    %c2_26 = arith.constant 2 : index
    %c0_27 = arith.constant 0 : index
    %c0_28 = arith.constant 0 : index
    %48 = vector.load %arg3[%c2_26, %c0_27, %c0_28] : memref<3x32x15xf32, #tpu.memory_space<vmem>>, vector<1x32x15xf32>
    %49 = vector.shape_cast %48 : vector<1x32x15xf32> to vector<32x15xf32>
    %cst_29 = arith.constant dense<0.000000e+00> : vector<2x15xf32>
    %50 = tpu.matmul %47, %49, %cst_29 {dimension_numbers = #tpu.dot_dimension_numbers<[1], [0], [0], [1], [0, 0, 1, 1], [], []>} : vector<2x32xf32>, vector<32x15xf32>, vector<2x15xf32> -> vector<2x15xf32>
    %51 = arith.addf %46, %50 : vector<2x15xf32>
    %52 = vector.extract_strided_slice %1 {offsets = [0, 4, 0], sizes = [8, 1, 32], strides = [1, 1, 1]} : vector<8x32x32xf32> to vector<8x1x32xf32>
    %53 = vector.shape_cast %52 : vector<8x1x32xf32> to vector<8x32xf32>
    %54 = vector.extract_strided_slice %1 {offsets = [0, 5, 0], sizes = [8, 1, 32], strides = [1, 1, 1]} : vector<8x32x32xf32> to vector<8x1x32xf32>
    %55 = vector.shape_cast %54 : vector<8x1x32xf32> to vector<8x32xf32>
    %56 = vector.extract_strided_slice %1 {offsets = [0, 6, 0], sizes = [8, 1, 32], strides = [1, 1, 1]} : vector<8x32x32xf32> to vector<8x1x32xf32>
    %57 = vector.shape_cast %56 : vector<8x1x32xf32> to vector<8x32xf32>
    %58 = tpu.concatenate %53, %55, %57 in 0 : vector<8x32xf32>, vector<8x32xf32>, vector<8x32xf32> -> vector<24x32xf32>
    %cst_30 = arith.constant dense<0.000000e+00> : vector<6x32xf32>
    %59 = tpu.matmul %2, %58, %cst_30 {dimension_numbers = #tpu.dot_dimension_numbers<[1], [0], [0], [1], [0, 0, 1, 1], [], []>} : vector<6x24xf32>, vector<24x32xf32>, vector<6x32xf32> -> vector<6x32xf32>
    %60 = vector.extract_strided_slice %59 {offsets = [0, 0], sizes = [2, 32], strides = [1, 1]} : vector<6x32xf32> to vector<2x32xf32>
    %c0_31 = arith.constant 0 : index
    %c0_32 = arith.constant 0 : index
    %c0_33 = arith.constant 0 : index
    %61 = vector.load %arg3[%c0_31, %c0_32, %c0_33] : memref<3x32x15xf32, #tpu.memory_space<vmem>>, vector<1x32x15xf32>
    %62 = vector.shape_cast %61 : vector<1x32x15xf32> to vector<32x15xf32>
    %cst_34 = arith.constant dense<0.000000e+00> : vector<2x15xf32>
    %63 = tpu.matmul %60, %62, %cst_34 {dimension_numbers = #tpu.dot_dimension_numbers<[1], [0], [0], [1], [0, 0, 1, 1], [], []>} : vector<2x32xf32>, vector<32x15xf32>, vector<2x15xf32> -> vector<2x15xf32>
    %64 = vector.broadcast %3 : vector<2x1xf32> to vector<2x15xf32>
    %65 = arith.addf %64, %63 : vector<2x15xf32>
    %66 = vector.extract_strided_slice %59 {offsets = [2, 0], sizes = [2, 32], strides = [1, 1]} : vector<6x32xf32> to vector<2x32xf32>
    %c1_35 = arith.constant 1 : index
    %c0_36 = arith.constant 0 : index
    %c0_37 = arith.constant 0 : index
    %67 = vector.load %arg3[%c1_35, %c0_36, %c0_37] : memref<3x32x15xf32, #tpu.memory_space<vmem>>, vector<1x32x15xf32>
    %68 = vector.shape_cast %67 : vector<1x32x15xf32> to vector<32x15xf32>
    %cst_38 = arith.constant dense<0.000000e+00> : vector<2x15xf32>
    %69 = tpu.matmul %66, %68, %cst_38 {dimension_numbers = #tpu.dot_dimension_numbers<[1], [0], [0], [1], [0, 0, 1, 1], [], []>} : vector<2x32xf32>, vector<32x15xf32>, vector<2x15xf32> -> vector<2x15xf32>
    %70 = arith.addf %65, %69 : vector<2x15xf32>
    %71 = vector.extract_strided_slice %59 {offsets = [4, 0], sizes = [2, 32], strides = [1, 1]} : vector<6x32xf32> to vector<2x32xf32>
    %c2_39 = arith.constant 2 : index
    %c0_40 = arith.constant 0 : index
    %c0_41 = arith.constant 0 : index
    %72 = vector.load %arg3[%c2_39, %c0_40, %c0_41] : memref<3x32x15xf32, #tpu.memory_space<vmem>>, vector<1x32x15xf32>
    %73 = vector.shape_cast %72 : vector<1x32x15xf32> to vector<32x15xf32>
    %cst_42 = arith.constant dense<0.000000e+00> : vector<2x15xf32>
    %74 = tpu.matmul %71, %73, %cst_42 {dimension_numbers = #tpu.dot_dimension_numbers<[1], [0], [0], [1], [0, 0, 1, 1], [], []>} : vector<2x32xf32>, vector<32x15xf32>, vector<2x15xf32> -> vector<2x15xf32>
    %75 = arith.addf %70, %74 : vector<2x15xf32>
    %76 = vector.extract_strided_slice %1 {offsets = [0, 6, 0], sizes = [8, 1, 32], strides = [1, 1, 1]} : vector<8x32x32xf32> to vector<8x1x32xf32>
    %77 = vector.shape_cast %76 : vector<8x1x32xf32> to vector<8x32xf32>
    %78 = vector.extract_strided_slice %1 {offsets = [0, 7, 0], sizes = [8, 1, 32], strides = [1, 1, 1]} : vector<8x32x32xf32> to vector<8x1x32xf32>
    %79 = vector.shape_cast %78 : vector<8x1x32xf32> to vector<8x32xf32>
    %80 = vector.extract_strided_slice %1 {offsets = [0, 8, 0], sizes = [8, 1, 32], strides = [1, 1, 1]} : vector<8x32x32xf32> to vector<8x1x32xf32>
    %81 = vector.shape_cast %80 : vector<8x1x32xf32> to vector<8x32xf32>
    %82 = tpu.concatenate %77, %79, %81 in 0 : vector<8x32xf32>, vector<8x32xf32>, vector<8x32xf32> -> vector<24x32xf32>
    %cst_43 = arith.constant dense<0.000000e+00> : vector<6x32xf32>
    %83 = tpu.matmul %2, %82, %cst_43 {dimension_numbers = #tpu.dot_dimension_numbers<[1], [0], [0], [1], [0, 0, 1, 1], [], []>} : vector<6x24xf32>, vector<24x32xf32>, vector<6x32xf32> -> vector<6x32xf32>
    %84 = vector.extract_strided_slice %83 {offsets = [0, 0], sizes = [2, 32], strides = [1, 1]} : vector<6x32xf32> to vector<2x32xf32>
    %c0_44 = arith.constant 0 : index
    %c0_45 = arith.constant 0 : index
    %c0_46 = arith.constant 0 : index
    %85 = vector.load %arg3[%c0_44, %c0_45, %c0_46] : memref<3x32x15xf32, #tpu.memory_space<vmem>>, vector<1x32x15xf32>
    %86 = vector.shape_cast %85 : vector<1x32x15xf32> to vector<32x15xf32>
    %cst_47 = arith.constant dense<0.000000e+00> : vector<2x15xf32>
    %87 = tpu.matmul %84, %86, %cst_47 {dimension_numbers = #tpu.dot_dimension_numbers<[1], [0], [0], [1], [0, 0, 1, 1], [], []>} : vector<2x32xf32>, vector<32x15xf32>, vector<2x15xf32> -> vector<2x15xf32>
    %88 = vector.broadcast %3 : vector<2x1xf32> to vector<2x15xf32>
    %89 = arith.addf %88, %87 : vector<2x15xf32>
    %90 = vector.extract_strided_slice %83 {offsets = [2, 0], sizes = [2, 32], strides = [1, 1]} : vector<6x32xf32> to vector<2x32xf32>
    %c1_48 = arith.constant 1 : index
    %c0_49 = arith.constant 0 : index
    %c0_50 = arith.constant 0 : index
    %91 = vector.load %arg3[%c1_48, %c0_49, %c0_50] : memref<3x32x15xf32, #tpu.memory_space<vmem>>, vector<1x32x15xf32>
    %92 = vector.shape_cast %91 : vector<1x32x15xf32> to vector<32x15xf32>
    %cst_51 = arith.constant dense<0.000000e+00> : vector<2x15xf32>
    %93 = tpu.matmul %90, %92, %cst_51 {dimension_numbers = #tpu.dot_dimension_numbers<[1], [0], [0], [1], [0, 0, 1, 1], [], []>} : vector<2x32xf32>, vector<32x15xf32>, vector<2x15xf32> -> vector<2x15xf32>
    %94 = arith.addf %89, %93 : vector<2x15xf32>
    %95 = vector.extract_strided_slice %83 {offsets = [4, 0], sizes = [2, 32], strides = [1, 1]} : vector<6x32xf32> to vector<2x32xf32>
    %c2_52 = arith.constant 2 : index
    %c0_53 = arith.constant 0 : index
    %c0_54 = arith.constant 0 : index
    %96 = vector.load %arg3[%c2_52, %c0_53, %c0_54] : memref<3x32x15xf32, #tpu.memory_space<vmem>>, vector<1x32x15xf32>
    %97 = vector.shape_cast %96 : vector<1x32x15xf32> to vector<32x15xf32>
    %cst_55 = arith.constant dense<0.000000e+00> : vector<2x15xf32>
    %98 = tpu.matmul %95, %97, %cst_55 {dimension_numbers = #tpu.dot_dimension_numbers<[1], [0], [0], [1], [0, 0, 1, 1], [], []>} : vector<2x32xf32>, vector<32x15xf32>, vector<2x15xf32> -> vector<2x15xf32>
    %99 = arith.addf %94, %98 : vector<2x15xf32>
    %100 = vector.extract_strided_slice %1 {offsets = [0, 8, 0], sizes = [8, 1, 32], strides = [1, 1, 1]} : vector<8x32x32xf32> to vector<8x1x32xf32>
    %101 = vector.shape_cast %100 : vector<8x1x32xf32> to vector<8x32xf32>
    %102 = vector.extract_strided_slice %1 {offsets = [0, 9, 0], sizes = [8, 1, 32], strides = [1, 1, 1]} : vector<8x32x32xf32> to vector<8x1x32xf32>
    %103 = vector.shape_cast %102 : vector<8x1x32xf32> to vector<8x32xf32>
    %104 = vector.extract_strided_slice %1 {offsets = [0, 10, 0], sizes = [8, 1, 32], strides = [1, 1, 1]} : vector<8x32x32xf32> to vector<8x1x32xf32>
    %105 = vector.shape_cast %104 : vector<8x1x32xf32> to vector<8x32xf32>
    %106 = tpu.concatenate %101, %103, %105 in 0 : vector<8x32xf32>, vector<8x32xf32>, vector<8x32xf32> -> vector<24x32xf32>
    %cst_56 = arith.constant dense<0.000000e+00> : vector<6x32xf32>
    %107 = tpu.matmul %2, %106, %cst_56 {dimension_numbers = #tpu.dot_dimension_numbers<[1], [0], [0], [1], [0, 0, 1, 1], [], []>} : vector<6x24xf32>, vector<24x32xf32>, vector<6x32xf32> -> vector<6x32xf32>
    %108 = vector.extract_strided_slice %107 {offsets = [0, 0], sizes = [2, 32], strides = [1, 1]} : vector<6x32xf32> to vector<2x32xf32>
    %c0_57 = arith.constant 0 : index
    %c0_58 = arith.constant 0 : index
    %c0_59 = arith.constant 0 : index
    %109 = vector.load %arg3[%c0_57, %c0_58, %c0_59] : memref<3x32x15xf32, #tpu.memory_space<vmem>>, vector<1x32x15xf32>
    %110 = vector.shape_cast %109 : vector<1x32x15xf32> to vector<32x15xf32>
    %cst_60 = arith.constant dense<0.000000e+00> : vector<2x15xf32>
    %111 = tpu.matmul %108, %110, %cst_60 {dimension_numbers = #tpu.dot_dimension_numbers<[1], [0], [0], [1], [0, 0, 1, 1], [], []>} : vector<2x32xf32>, vector<32x15xf32>, vector<2x15xf32> -> vector<2x15xf32>
    %112 = vector.broadcast %3 : vector<2x1xf32> to vector<2x15xf32>
    %113 = arith.addf %112, %111 : vector<2x15xf32>
    %114 = vector.extract_strided_slice %107 {offsets = [2, 0], sizes = [2, 32], strides = [1, 1]} : vector<6x32xf32> to vector<2x32xf32>
    %c1_61 = arith.constant 1 : index
    %c0_62 = arith.constant 0 : index
    %c0_63 = arith.constant 0 : index
    %115 = vector.load %arg3[%c1_61, %c0_62, %c0_63] : memref<3x32x15xf32, #tpu.memory_space<vmem>>, vector<1x32x15xf32>
    %116 = vector.shape_cast %115 : vector<1x32x15xf32> to vector<32x15xf32>
    %cst_64 = arith.constant dense<0.000000e+00> : vector<2x15xf32>
    %117 = tpu.matmul %114, %116, %cst_64 {dimension_numbers = #tpu.dot_dimension_numbers<[1], [0], [0], [1], [0, 0, 1, 1], [], []>} : vector<2x32xf32>, vector<32x15xf32>, vector<2x15xf32> -> vector<2x15xf32>
    %118 = arith.addf %113, %117 : vector<2x15xf32>
    %119 = vector.extract_strided_slice %107 {offsets = [4, 0], sizes = [2, 32], strides = [1, 1]} : vector<6x32xf32> to vector<2x32xf32>
    %c2_65 = arith.constant 2 : index
    %c0_66 = arith.constant 0 : index
    %c0_67 = arith.constant 0 : index
    %120 = vector.load %arg3[%c2_65, %c0_66, %c0_67] : memref<3x32x15xf32, #tpu.memory_space<vmem>>, vector<1x32x15xf32>
    %121 = vector.shape_cast %120 : vector<1x32x15xf32> to vector<32x15xf32>
    %cst_68 = arith.constant dense<0.000000e+00> : vector<2x15xf32>
    %122 = tpu.matmul %119, %121, %cst_68 {dimension_numbers = #tpu.dot_dimension_numbers<[1], [0], [0], [1], [0, 0, 1, 1], [], []>} : vector<2x32xf32>, vector<32x15xf32>, vector<2x15xf32> -> vector<2x15xf32>
    %123 = arith.addf %118, %122 : vector<2x15xf32>
    %124 = vector.extract_strided_slice %1 {offsets = [0, 10, 0], sizes = [8, 1, 32], strides = [1, 1, 1]} : vector<8x32x32xf32> to vector<8x1x32xf32>
    %125 = vector.shape_cast %124 : vector<8x1x32xf32> to vector<8x32xf32>
    %126 = vector.extract_strided_slice %1 {offsets = [0, 11, 0], sizes = [8, 1, 32], strides = [1, 1, 1]} : vector<8x32x32xf32> to vector<8x1x32xf32>
    %127 = vector.shape_cast %126 : vector<8x1x32xf32> to vector<8x32xf32>
    %128 = vector.extract_strided_slice %1 {offsets = [0, 12, 0], sizes = [8, 1, 32], strides = [1, 1, 1]} : vector<8x32x32xf32> to vector<8x1x32xf32>
    %129 = vector.shape_cast %128 : vector<8x1x32xf32> to vector<8x32xf32>
    %130 = tpu.concatenate %125, %127, %129 in 0 : vector<8x32xf32>, vector<8x32xf32>, vector<8x32xf32> -> vector<24x32xf32>
    %cst_69 = arith.constant dense<0.000000e+00> : vector<6x32xf32>
    %131 = tpu.matmul %2, %130, %cst_69 {dimension_numbers = #tpu.dot_dimension_numbers<[1], [0], [0], [1], [0, 0, 1, 1], [], []>} : vector<6x24xf32>, vector<24x32xf32>, vector<6x32xf32> -> vector<6x32xf32>
    %132 = vector.extract_strided_slice %131 {offsets = [0, 0], sizes = [2, 32], strides = [1, 1]} : vector<6x32xf32> to vector<2x32xf32>
    %c0_70 = arith.constant 0 : index
    %c0_71 = arith.constant 0 : index
    %c0_72 = arith.constant 0 : index
    %133 = vector.load %arg3[%c0_70, %c0_71, %c0_72] : memref<3x32x15xf32, #tpu.memory_space<vmem>>, vector<1x32x15xf32>
    %134 = vector.shape_cast %133 : vector<1x32x15xf32> to vector<32x15xf32>
    %cst_73 = arith.constant dense<0.000000e+00> : vector<2x15xf32>
    %135 = tpu.matmul %132, %134, %cst_73 {dimension_numbers = #tpu.dot_dimension_numbers<[1], [0], [0], [1], [0, 0, 1, 1], [], []>} : vector<2x32xf32>, vector<32x15xf32>, vector<2x15xf32> -> vector<2x15xf32>
    %136 = vector.broadcast %3 : vector<2x1xf32> to vector<2x15xf32>
    %137 = arith.addf %136, %135 : vector<2x15xf32>
    %138 = vector.extract_strided_slice %131 {offsets = [2, 0], sizes = [2, 32], strides = [1, 1]} : vector<6x32xf32> to vector<2x32xf32>
    %c1_74 = arith.constant 1 : index
    %c0_75 = arith.constant 0 : index
    %c0_76 = arith.constant 0 : index
    %139 = vector.load %arg3[%c1_74, %c0_75, %c0_76] : memref<3x32x15xf32, #tpu.memory_space<vmem>>, vector<1x32x15xf32>
    %140 = vector.shape_cast %139 : vector<1x32x15xf32> to vector<32x15xf32>
    %cst_77 = arith.constant dense<0.000000e+00> : vector<2x15xf32>
    %141 = tpu.matmul %138, %140, %cst_77 {dimension_numbers = #tpu.dot_dimension_numbers<[1], [0], [0], [1], [0, 0, 1, 1], [], []>} : vector<2x32xf32>, vector<32x15xf32>, vector<2x15xf32> -> vector<2x15xf32>
    %142 = arith.addf %137, %141 : vector<2x15xf32>
    %143 = vector.extract_strided_slice %131 {offsets = [4, 0], sizes = [2, 32], strides = [1, 1]} : vector<6x32xf32> to vector<2x32xf32>
    %c2_78 = arith.constant 2 : index
    %c0_79 = arith.constant 0 : index
    %c0_80 = arith.constant 0 : index
    %144 = vector.load %arg3[%c2_78, %c0_79, %c0_80] : memref<3x32x15xf32, #tpu.memory_space<vmem>>, vector<1x32x15xf32>
    %145 = vector.shape_cast %144 : vector<1x32x15xf32> to vector<32x15xf32>
    %cst_81 = arith.constant dense<0.000000e+00> : vector<2x15xf32>
    %146 = tpu.matmul %143, %145, %cst_81 {dimension_numbers = #tpu.dot_dimension_numbers<[1], [0], [0], [1], [0, 0, 1, 1], [], []>} : vector<2x32xf32>, vector<32x15xf32>, vector<2x15xf32> -> vector<2x15xf32>
    %147 = arith.addf %142, %146 : vector<2x15xf32>
    %148 = vector.extract_strided_slice %1 {offsets = [0, 12, 0], sizes = [8, 1, 32], strides = [1, 1, 1]} : vector<8x32x32xf32> to vector<8x1x32xf32>
    %149 = vector.shape_cast %148 : vector<8x1x32xf32> to vector<8x32xf32>
    %150 = vector.extract_strided_slice %1 {offsets = [0, 13, 0], sizes = [8, 1, 32], strides = [1, 1, 1]} : vector<8x32x32xf32> to vector<8x1x32xf32>
    %151 = vector.shape_cast %150 : vector<8x1x32xf32> to vector<8x32xf32>
    %152 = vector.extract_strided_slice %1 {offsets = [0, 14, 0], sizes = [8, 1, 32], strides = [1, 1, 1]} : vector<8x32x32xf32> to vector<8x1x32xf32>
    %153 = vector.shape_cast %152 : vector<8x1x32xf32> to vector<8x32xf32>
    %154 = tpu.concatenate %149, %151, %153 in 0 : vector<8x32xf32>, vector<8x32xf32>, vector<8x32xf32> -> vector<24x32xf32>
    %cst_82 = arith.constant dense<0.000000e+00> : vector<6x32xf32>
    %155 = tpu.matmul %2, %154, %cst_82 {dimension_numbers = #tpu.dot_dimension_numbers<[1], [0], [0], [1], [0, 0, 1, 1], [], []>} : vector<6x24xf32>, vector<24x32xf32>, vector<6x32xf32> -> vector<6x32xf32>
    %156 = vector.extract_strided_slice %155 {offsets = [0, 0], sizes = [2, 32], strides = [1, 1]} : vector<6x32xf32> to vector<2x32xf32>
    %c0_83 = arith.constant 0 : index
    %c0_84 = arith.constant 0 : index
    %c0_85 = arith.constant 0 : index
    %157 = vector.load %arg3[%c0_83, %c0_84, %c0_85] : memref<3x32x15xf32, #tpu.memory_space<vmem>>, vector<1x32x15xf32>
    %158 = vector.shape_cast %157 : vector<1x32x15xf32> to vector<32x15xf32>
    %cst_86 = arith.constant dense<0.000000e+00> : vector<2x15xf32>
    %159 = tpu.matmul %156, %158, %cst_86 {dimension_numbers = #tpu.dot_dimension_numbers<[1], [0], [0], [1], [0, 0, 1, 1], [], []>} : vector<2x32xf32>, vector<32x15xf32>, vector<2x15xf32> -> vector<2x15xf32>
    %160 = vector.broadcast %3 : vector<2x1xf32> to vector<2x15xf32>
    %161 = arith.addf %160, %159 : vector<2x15xf32>
    %162 = vector.extract_strided_slice %155 {offsets = [2, 0], sizes = [2, 32], strides = [1, 1]} : vector<6x32xf32> to vector<2x32xf32>
    %c1_87 = arith.constant 1 : index
    %c0_88 = arith.constant 0 : index
    %c0_89 = arith.constant 0 : index
    %163 = vector.load %arg3[%c1_87, %c0_88, %c0_89] : memref<3x32x15xf32, #tpu.memory_space<vmem>>, vector<1x32x15xf32>
    %164 = vector.shape_cast %163 : vector<1x32x15xf32> to vector<32x15xf32>
    %cst_90 = arith.constant dense<0.000000e+00> : vector<2x15xf32>
    %165 = tpu.matmul %162, %164, %cst_90 {dimension_numbers = #tpu.dot_dimension_numbers<[1], [0], [0], [1], [0, 0, 1, 1], [], []>} : vector<2x32xf32>, vector<32x15xf32>, vector<2x15xf32> -> vector<2x15xf32>
    %166 = arith.addf %161, %165 : vector<2x15xf32>
    %167 = vector.extract_strided_slice %155 {offsets = [4, 0], sizes = [2, 32], strides = [1, 1]} : vector<6x32xf32> to vector<2x32xf32>
    %c2_91 = arith.constant 2 : index
    %c0_92 = arith.constant 0 : index
    %c0_93 = arith.constant 0 : index
    %168 = vector.load %arg3[%c2_91, %c0_92, %c0_93] : memref<3x32x15xf32, #tpu.memory_space<vmem>>, vector<1x32x15xf32>
    %169 = vector.shape_cast %168 : vector<1x32x15xf32> to vector<32x15xf32>
    %cst_94 = arith.constant dense<0.000000e+00> : vector<2x15xf32>
    %170 = tpu.matmul %167, %169, %cst_94 {dimension_numbers = #tpu.dot_dimension_numbers<[1], [0], [0], [1], [0, 0, 1, 1], [], []>} : vector<2x32xf32>, vector<32x15xf32>, vector<2x15xf32> -> vector<2x15xf32>
    %171 = arith.addf %166, %170 : vector<2x15xf32>
    %172 = vector.extract_strided_slice %1 {offsets = [0, 14, 0], sizes = [8, 1, 32], strides = [1, 1, 1]} : vector<8x32x32xf32> to vector<8x1x32xf32>
    %173 = vector.shape_cast %172 : vector<8x1x32xf32> to vector<8x32xf32>
    %174 = vector.extract_strided_slice %1 {offsets = [0, 15, 0], sizes = [8, 1, 32], strides = [1, 1, 1]} : vector<8x32x32xf32> to vector<8x1x32xf32>
    %175 = vector.shape_cast %174 : vector<8x1x32xf32> to vector<8x32xf32>
    %176 = vector.extract_strided_slice %1 {offsets = [0, 16, 0], sizes = [8, 1, 32], strides = [1, 1, 1]} : vector<8x32x32xf32> to vector<8x1x32xf32>
    %177 = vector.shape_cast %176 : vector<8x1x32xf32> to vector<8x32xf32>
    %178 = tpu.concatenate %173, %175, %177 in 0 : vector<8x32xf32>, vector<8x32xf32>, vector<8x32xf32> -> vector<24x32xf32>
    %cst_95 = arith.constant dense<0.000000e+00> : vector<6x32xf32>
    %179 = tpu.matmul %2, %178, %cst_95 {dimension_numbers = #tpu.dot_dimension_numbers<[1], [0], [0], [1], [0, 0, 1, 1], [], []>} : vector<6x24xf32>, vector<24x32xf32>, vector<6x32xf32> -> vector<6x32xf32>
    %180 = vector.extract_strided_slice %179 {offsets = [0, 0], sizes = [2, 32], strides = [1, 1]} : vector<6x32xf32> to vector<2x32xf32>
    %c0_96 = arith.constant 0 : index
    %c0_97 = arith.constant 0 : index
    %c0_98 = arith.constant 0 : index
    %181 = vector.load %arg3[%c0_96, %c0_97, %c0_98] : memref<3x32x15xf32, #tpu.memory_space<vmem>>, vector<1x32x15xf32>
    %182 = vector.shape_cast %181 : vector<1x32x15xf32> to vector<32x15xf32>
    %cst_99 = arith.constant dense<0.000000e+00> : vector<2x15xf32>
    %183 = tpu.matmul %180, %182, %cst_99 {dimension_numbers = #tpu.dot_dimension_numbers<[1], [0], [0], [1], [0, 0, 1, 1], [], []>} : vector<2x32xf32>, vector<32x15xf32>, vector<2x15xf32> -> vector<2x15xf32>
    %184 = vector.broadcast %3 : vector<2x1xf32> to vector<2x15xf32>
    %185 = arith.addf %184, %183 : vector<2x15xf32>
    %186 = vector.extract_strided_slice %179 {offsets = [2, 0], sizes = [2, 32], strides = [1, 1]} : vector<6x32xf32> to vector<2x32xf32>
    %c1_100 = arith.constant 1 : index
    %c0_101 = arith.constant 0 : index
    %c0_102 = arith.constant 0 : index
    %187 = vector.load %arg3[%c1_100, %c0_101, %c0_102] : memref<3x32x15xf32, #tpu.memory_space<vmem>>, vector<1x32x15xf32>
    %188 = vector.shape_cast %187 : vector<1x32x15xf32> to vector<32x15xf32>
    %cst_103 = arith.constant dense<0.000000e+00> : vector<2x15xf32>
    %189 = tpu.matmul %186, %188, %cst_103 {dimension_numbers = #tpu.dot_dimension_numbers<[1], [0], [0], [1], [0, 0, 1, 1], [], []>} : vector<2x32xf32>, vector<32x15xf32>, vector<2x15xf32> -> vector<2x15xf32>
    %190 = arith.addf %185, %189 : vector<2x15xf32>
    %191 = vector.extract_strided_slice %179 {offsets = [4, 0], sizes = [2, 32], strides = [1, 1]} : vector<6x32xf32> to vector<2x32xf32>
    %c2_104 = arith.constant 2 : index
    %c0_105 = arith.constant 0 : index
    %c0_106 = arith.constant 0 : index
    %192 = vector.load %arg3[%c2_104, %c0_105, %c0_106] : memref<3x32x15xf32, #tpu.memory_space<vmem>>, vector<1x32x15xf32>
    %193 = vector.shape_cast %192 : vector<1x32x15xf32> to vector<32x15xf32>
    %cst_107 = arith.constant dense<0.000000e+00> : vector<2x15xf32>
    %194 = tpu.matmul %191, %193, %cst_107 {dimension_numbers = #tpu.dot_dimension_numbers<[1], [0], [0], [1], [0, 0, 1, 1], [], []>} : vector<2x32xf32>, vector<32x15xf32>, vector<2x15xf32> -> vector<2x15xf32>
    %195 = arith.addf %190, %194 : vector<2x15xf32>
    %196 = vector.extract_strided_slice %1 {offsets = [0, 16, 0], sizes = [8, 1, 32], strides = [1, 1, 1]} : vector<8x32x32xf32> to vector<8x1x32xf32>
    %197 = vector.shape_cast %196 : vector<8x1x32xf32> to vector<8x32xf32>
    %198 = vector.extract_strided_slice %1 {offsets = [0, 17, 0], sizes = [8, 1, 32], strides = [1, 1, 1]} : vector<8x32x32xf32> to vector<8x1x32xf32>
    %199 = vector.shape_cast %198 : vector<8x1x32xf32> to vector<8x32xf32>
    %200 = vector.extract_strided_slice %1 {offsets = [0, 18, 0], sizes = [8, 1, 32], strides = [1, 1, 1]} : vector<8x32x32xf32> to vector<8x1x32xf32>
    %201 = vector.shape_cast %200 : vector<8x1x32xf32> to vector<8x32xf32>
    %202 = tpu.concatenate %197, %199, %201 in 0 : vector<8x32xf32>, vector<8x32xf32>, vector<8x32xf32> -> vector<24x32xf32>
    %cst_108 = arith.constant dense<0.000000e+00> : vector<6x32xf32>
    %203 = tpu.matmul %2, %202, %cst_108 {dimension_numbers = #tpu.dot_dimension_numbers<[1], [0], [0], [1], [0, 0, 1, 1], [], []>} : vector<6x24xf32>, vector<24x32xf32>, vector<6x32xf32> -> vector<6x32xf32>
    %204 = vector.extract_strided_slice %203 {offsets = [0, 0], sizes = [2, 32], strides = [1, 1]} : vector<6x32xf32> to vector<2x32xf32>
    %c0_109 = arith.constant 0 : index
    %c0_110 = arith.constant 0 : index
    %c0_111 = arith.constant 0 : index
    %205 = vector.load %arg3[%c0_109, %c0_110, %c0_111] : memref<3x32x15xf32, #tpu.memory_space<vmem>>, vector<1x32x15xf32>
    %206 = vector.shape_cast %205 : vector<1x32x15xf32> to vector<32x15xf32>
    %cst_112 = arith.constant dense<0.000000e+00> : vector<2x15xf32>
    %207 = tpu.matmul %204, %206, %cst_112 {dimension_numbers = #tpu.dot_dimension_numbers<[1], [0], [0], [1], [0, 0, 1, 1], [], []>} : vector<2x32xf32>, vector<32x15xf32>, vector<2x15xf32> -> vector<2x15xf32>
    %208 = vector.broadcast %3 : vector<2x1xf32> to vector<2x15xf32>
    %209 = arith.addf %208, %207 : vector<2x15xf32>
    %210 = vector.extract_strided_slice %203 {offsets = [2, 0], sizes = [2, 32], strides = [1, 1]} : vector<6x32xf32> to vector<2x32xf32>
    %c1_113 = arith.constant 1 : index
    %c0_114 = arith.constant 0 : index
    %c0_115 = arith.constant 0 : index
    %211 = vector.load %arg3[%c1_113, %c0_114, %c0_115] : memref<3x32x15xf32, #tpu.memory_space<vmem>>, vector<1x32x15xf32>
    %212 = vector.shape_cast %211 : vector<1x32x15xf32> to vector<32x15xf32>
    %cst_116 = arith.constant dense<0.000000e+00> : vector<2x15xf32>
    %213 = tpu.matmul %210, %212, %cst_116 {dimension_numbers = #tpu.dot_dimension_numbers<[1], [0], [0], [1], [0, 0, 1, 1], [], []>} : vector<2x32xf32>, vector<32x15xf32>, vector<2x15xf32> -> vector<2x15xf32>
    %214 = arith.addf %209, %213 : vector<2x15xf32>
    %215 = vector.extract_strided_slice %203 {offsets = [4, 0], sizes = [2, 32], strides = [1, 1]} : vector<6x32xf32> to vector<2x32xf32>
    %c2_117 = arith.constant 2 : index
    %c0_118 = arith.constant 0 : index
    %c0_119 = arith.constant 0 : index
    %216 = vector.load %arg3[%c2_117, %c0_118, %c0_119] : memref<3x32x15xf32, #tpu.memory_space<vmem>>, vector<1x32x15xf32>
    %217 = vector.shape_cast %216 : vector<1x32x15xf32> to vector<32x15xf32>
    %cst_120 = arith.constant dense<0.000000e+00> : vector<2x15xf32>
    %218 = tpu.matmul %215, %217, %cst_120 {dimension_numbers = #tpu.dot_dimension_numbers<[1], [0], [0], [1], [0, 0, 1, 1], [], []>} : vector<2x32xf32>, vector<32x15xf32>, vector<2x15xf32> -> vector<2x15xf32>
    %219 = arith.addf %214, %218 : vector<2x15xf32>
    %220 = vector.extract_strided_slice %1 {offsets = [0, 18, 0], sizes = [8, 1, 32], strides = [1, 1, 1]} : vector<8x32x32xf32> to vector<8x1x32xf32>
    %221 = vector.shape_cast %220 : vector<8x1x32xf32> to vector<8x32xf32>
    %222 = vector.extract_strided_slice %1 {offsets = [0, 19, 0], sizes = [8, 1, 32], strides = [1, 1, 1]} : vector<8x32x32xf32> to vector<8x1x32xf32>
    %223 = vector.shape_cast %222 : vector<8x1x32xf32> to vector<8x32xf32>
    %224 = vector.extract_strided_slice %1 {offsets = [0, 20, 0], sizes = [8, 1, 32], strides = [1, 1, 1]} : vector<8x32x32xf32> to vector<8x1x32xf32>
    %225 = vector.shape_cast %224 : vector<8x1x32xf32> to vector<8x32xf32>
    %226 = tpu.concatenate %221, %223, %225 in 0 : vector<8x32xf32>, vector<8x32xf32>, vector<8x32xf32> -> vector<24x32xf32>
    %cst_121 = arith.constant dense<0.000000e+00> : vector<6x32xf32>
    %227 = tpu.matmul %2, %226, %cst_121 {dimension_numbers = #tpu.dot_dimension_numbers<[1], [0], [0], [1], [0, 0, 1, 1], [], []>} : vector<6x24xf32>, vector<24x32xf32>, vector<6x32xf32> -> vector<6x32xf32>
    %228 = vector.extract_strided_slice %227 {offsets = [0, 0], sizes = [2, 32], strides = [1, 1]} : vector<6x32xf32> to vector<2x32xf32>
    %c0_122 = arith.constant 0 : index
    %c0_123 = arith.constant 0 : index
    %c0_124 = arith.constant 0 : index
    %229 = vector.load %arg3[%c0_122, %c0_123, %c0_124] : memref<3x32x15xf32, #tpu.memory_space<vmem>>, vector<1x32x15xf32>
    %230 = vector.shape_cast %229 : vector<1x32x15xf32> to vector<32x15xf32>
    %cst_125 = arith.constant dense<0.000000e+00> : vector<2x15xf32>
    %231 = tpu.matmul %228, %230, %cst_125 {dimension_numbers = #tpu.dot_dimension_numbers<[1], [0], [0], [1], [0, 0, 1, 1], [], []>} : vector<2x32xf32>, vector<32x15xf32>, vector<2x15xf32> -> vector<2x15xf32>
    %232 = vector.broadcast %3 : vector<2x1xf32> to vector<2x15xf32>
    %233 = arith.addf %232, %231 : vector<2x15xf32>
    %234 = vector.extract_strided_slice %227 {offsets = [2, 0], sizes = [2, 32], strides = [1, 1]} : vector<6x32xf32> to vector<2x32xf32>
    %c1_126 = arith.constant 1 : index
    %c0_127 = arith.constant 0 : index
    %c0_128 = arith.constant 0 : index
    %235 = vector.load %arg3[%c1_126, %c0_127, %c0_128] : memref<3x32x15xf32, #tpu.memory_space<vmem>>, vector<1x32x15xf32>
    %236 = vector.shape_cast %235 : vector<1x32x15xf32> to vector<32x15xf32>
    %cst_129 = arith.constant dense<0.000000e+00> : vector<2x15xf32>
    %237 = tpu.matmul %234, %236, %cst_129 {dimension_numbers = #tpu.dot_dimension_numbers<[1], [0], [0], [1], [0, 0, 1, 1], [], []>} : vector<2x32xf32>, vector<32x15xf32>, vector<2x15xf32> -> vector<2x15xf32>
    %238 = arith.addf %233, %237 : vector<2x15xf32>
    %239 = vector.extract_strided_slice %227 {offsets = [4, 0], sizes = [2, 32], strides = [1, 1]} : vector<6x32xf32> to vector<2x32xf32>
    %c2_130 = arith.constant 2 : index
    %c0_131 = arith.constant 0 : index
    %c0_132 = arith.constant 0 : index
    %240 = vector.load %arg3[%c2_130, %c0_131, %c0_132] : memref<3x32x15xf32, #tpu.memory_space<vmem>>, vector<1x32x15xf32>
    %241 = vector.shape_cast %240 : vector<1x32x15xf32> to vector<32x15xf32>
    %cst_133 = arith.constant dense<0.000000e+00> : vector<2x15xf32>
    %242 = tpu.matmul %239, %241, %cst_133 {dimension_numbers = #tpu.dot_dimension_numbers<[1], [0], [0], [1], [0, 0, 1, 1], [], []>} : vector<2x32xf32>, vector<32x15xf32>, vector<2x15xf32> -> vector<2x15xf32>
    %243 = arith.addf %238, %242 : vector<2x15xf32>
    %244 = vector.extract_strided_slice %1 {offsets = [0, 20, 0], sizes = [8, 1, 32], strides = [1, 1, 1]} : vector<8x32x32xf32> to vector<8x1x32xf32>
    %245 = vector.shape_cast %244 : vector<8x1x32xf32> to vector<8x32xf32>
    %246 = vector.extract_strided_slice %1 {offsets = [0, 21, 0], sizes = [8, 1, 32], strides = [1, 1, 1]} : vector<8x32x32xf32> to vector<8x1x32xf32>
    %247 = vector.shape_cast %246 : vector<8x1x32xf32> to vector<8x32xf32>
    %248 = vector.extract_strided_slice %1 {offsets = [0, 22, 0], sizes = [8, 1, 32], strides = [1, 1, 1]} : vector<8x32x32xf32> to vector<8x1x32xf32>
    %249 = vector.shape_cast %248 : vector<8x1x32xf32> to vector<8x32xf32>
    %250 = tpu.concatenate %245, %247, %249 in 0 : vector<8x32xf32>, vector<8x32xf32>, vector<8x32xf32> -> vector<24x32xf32>
    %cst_134 = arith.constant dense<0.000000e+00> : vector<6x32xf32>
    %251 = tpu.matmul %2, %250, %cst_134 {dimension_numbers = #tpu.dot_dimension_numbers<[1], [0], [0], [1], [0, 0, 1, 1], [], []>} : vector<6x24xf32>, vector<24x32xf32>, vector<6x32xf32> -> vector<6x32xf32>
    %252 = vector.extract_strided_slice %251 {offsets = [0, 0], sizes = [2, 32], strides = [1, 1]} : vector<6x32xf32> to vector<2x32xf32>
    %c0_135 = arith.constant 0 : index
    %c0_136 = arith.constant 0 : index
    %c0_137 = arith.constant 0 : index
    %253 = vector.load %arg3[%c0_135, %c0_136, %c0_137] : memref<3x32x15xf32, #tpu.memory_space<vmem>>, vector<1x32x15xf32>
    %254 = vector.shape_cast %253 : vector<1x32x15xf32> to vector<32x15xf32>
    %cst_138 = arith.constant dense<0.000000e+00> : vector<2x15xf32>
    %255 = tpu.matmul %252, %254, %cst_138 {dimension_numbers = #tpu.dot_dimension_numbers<[1], [0], [0], [1], [0, 0, 1, 1], [], []>} : vector<2x32xf32>, vector<32x15xf32>, vector<2x15xf32> -> vector<2x15xf32>
    %256 = vector.broadcast %3 : vector<2x1xf32> to vector<2x15xf32>
    %257 = arith.addf %256, %255 : vector<2x15xf32>
    %258 = vector.extract_strided_slice %251 {offsets = [2, 0], sizes = [2, 32], strides = [1, 1]} : vector<6x32xf32> to vector<2x32xf32>
    %c1_139 = arith.constant 1 : index
    %c0_140 = arith.constant 0 : index
    %c0_141 = arith.constant 0 : index
    %259 = vector.load %arg3[%c1_139, %c0_140, %c0_141] : memref<3x32x15xf32, #tpu.memory_space<vmem>>, vector<1x32x15xf32>
    %260 = vector.shape_cast %259 : vector<1x32x15xf32> to vector<32x15xf32>
    %cst_142 = arith.constant dense<0.000000e+00> : vector<2x15xf32>
    %261 = tpu.matmul %258, %260, %cst_142 {dimension_numbers = #tpu.dot_dimension_numbers<[1], [0], [0], [1], [0, 0, 1, 1], [], []>} : vector<2x32xf32>, vector<32x15xf32>, vector<2x15xf32> -> vector<2x15xf32>
    %262 = arith.addf %257, %261 : vector<2x15xf32>
    %263 = vector.extract_strided_slice %251 {offsets = [4, 0], sizes = [2, 32], strides = [1, 1]} : vector<6x32xf32> to vector<2x32xf32>
    %c2_143 = arith.constant 2 : index
    %c0_144 = arith.constant 0 : index
    %c0_145 = arith.constant 0 : index
    %264 = vector.load %arg3[%c2_143, %c0_144, %c0_145] : memref<3x32x15xf32, #tpu.memory_space<vmem>>, vector<1x32x15xf32>
    %265 = vector.shape_cast %264 : vector<1x32x15xf32> to vector<32x15xf32>
    %cst_146 = arith.constant dense<0.000000e+00> : vector<2x15xf32>
    %266 = tpu.matmul %263, %265, %cst_146 {dimension_numbers = #tpu.dot_dimension_numbers<[1], [0], [0], [1], [0, 0, 1, 1], [], []>} : vector<2x32xf32>, vector<32x15xf32>, vector<2x15xf32> -> vector<2x15xf32>
    %267 = arith.addf %262, %266 : vector<2x15xf32>
    %268 = vector.extract_strided_slice %1 {offsets = [0, 22, 0], sizes = [8, 1, 32], strides = [1, 1, 1]} : vector<8x32x32xf32> to vector<8x1x32xf32>
    %269 = vector.shape_cast %268 : vector<8x1x32xf32> to vector<8x32xf32>
    %270 = vector.extract_strided_slice %1 {offsets = [0, 23, 0], sizes = [8, 1, 32], strides = [1, 1, 1]} : vector<8x32x32xf32> to vector<8x1x32xf32>
    %271 = vector.shape_cast %270 : vector<8x1x32xf32> to vector<8x32xf32>
    %272 = vector.extract_strided_slice %1 {offsets = [0, 24, 0], sizes = [8, 1, 32], strides = [1, 1, 1]} : vector<8x32x32xf32> to vector<8x1x32xf32>
    %273 = vector.shape_cast %272 : vector<8x1x32xf32> to vector<8x32xf32>
    %274 = tpu.concatenate %269, %271, %273 in 0 : vector<8x32xf32>, vector<8x32xf32>, vector<8x32xf32> -> vector<24x32xf32>
    %cst_147 = arith.constant dense<0.000000e+00> : vector<6x32xf32>
    %275 = tpu.matmul %2, %274, %cst_147 {dimension_numbers = #tpu.dot_dimension_numbers<[1], [0], [0], [1], [0, 0, 1, 1], [], []>} : vector<6x24xf32>, vector<24x32xf32>, vector<6x32xf32> -> vector<6x32xf32>
    %276 = vector.extract_strided_slice %275 {offsets = [0, 0], sizes = [2, 32], strides = [1, 1]} : vector<6x32xf32> to vector<2x32xf32>
    %c0_148 = arith.constant 0 : index
    %c0_149 = arith.constant 0 : index
    %c0_150 = arith.constant 0 : index
    %277 = vector.load %arg3[%c0_148, %c0_149, %c0_150] : memref<3x32x15xf32, #tpu.memory_space<vmem>>, vector<1x32x15xf32>
    %278 = vector.shape_cast %277 : vector<1x32x15xf32> to vector<32x15xf32>
    %cst_151 = arith.constant dense<0.000000e+00> : vector<2x15xf32>
    %279 = tpu.matmul %276, %278, %cst_151 {dimension_numbers = #tpu.dot_dimension_numbers<[1], [0], [0], [1], [0, 0, 1, 1], [], []>} : vector<2x32xf32>, vector<32x15xf32>, vector<2x15xf32> -> vector<2x15xf32>
    %280 = vector.broadcast %3 : vector<2x1xf32> to vector<2x15xf32>
    %281 = arith.addf %280, %279 : vector<2x15xf32>
    %282 = vector.extract_strided_slice %275 {offsets = [2, 0], sizes = [2, 32], strides = [1, 1]} : vector<6x32xf32> to vector<2x32xf32>
    %c1_152 = arith.constant 1 : index
    %c0_153 = arith.constant 0 : index
    %c0_154 = arith.constant 0 : index
    %283 = vector.load %arg3[%c1_152, %c0_153, %c0_154] : memref<3x32x15xf32, #tpu.memory_space<vmem>>, vector<1x32x15xf32>
    %284 = vector.shape_cast %283 : vector<1x32x15xf32> to vector<32x15xf32>
    %cst_155 = arith.constant dense<0.000000e+00> : vector<2x15xf32>
    %285 = tpu.matmul %282, %284, %cst_155 {dimension_numbers = #tpu.dot_dimension_numbers<[1], [0], [0], [1], [0, 0, 1, 1], [], []>} : vector<2x32xf32>, vector<32x15xf32>, vector<2x15xf32> -> vector<2x15xf32>
    %286 = arith.addf %281, %285 : vector<2x15xf32>
    %287 = vector.extract_strided_slice %275 {offsets = [4, 0], sizes = [2, 32], strides = [1, 1]} : vector<6x32xf32> to vector<2x32xf32>
    %c2_156 = arith.constant 2 : index
    %c0_157 = arith.constant 0 : index
    %c0_158 = arith.constant 0 : index
    %288 = vector.load %arg3[%c2_156, %c0_157, %c0_158] : memref<3x32x15xf32, #tpu.memory_space<vmem>>, vector<1x32x15xf32>
    %289 = vector.shape_cast %288 : vector<1x32x15xf32> to vector<32x15xf32>
    %cst_159 = arith.constant dense<0.000000e+00> : vector<2x15xf32>
    %290 = tpu.matmul %287, %289, %cst_159 {dimension_numbers = #tpu.dot_dimension_numbers<[1], [0], [0], [1], [0, 0, 1, 1], [], []>} : vector<2x32xf32>, vector<32x15xf32>, vector<2x15xf32> -> vector<2x15xf32>
    %291 = arith.addf %286, %290 : vector<2x15xf32>
    %292 = vector.extract_strided_slice %1 {offsets = [0, 24, 0], sizes = [8, 1, 32], strides = [1, 1, 1]} : vector<8x32x32xf32> to vector<8x1x32xf32>
    %293 = vector.shape_cast %292 : vector<8x1x32xf32> to vector<8x32xf32>
    %294 = vector.extract_strided_slice %1 {offsets = [0, 25, 0], sizes = [8, 1, 32], strides = [1, 1, 1]} : vector<8x32x32xf32> to vector<8x1x32xf32>
    %295 = vector.shape_cast %294 : vector<8x1x32xf32> to vector<8x32xf32>
    %296 = vector.extract_strided_slice %1 {offsets = [0, 26, 0], sizes = [8, 1, 32], strides = [1, 1, 1]} : vector<8x32x32xf32> to vector<8x1x32xf32>
    %297 = vector.shape_cast %296 : vector<8x1x32xf32> to vector<8x32xf32>
    %298 = tpu.concatenate %293, %295, %297 in 0 : vector<8x32xf32>, vector<8x32xf32>, vector<8x32xf32> -> vector<24x32xf32>
    %cst_160 = arith.constant dense<0.000000e+00> : vector<6x32xf32>
    %299 = tpu.matmul %2, %298, %cst_160 {dimension_numbers = #tpu.dot_dimension_numbers<[1], [0], [0], [1], [0, 0, 1, 1], [], []>} : vector<6x24xf32>, vector<24x32xf32>, vector<6x32xf32> -> vector<6x32xf32>
    %300 = vector.extract_strided_slice %299 {offsets = [0, 0], sizes = [2, 32], strides = [1, 1]} : vector<6x32xf32> to vector<2x32xf32>
    %c0_161 = arith.constant 0 : index
    %c0_162 = arith.constant 0 : index
    %c0_163 = arith.constant 0 : index
    %301 = vector.load %arg3[%c0_161, %c0_162, %c0_163] : memref<3x32x15xf32, #tpu.memory_space<vmem>>, vector<1x32x15xf32>
    %302 = vector.shape_cast %301 : vector<1x32x15xf32> to vector<32x15xf32>
    %cst_164 = arith.constant dense<0.000000e+00> : vector<2x15xf32>
    %303 = tpu.matmul %300, %302, %cst_164 {dimension_numbers = #tpu.dot_dimension_numbers<[1], [0], [0], [1], [0, 0, 1, 1], [], []>} : vector<2x32xf32>, vector<32x15xf32>, vector<2x15xf32> -> vector<2x15xf32>
    %304 = vector.broadcast %3 : vector<2x1xf32> to vector<2x15xf32>
    %305 = arith.addf %304, %303 : vector<2x15xf32>
    %306 = vector.extract_strided_slice %299 {offsets = [2, 0], sizes = [2, 32], strides = [1, 1]} : vector<6x32xf32> to vector<2x32xf32>
    %c1_165 = arith.constant 1 : index
    %c0_166 = arith.constant 0 : index
    %c0_167 = arith.constant 0 : index
    %307 = vector.load %arg3[%c1_165, %c0_166, %c0_167] : memref<3x32x15xf32, #tpu.memory_space<vmem>>, vector<1x32x15xf32>
    %308 = vector.shape_cast %307 : vector<1x32x15xf32> to vector<32x15xf32>
    %cst_168 = arith.constant dense<0.000000e+00> : vector<2x15xf32>
    %309 = tpu.matmul %306, %308, %cst_168 {dimension_numbers = #tpu.dot_dimension_numbers<[1], [0], [0], [1], [0, 0, 1, 1], [], []>} : vector<2x32xf32>, vector<32x15xf32>, vector<2x15xf32> -> vector<2x15xf32>
    %310 = arith.addf %305, %309 : vector<2x15xf32>
    %311 = vector.extract_strided_slice %299 {offsets = [4, 0], sizes = [2, 32], strides = [1, 1]} : vector<6x32xf32> to vector<2x32xf32>
    %c2_169 = arith.constant 2 : index
    %c0_170 = arith.constant 0 : index
    %c0_171 = arith.constant 0 : index
    %312 = vector.load %arg3[%c2_169, %c0_170, %c0_171] : memref<3x32x15xf32, #tpu.memory_space<vmem>>, vector<1x32x15xf32>
    %313 = vector.shape_cast %312 : vector<1x32x15xf32> to vector<32x15xf32>
    %cst_172 = arith.constant dense<0.000000e+00> : vector<2x15xf32>
    %314 = tpu.matmul %311, %313, %cst_172 {dimension_numbers = #tpu.dot_dimension_numbers<[1], [0], [0], [1], [0, 0, 1, 1], [], []>} : vector<2x32xf32>, vector<32x15xf32>, vector<2x15xf32> -> vector<2x15xf32>
    %315 = arith.addf %310, %314 : vector<2x15xf32>
    %316 = arith.maximumf %27, %51 : vector<2x15xf32>
    %317 = arith.maximumf %316, %75 : vector<2x15xf32>
    %318 = arith.maximumf %317, %99 : vector<2x15xf32>
    %319 = arith.maximumf %318, %123 : vector<2x15xf32>
    %320 = arith.maximumf %319, %147 : vector<2x15xf32>
    %321 = arith.maximumf %320, %171 : vector<2x15xf32>
    %322 = vector.extract_strided_slice %321 {offsets = [0, 0], sizes = [2, 7], strides = [1, 1]} : vector<2x15xf32> to vector<2x7xf32>
    %cst_173 = arith.constant dense<0xFF800000> : vector<2xf32>
    %323 = vector.multi_reduction <maximumf>, %322, %cst_173 [1] : vector<2x7xf32> to vector<2xf32>
    %324 = vector.shape_cast %323 : vector<2xf32> to vector<2x1xf32>
    %325 = vector.extract_strided_slice %321 {offsets = [0, 3], sizes = [2, 7], strides = [1, 1]} : vector<2x15xf32> to vector<2x7xf32>
    %cst_174 = arith.constant dense<0xFF800000> : vector<2xf32>
    %326 = vector.multi_reduction <maximumf>, %325, %cst_174 [1] : vector<2x7xf32> to vector<2xf32>
    %327 = vector.shape_cast %326 : vector<2xf32> to vector<2x1xf32>
    %328 = vector.extract_strided_slice %321 {offsets = [0, 6], sizes = [2, 7], strides = [1, 1]} : vector<2x15xf32> to vector<2x7xf32>
    %cst_175 = arith.constant dense<0xFF800000> : vector<2xf32>
    %329 = vector.multi_reduction <maximumf>, %328, %cst_175 [1] : vector<2x7xf32> to vector<2xf32>
    %330 = vector.shape_cast %329 : vector<2xf32> to vector<2x1xf32>
    %331 = tpu.concatenate %324, %327, %330 in 1 : vector<2x1xf32>, vector<2x1xf32>, vector<2x1xf32> -> vector<2x3xf32>
    %332 = arith.maximumf %99, %123 : vector<2x15xf32>
    %333 = arith.maximumf %332, %147 : vector<2x15xf32>
    %334 = arith.maximumf %333, %171 : vector<2x15xf32>
    %335 = arith.maximumf %334, %195 : vector<2x15xf32>
    %336 = arith.maximumf %335, %219 : vector<2x15xf32>
    %337 = arith.maximumf %336, %243 : vector<2x15xf32>
    %338 = vector.extract_strided_slice %337 {offsets = [0, 0], sizes = [2, 7], strides = [1, 1]} : vector<2x15xf32> to vector<2x7xf32>
    %cst_176 = arith.constant dense<0xFF800000> : vector<2xf32>
    %339 = vector.multi_reduction <maximumf>, %338, %cst_176 [1] : vector<2x7xf32> to vector<2xf32>
    %340 = vector.shape_cast %339 : vector<2xf32> to vector<2x1xf32>
    %341 = vector.extract_strided_slice %337 {offsets = [0, 3], sizes = [2, 7], strides = [1, 1]} : vector<2x15xf32> to vector<2x7xf32>
    %cst_177 = arith.constant dense<0xFF800000> : vector<2xf32>
    %342 = vector.multi_reduction <maximumf>, %341, %cst_177 [1] : vector<2x7xf32> to vector<2xf32>
    %343 = vector.shape_cast %342 : vector<2xf32> to vector<2x1xf32>
    %344 = vector.extract_strided_slice %337 {offsets = [0, 6], sizes = [2, 7], strides = [1, 1]} : vector<2x15xf32> to vector<2x7xf32>
    %cst_178 = arith.constant dense<0xFF800000> : vector<2xf32>
    %345 = vector.multi_reduction <maximumf>, %344, %cst_178 [1] : vector<2x7xf32> to vector<2xf32>
    %346 = vector.shape_cast %345 : vector<2xf32> to vector<2x1xf32>
    %347 = tpu.concatenate %340, %343, %346 in 1 : vector<2x1xf32>, vector<2x1xf32>, vector<2x1xf32> -> vector<2x3xf32>
    %348 = arith.maximumf %171, %195 : vector<2x15xf32>
    %349 = arith.maximumf %348, %219 : vector<2x15xf32>
    %350 = arith.maximumf %349, %243 : vector<2x15xf32>
    %351 = arith.maximumf %350, %267 : vector<2x15xf32>
    %352 = arith.maximumf %351, %291 : vector<2x15xf32>
    %353 = arith.maximumf %352, %315 : vector<2x15xf32>
    %354 = vector.extract_strided_slice %353 {offsets = [0, 0], sizes = [2, 7], strides = [1, 1]} : vector<2x15xf32> to vector<2x7xf32>
    %cst_179 = arith.constant dense<0xFF800000> : vector<2xf32>
    %355 = vector.multi_reduction <maximumf>, %354, %cst_179 [1] : vector<2x7xf32> to vector<2xf32>
    %356 = vector.shape_cast %355 : vector<2xf32> to vector<2x1xf32>
    %357 = vector.extract_strided_slice %353 {offsets = [0, 3], sizes = [2, 7], strides = [1, 1]} : vector<2x15xf32> to vector<2x7xf32>
    %cst_180 = arith.constant dense<0xFF800000> : vector<2xf32>
    %358 = vector.multi_reduction <maximumf>, %357, %cst_180 [1] : vector<2x7xf32> to vector<2xf32>
    %359 = vector.shape_cast %358 : vector<2xf32> to vector<2x1xf32>
    %360 = vector.extract_strided_slice %353 {offsets = [0, 6], sizes = [2, 7], strides = [1, 1]} : vector<2x15xf32> to vector<2x7xf32>
    %cst_181 = arith.constant dense<0xFF800000> : vector<2xf32>
    %361 = vector.multi_reduction <maximumf>, %360, %cst_181 [1] : vector<2x7xf32> to vector<2xf32>
    %362 = vector.shape_cast %361 : vector<2xf32> to vector<2x1xf32>
    %363 = tpu.concatenate %356, %359, %362 in 1 : vector<2x1xf32>, vector<2x1xf32>, vector<2x1xf32> -> vector<2x3xf32>
    %c0_182 = arith.constant 0 : index
    %c0_183 = arith.constant 0 : index
    %364 = vector.load %arg5[%c0_182, %c0_183] : memref<2x18xf32, #tpu.memory_space<vmem>>, vector<2x18xf32>
    %c0_184 = arith.constant 0 : index
    %c0_185 = arith.constant 0 : index
    %365 = vector.load %arg6[%c0_184, %c0_185] : memref<2x1xf32, #tpu.memory_space<vmem>>, vector<2x1xf32>
    %cst_186 = arith.constant 0.000000e+00 : f32
    %366 = vector.broadcast %cst_186 : f32 to vector<2x3xf32>
    %cst_187 = arith.constant 0.000000e+00 : f32
    %367 = vector.broadcast %cst_187 : f32 to vector<2x1xf32>
    %368 = tpu.concatenate %367, %366, %367 in 1 : vector<2x1xf32>, vector<2x3xf32>, vector<2x1xf32> -> vector<2x5xf32>
    %369 = tpu.concatenate %367, %331, %367 in 1 : vector<2x1xf32>, vector<2x3xf32>, vector<2x1xf32> -> vector<2x5xf32>
    %370 = tpu.concatenate %367, %347, %367 in 1 : vector<2x1xf32>, vector<2x3xf32>, vector<2x1xf32> -> vector<2x5xf32>
    %371 = tpu.concatenate %367, %363, %367 in 1 : vector<2x1xf32>, vector<2x3xf32>, vector<2x1xf32> -> vector<2x5xf32>
    %372 = tpu.concatenate %367, %366, %367 in 1 : vector<2x1xf32>, vector<2x3xf32>, vector<2x1xf32> -> vector<2x5xf32>
    %373 = vector.extract_strided_slice %368 {offsets = [0, 0], sizes = [2, 3], strides = [1, 1]} : vector<2x5xf32> to vector<2x3xf32>
    %374 = vector.extract_strided_slice %368 {offsets = [0, 1], sizes = [2, 3], strides = [1, 1]} : vector<2x5xf32> to vector<2x3xf32>
    %375 = vector.extract_strided_slice %368 {offsets = [0, 2], sizes = [2, 3], strides = [1, 1]} : vector<2x5xf32> to vector<2x3xf32>
    %376 = vector.extract_strided_slice %369 {offsets = [0, 0], sizes = [2, 3], strides = [1, 1]} : vector<2x5xf32> to vector<2x3xf32>
    %377 = vector.extract_strided_slice %369 {offsets = [0, 1], sizes = [2, 3], strides = [1, 1]} : vector<2x5xf32> to vector<2x3xf32>
    %378 = vector.extract_strided_slice %369 {offsets = [0, 2], sizes = [2, 3], strides = [1, 1]} : vector<2x5xf32> to vector<2x3xf32>
    %379 = vector.extract_strided_slice %370 {offsets = [0, 0], sizes = [2, 3], strides = [1, 1]} : vector<2x5xf32> to vector<2x3xf32>
    %380 = vector.extract_strided_slice %370 {offsets = [0, 1], sizes = [2, 3], strides = [1, 1]} : vector<2x5xf32> to vector<2x3xf32>
    %381 = vector.extract_strided_slice %370 {offsets = [0, 2], sizes = [2, 3], strides = [1, 1]} : vector<2x5xf32> to vector<2x3xf32>
    %382 = tpu.concatenate %373, %374, %375, %376, %377, %378, %379, %380, %381 in 0 : vector<2x3xf32>, vector<2x3xf32>, vector<2x3xf32>, vector<2x3xf32>, vector<2x3xf32>, vector<2x3xf32>, vector<2x3xf32>, vector<2x3xf32>, vector<2x3xf32> -> vector<18x3xf32>
    %cst_188 = arith.constant dense<0.000000e+00> : vector<2x3xf32>
    %383 = tpu.matmul %364, %382, %cst_188 {dimension_numbers = #tpu.dot_dimension_numbers<[1], [0], [0], [1], [0, 0, 1, 1], [], []>} : vector<2x18xf32>, vector<18x3xf32>, vector<2x3xf32> -> vector<2x3xf32>
    %384 = vector.broadcast %365 : vector<2x1xf32> to vector<2x3xf32>
    %385 = arith.addf %383, %384 : vector<2x3xf32>
    %cst_189 = arith.constant 0.000000e+00 : f32
    %386 = vector.broadcast %cst_189 : f32 to vector<2x3xf32>
    %387 = arith.maximumf %385, %386 : vector<2x3xf32>
    %388 = vector.extract_strided_slice %369 {offsets = [0, 0], sizes = [2, 3], strides = [1, 1]} : vector<2x5xf32> to vector<2x3xf32>
    %389 = vector.extract_strided_slice %369 {offsets = [0, 1], sizes = [2, 3], strides = [1, 1]} : vector<2x5xf32> to vector<2x3xf32>
    %390 = vector.extract_strided_slice %369 {offsets = [0, 2], sizes = [2, 3], strides = [1, 1]} : vector<2x5xf32> to vector<2x3xf32>
    %391 = vector.extract_strided_slice %370 {offsets = [0, 0], sizes = [2, 3], strides = [1, 1]} : vector<2x5xf32> to vector<2x3xf32>
    %392 = vector.extract_strided_slice %370 {offsets = [0, 1], sizes = [2, 3], strides = [1, 1]} : vector<2x5xf32> to vector<2x3xf32>
    %393 = vector.extract_strided_slice %370 {offsets = [0, 2], sizes = [2, 3], strides = [1, 1]} : vector<2x5xf32> to vector<2x3xf32>
    %394 = vector.extract_strided_slice %371 {offsets = [0, 0], sizes = [2, 3], strides = [1, 1]} : vector<2x5xf32> to vector<2x3xf32>
    %395 = vector.extract_strided_slice %371 {offsets = [0, 1], sizes = [2, 3], strides = [1, 1]} : vector<2x5xf32> to vector<2x3xf32>
    %396 = vector.extract_strided_slice %371 {offsets = [0, 2], sizes = [2, 3], strides = [1, 1]} : vector<2x5xf32> to vector<2x3xf32>
    %397 = tpu.concatenate %388, %389, %390, %391, %392, %393, %394, %395, %396 in 0 : vector<2x3xf32>, vector<2x3xf32>, vector<2x3xf32>, vector<2x3xf32>, vector<2x3xf32>, vector<2x3xf32>, vector<2x3xf32>, vector<2x3xf32>, vector<2x3xf32> -> vector<18x3xf32>
    %cst_190 = arith.constant dense<0.000000e+00> : vector<2x3xf32>
    %398 = tpu.matmul %364, %397, %cst_190 {dimension_numbers = #tpu.dot_dimension_numbers<[1], [0], [0], [1], [0, 0, 1, 1], [], []>} : vector<2x18xf32>, vector<18x3xf32>, vector<2x3xf32> -> vector<2x3xf32>
    %399 = vector.broadcast %365 : vector<2x1xf32> to vector<2x3xf32>
    %400 = arith.addf %398, %399 : vector<2x3xf32>
    %cst_191 = arith.constant 0.000000e+00 : f32
    %401 = vector.broadcast %cst_191 : f32 to vector<2x3xf32>
    %402 = arith.maximumf %400, %401 : vector<2x3xf32>
    %403 = vector.extract_strided_slice %370 {offsets = [0, 0], sizes = [2, 3], strides = [1, 1]} : vector<2x5xf32> to vector<2x3xf32>
    %404 = vector.extract_strided_slice %370 {offsets = [0, 1], sizes = [2, 3], strides = [1, 1]} : vector<2x5xf32> to vector<2x3xf32>
    %405 = vector.extract_strided_slice %370 {offsets = [0, 2], sizes = [2, 3], strides = [1, 1]} : vector<2x5xf32> to vector<2x3xf32>
    %406 = vector.extract_strided_slice %371 {offsets = [0, 0], sizes = [2, 3], strides = [1, 1]} : vector<2x5xf32> to vector<2x3xf32>
    %407 = vector.extract_strided_slice %371 {offsets = [0, 1], sizes = [2, 3], strides = [1, 1]} : vector<2x5xf32> to vector<2x3xf32>
    %408 = vector.extract_strided_slice %371 {offsets = [0, 2], sizes = [2, 3], strides = [1, 1]} : vector<2x5xf32> to vector<2x3xf32>
    %409 = vector.extract_strided_slice %372 {offsets = [0, 0], sizes = [2, 3], strides = [1, 1]} : vector<2x5xf32> to vector<2x3xf32>
    %410 = vector.extract_strided_slice %372 {offsets = [0, 1], sizes = [2, 3], strides = [1, 1]} : vector<2x5xf32> to vector<2x3xf32>
    %411 = vector.extract_strided_slice %372 {offsets = [0, 2], sizes = [2, 3], strides = [1, 1]} : vector<2x5xf32> to vector<2x3xf32>
    %412 = tpu.concatenate %403, %404, %405, %406, %407, %408, %409, %410, %411 in 0 : vector<2x3xf32>, vector<2x3xf32>, vector<2x3xf32>, vector<2x3xf32>, vector<2x3xf32>, vector<2x3xf32>, vector<2x3xf32>, vector<2x3xf32>, vector<2x3xf32> -> vector<18x3xf32>
    %cst_192 = arith.constant dense<0.000000e+00> : vector<2x3xf32>
    %413 = tpu.matmul %364, %412, %cst_192 {dimension_numbers = #tpu.dot_dimension_numbers<[1], [0], [0], [1], [0, 0, 1, 1], [], []>} : vector<2x18xf32>, vector<18x3xf32>, vector<2x3xf32> -> vector<2x3xf32>
    %414 = vector.broadcast %365 : vector<2x1xf32> to vector<2x3xf32>
    %415 = arith.addf %413, %414 : vector<2x3xf32>
    %cst_193 = arith.constant 0.000000e+00 : f32
    %416 = vector.broadcast %cst_193 : f32 to vector<2x3xf32>
    %417 = arith.maximumf %415, %416 : vector<2x3xf32>
    %c0_194 = arith.constant 0 : index
    %c0_195 = arith.constant 0 : index
    %418 = vector.load %arg7[%c0_194, %c0_195] : memref<2x18xf32, #tpu.memory_space<vmem>>, vector<2x18xf32>
    %c0_196 = arith.constant 0 : index
    %c0_197 = arith.constant 0 : index
    %419 = vector.load %arg8[%c0_196, %c0_197] : memref<2x1xf32, #tpu.memory_space<vmem>>, vector<2x1xf32>
    %cst_198 = arith.constant 0.000000e+00 : f32
    %420 = vector.broadcast %cst_198 : f32 to vector<2x3xf32>
    %cst_199 = arith.constant 0.000000e+00 : f32
    %421 = vector.broadcast %cst_199 : f32 to vector<2x1xf32>
    %422 = tpu.concatenate %421, %420, %421 in 1 : vector<2x1xf32>, vector<2x3xf32>, vector<2x1xf32> -> vector<2x5xf32>
    %423 = tpu.concatenate %421, %387, %421 in 1 : vector<2x1xf32>, vector<2x3xf32>, vector<2x1xf32> -> vector<2x5xf32>
    %424 = tpu.concatenate %421, %402, %421 in 1 : vector<2x1xf32>, vector<2x3xf32>, vector<2x1xf32> -> vector<2x5xf32>
    %425 = tpu.concatenate %421, %417, %421 in 1 : vector<2x1xf32>, vector<2x3xf32>, vector<2x1xf32> -> vector<2x5xf32>
    %426 = tpu.concatenate %421, %420, %421 in 1 : vector<2x1xf32>, vector<2x3xf32>, vector<2x1xf32> -> vector<2x5xf32>
    %427 = vector.extract_strided_slice %422 {offsets = [0, 0], sizes = [2, 3], strides = [1, 1]} : vector<2x5xf32> to vector<2x3xf32>
    %428 = vector.extract_strided_slice %422 {offsets = [0, 1], sizes = [2, 3], strides = [1, 1]} : vector<2x5xf32> to vector<2x3xf32>
    %429 = vector.extract_strided_slice %422 {offsets = [0, 2], sizes = [2, 3], strides = [1, 1]} : vector<2x5xf32> to vector<2x3xf32>
    %430 = vector.extract_strided_slice %423 {offsets = [0, 0], sizes = [2, 3], strides = [1, 1]} : vector<2x5xf32> to vector<2x3xf32>
    %431 = vector.extract_strided_slice %423 {offsets = [0, 1], sizes = [2, 3], strides = [1, 1]} : vector<2x5xf32> to vector<2x3xf32>
    %432 = vector.extract_strided_slice %423 {offsets = [0, 2], sizes = [2, 3], strides = [1, 1]} : vector<2x5xf32> to vector<2x3xf32>
    %433 = vector.extract_strided_slice %424 {offsets = [0, 0], sizes = [2, 3], strides = [1, 1]} : vector<2x5xf32> to vector<2x3xf32>
    %434 = vector.extract_strided_slice %424 {offsets = [0, 1], sizes = [2, 3], strides = [1, 1]} : vector<2x5xf32> to vector<2x3xf32>
    %435 = vector.extract_strided_slice %424 {offsets = [0, 2], sizes = [2, 3], strides = [1, 1]} : vector<2x5xf32> to vector<2x3xf32>
    %436 = tpu.concatenate %427, %428, %429, %430, %431, %432, %433, %434, %435 in 0 : vector<2x3xf32>, vector<2x3xf32>, vector<2x3xf32>, vector<2x3xf32>, vector<2x3xf32>, vector<2x3xf32>, vector<2x3xf32>, vector<2x3xf32>, vector<2x3xf32> -> vector<18x3xf32>
    %cst_200 = arith.constant dense<0.000000e+00> : vector<2x3xf32>
    %437 = tpu.matmul %418, %436, %cst_200 {dimension_numbers = #tpu.dot_dimension_numbers<[1], [0], [0], [1], [0, 0, 1, 1], [], []>} : vector<2x18xf32>, vector<18x3xf32>, vector<2x3xf32> -> vector<2x3xf32>
    %438 = vector.broadcast %419 : vector<2x1xf32> to vector<2x3xf32>
    %439 = arith.addf %437, %438 : vector<2x3xf32>
    %cst_201 = arith.constant 0.000000e+00 : f32
    %440 = vector.broadcast %cst_201 : f32 to vector<2x3xf32>
    %441 = arith.maximumf %439, %440 : vector<2x3xf32>
    %442 = vector.extract_strided_slice %423 {offsets = [0, 0], sizes = [2, 3], strides = [1, 1]} : vector<2x5xf32> to vector<2x3xf32>
    %443 = vector.extract_strided_slice %423 {offsets = [0, 1], sizes = [2, 3], strides = [1, 1]} : vector<2x5xf32> to vector<2x3xf32>
    %444 = vector.extract_strided_slice %423 {offsets = [0, 2], sizes = [2, 3], strides = [1, 1]} : vector<2x5xf32> to vector<2x3xf32>
    %445 = vector.extract_strided_slice %424 {offsets = [0, 0], sizes = [2, 3], strides = [1, 1]} : vector<2x5xf32> to vector<2x3xf32>
    %446 = vector.extract_strided_slice %424 {offsets = [0, 1], sizes = [2, 3], strides = [1, 1]} : vector<2x5xf32> to vector<2x3xf32>
    %447 = vector.extract_strided_slice %424 {offsets = [0, 2], sizes = [2, 3], strides = [1, 1]} : vector<2x5xf32> to vector<2x3xf32>
    %448 = vector.extract_strided_slice %425 {offsets = [0, 0], sizes = [2, 3], strides = [1, 1]} : vector<2x5xf32> to vector<2x3xf32>
    %449 = vector.extract_strided_slice %425 {offsets = [0, 1], sizes = [2, 3], strides = [1, 1]} : vector<2x5xf32> to vector<2x3xf32>
    %450 = vector.extract_strided_slice %425 {offsets = [0, 2], sizes = [2, 3], strides = [1, 1]} : vector<2x5xf32> to vector<2x3xf32>
    %451 = tpu.concatenate %442, %443, %444, %445, %446, %447, %448, %449, %450 in 0 : vector<2x3xf32>, vector<2x3xf32>, vector<2x3xf32>, vector<2x3xf32>, vector<2x3xf32>, vector<2x3xf32>, vector<2x3xf32>, vector<2x3xf32>, vector<2x3xf32> -> vector<18x3xf32>
    %cst_202 = arith.constant dense<0.000000e+00> : vector<2x3xf32>
    %452 = tpu.matmul %418, %451, %cst_202 {dimension_numbers = #tpu.dot_dimension_numbers<[1], [0], [0], [1], [0, 0, 1, 1], [], []>} : vector<2x18xf32>, vector<18x3xf32>, vector<2x3xf32> -> vector<2x3xf32>
    %453 = vector.broadcast %419 : vector<2x1xf32> to vector<2x3xf32>
    %454 = arith.addf %452, %453 : vector<2x3xf32>
    %cst_203 = arith.constant 0.000000e+00 : f32
    %455 = vector.broadcast %cst_203 : f32 to vector<2x3xf32>
    %456 = arith.maximumf %454, %455 : vector<2x3xf32>
    %457 = vector.extract_strided_slice %424 {offsets = [0, 0], sizes = [2, 3], strides = [1, 1]} : vector<2x5xf32> to vector<2x3xf32>
    %458 = vector.extract_strided_slice %424 {offsets = [0, 1], sizes = [2, 3], strides = [1, 1]} : vector<2x5xf32> to vector<2x3xf32>
    %459 = vector.extract_strided_slice %424 {offsets = [0, 2], sizes = [2, 3], strides = [1, 1]} : vector<2x5xf32> to vector<2x3xf32>
    %460 = vector.extract_strided_slice %425 {offsets = [0, 0], sizes = [2, 3], strides = [1, 1]} : vector<2x5xf32> to vector<2x3xf32>
    %461 = vector.extract_strided_slice %425 {offsets = [0, 1], sizes = [2, 3], strides = [1, 1]} : vector<2x5xf32> to vector<2x3xf32>
    %462 = vector.extract_strided_slice %425 {offsets = [0, 2], sizes = [2, 3], strides = [1, 1]} : vector<2x5xf32> to vector<2x3xf32>
    %463 = vector.extract_strided_slice %426 {offsets = [0, 0], sizes = [2, 3], strides = [1, 1]} : vector<2x5xf32> to vector<2x3xf32>
    %464 = vector.extract_strided_slice %426 {offsets = [0, 1], sizes = [2, 3], strides = [1, 1]} : vector<2x5xf32> to vector<2x3xf32>
    %465 = vector.extract_strided_slice %426 {offsets = [0, 2], sizes = [2, 3], strides = [1, 1]} : vector<2x5xf32> to vector<2x3xf32>
    %466 = tpu.concatenate %457, %458, %459, %460, %461, %462, %463, %464, %465 in 0 : vector<2x3xf32>, vector<2x3xf32>, vector<2x3xf32>, vector<2x3xf32>, vector<2x3xf32>, vector<2x3xf32>, vector<2x3xf32>, vector<2x3xf32>, vector<2x3xf32> -> vector<18x3xf32>
    %cst_204 = arith.constant dense<0.000000e+00> : vector<2x3xf32>
    %467 = tpu.matmul %418, %466, %cst_204 {dimension_numbers = #tpu.dot_dimension_numbers<[1], [0], [0], [1], [0, 0, 1, 1], [], []>} : vector<2x18xf32>, vector<18x3xf32>, vector<2x3xf32> -> vector<2x3xf32>
    %468 = vector.broadcast %419 : vector<2x1xf32> to vector<2x3xf32>
    %469 = arith.addf %467, %468 : vector<2x3xf32>
    %cst_205 = arith.constant 0.000000e+00 : f32
    %470 = vector.broadcast %cst_205 : f32 to vector<2x3xf32>
    %471 = arith.maximumf %469, %470 : vector<2x3xf32>
    %c0_206 = arith.constant 0 : index
    %c0_207 = arith.constant 0 : index
    %472 = vector.load %arg9[%c0_206, %c0_207] : memref<2x18xf32, #tpu.memory_space<vmem>>, vector<2x18xf32>
    %c0_208 = arith.constant 0 : index
    %c0_209 = arith.constant 0 : index
    %473 = vector.load %arg10[%c0_208, %c0_209] : memref<2x1xf32, #tpu.memory_space<vmem>>, vector<2x1xf32>
    %cst_210 = arith.constant 0.000000e+00 : f32
    %474 = vector.broadcast %cst_210 : f32 to vector<2x3xf32>
    %cst_211 = arith.constant 0.000000e+00 : f32
    %475 = vector.broadcast %cst_211 : f32 to vector<2x1xf32>
    %476 = tpu.concatenate %475, %474, %475 in 1 : vector<2x1xf32>, vector<2x3xf32>, vector<2x1xf32> -> vector<2x5xf32>
    %477 = tpu.concatenate %475, %441, %475 in 1 : vector<2x1xf32>, vector<2x3xf32>, vector<2x1xf32> -> vector<2x5xf32>
    %478 = tpu.concatenate %475, %456, %475 in 1 : vector<2x1xf32>, vector<2x3xf32>, vector<2x1xf32> -> vector<2x5xf32>
    %479 = tpu.concatenate %475, %471, %475 in 1 : vector<2x1xf32>, vector<2x3xf32>, vector<2x1xf32> -> vector<2x5xf32>
    %480 = tpu.concatenate %475, %474, %475 in 1 : vector<2x1xf32>, vector<2x3xf32>, vector<2x1xf32> -> vector<2x5xf32>
    %481 = vector.extract_strided_slice %476 {offsets = [0, 0], sizes = [2, 3], strides = [1, 1]} : vector<2x5xf32> to vector<2x3xf32>
    %482 = vector.extract_strided_slice %476 {offsets = [0, 1], sizes = [2, 3], strides = [1, 1]} : vector<2x5xf32> to vector<2x3xf32>
    %483 = vector.extract_strided_slice %476 {offsets = [0, 2], sizes = [2, 3], strides = [1, 1]} : vector<2x5xf32> to vector<2x3xf32>
    %484 = vector.extract_strided_slice %477 {offsets = [0, 0], sizes = [2, 3], strides = [1, 1]} : vector<2x5xf32> to vector<2x3xf32>
    %485 = vector.extract_strided_slice %477 {offsets = [0, 1], sizes = [2, 3], strides = [1, 1]} : vector<2x5xf32> to vector<2x3xf32>
    %486 = vector.extract_strided_slice %477 {offsets = [0, 2], sizes = [2, 3], strides = [1, 1]} : vector<2x5xf32> to vector<2x3xf32>
    %487 = vector.extract_strided_slice %478 {offsets = [0, 0], sizes = [2, 3], strides = [1, 1]} : vector<2x5xf32> to vector<2x3xf32>
    %488 = vector.extract_strided_slice %478 {offsets = [0, 1], sizes = [2, 3], strides = [1, 1]} : vector<2x5xf32> to vector<2x3xf32>
    %489 = vector.extract_strided_slice %478 {offsets = [0, 2], sizes = [2, 3], strides = [1, 1]} : vector<2x5xf32> to vector<2x3xf32>
    %490 = tpu.concatenate %481, %482, %483, %484, %485, %486, %487, %488, %489 in 0 : vector<2x3xf32>, vector<2x3xf32>, vector<2x3xf32>, vector<2x3xf32>, vector<2x3xf32>, vector<2x3xf32>, vector<2x3xf32>, vector<2x3xf32>, vector<2x3xf32> -> vector<18x3xf32>
    %cst_212 = arith.constant dense<0.000000e+00> : vector<2x3xf32>
    %491 = tpu.matmul %472, %490, %cst_212 {dimension_numbers = #tpu.dot_dimension_numbers<[1], [0], [0], [1], [0, 0, 1, 1], [], []>} : vector<2x18xf32>, vector<18x3xf32>, vector<2x3xf32> -> vector<2x3xf32>
    %492 = vector.broadcast %473 : vector<2x1xf32> to vector<2x3xf32>
    %493 = arith.addf %491, %492 : vector<2x3xf32>
    %494 = vector.extract_strided_slice %477 {offsets = [0, 0], sizes = [2, 3], strides = [1, 1]} : vector<2x5xf32> to vector<2x3xf32>
    %495 = vector.extract_strided_slice %477 {offsets = [0, 1], sizes = [2, 3], strides = [1, 1]} : vector<2x5xf32> to vector<2x3xf32>
    %496 = vector.extract_strided_slice %477 {offsets = [0, 2], sizes = [2, 3], strides = [1, 1]} : vector<2x5xf32> to vector<2x3xf32>
    %497 = vector.extract_strided_slice %478 {offsets = [0, 0], sizes = [2, 3], strides = [1, 1]} : vector<2x5xf32> to vector<2x3xf32>
    %498 = vector.extract_strided_slice %478 {offsets = [0, 1], sizes = [2, 3], strides = [1, 1]} : vector<2x5xf32> to vector<2x3xf32>
    %499 = vector.extract_strided_slice %478 {offsets = [0, 2], sizes = [2, 3], strides = [1, 1]} : vector<2x5xf32> to vector<2x3xf32>
    %500 = vector.extract_strided_slice %479 {offsets = [0, 0], sizes = [2, 3], strides = [1, 1]} : vector<2x5xf32> to vector<2x3xf32>
    %501 = vector.extract_strided_slice %479 {offsets = [0, 1], sizes = [2, 3], strides = [1, 1]} : vector<2x5xf32> to vector<2x3xf32>
    %502 = vector.extract_strided_slice %479 {offsets = [0, 2], sizes = [2, 3], strides = [1, 1]} : vector<2x5xf32> to vector<2x3xf32>
    %503 = tpu.concatenate %494, %495, %496, %497, %498, %499, %500, %501, %502 in 0 : vector<2x3xf32>, vector<2x3xf32>, vector<2x3xf32>, vector<2x3xf32>, vector<2x3xf32>, vector<2x3xf32>, vector<2x3xf32>, vector<2x3xf32>, vector<2x3xf32> -> vector<18x3xf32>
    %cst_213 = arith.constant dense<0.000000e+00> : vector<2x3xf32>
    %504 = tpu.matmul %472, %503, %cst_213 {dimension_numbers = #tpu.dot_dimension_numbers<[1], [0], [0], [1], [0, 0, 1, 1], [], []>} : vector<2x18xf32>, vector<18x3xf32>, vector<2x3xf32> -> vector<2x3xf32>
    %505 = vector.broadcast %473 : vector<2x1xf32> to vector<2x3xf32>
    %506 = arith.addf %504, %505 : vector<2x3xf32>
    %507 = vector.extract_strided_slice %478 {offsets = [0, 0], sizes = [2, 3], strides = [1, 1]} : vector<2x5xf32> to vector<2x3xf32>
    %508 = vector.extract_strided_slice %478 {offsets = [0, 1], sizes = [2, 3], strides = [1, 1]} : vector<2x5xf32> to vector<2x3xf32>
    %509 = vector.extract_strided_slice %478 {offsets = [0, 2], sizes = [2, 3], strides = [1, 1]} : vector<2x5xf32> to vector<2x3xf32>
    %510 = vector.extract_strided_slice %479 {offsets = [0, 0], sizes = [2, 3], strides = [1, 1]} : vector<2x5xf32> to vector<2x3xf32>
    %511 = vector.extract_strided_slice %479 {offsets = [0, 1], sizes = [2, 3], strides = [1, 1]} : vector<2x5xf32> to vector<2x3xf32>
    %512 = vector.extract_strided_slice %479 {offsets = [0, 2], sizes = [2, 3], strides = [1, 1]} : vector<2x5xf32> to vector<2x3xf32>
    %513 = vector.extract_strided_slice %480 {offsets = [0, 0], sizes = [2, 3], strides = [1, 1]} : vector<2x5xf32> to vector<2x3xf32>
    %514 = vector.extract_strided_slice %480 {offsets = [0, 1], sizes = [2, 3], strides = [1, 1]} : vector<2x5xf32> to vector<2x3xf32>
    %515 = vector.extract_strided_slice %480 {offsets = [0, 2], sizes = [2, 3], strides = [1, 1]} : vector<2x5xf32> to vector<2x3xf32>
    %516 = tpu.concatenate %507, %508, %509, %510, %511, %512, %513, %514, %515 in 0 : vector<2x3xf32>, vector<2x3xf32>, vector<2x3xf32>, vector<2x3xf32>, vector<2x3xf32>, vector<2x3xf32>, vector<2x3xf32>, vector<2x3xf32>, vector<2x3xf32> -> vector<18x3xf32>
    %cst_214 = arith.constant dense<0.000000e+00> : vector<2x3xf32>
    %517 = tpu.matmul %472, %516, %cst_214 {dimension_numbers = #tpu.dot_dimension_numbers<[1], [0], [0], [1], [0, 0, 1, 1], [], []>} : vector<2x18xf32>, vector<18x3xf32>, vector<2x3xf32> -> vector<2x3xf32>
    %518 = vector.broadcast %473 : vector<2x1xf32> to vector<2x3xf32>
    %519 = arith.addf %517, %518 : vector<2x3xf32>
    %c0_215 = arith.constant 0 : index
    %c0_216 = arith.constant 0 : index
    %520 = vector.load %arg11[%c0_215, %c0_216] : memref<3x32xf32, #tpu.memory_space<vmem>>, vector<3x32xf32>
    %c0_217 = arith.constant 0 : index
    %c0_218 = arith.constant 0 : index
    %521 = vector.load %arg12[%c0_217, %c0_218] : memref<32x3xf32, #tpu.memory_space<vmem>>, vector<32x3xf32>
    %cst_219 = arith.constant dense<0.000000e+00> : vector<2x32xf32>
    %522 = tpu.matmul %493, %520, %cst_219 {dimension_numbers = #tpu.dot_dimension_numbers<[1], [0], [0], [1], [0, 0, 1, 1], [], []>} : vector<2x3xf32>, vector<3x32xf32>, vector<2x32xf32> -> vector<2x32xf32>
    %cst_220 = arith.constant dense<0.000000e+00> : vector<2x32xf32>
    %523 = tpu.matmul %506, %520, %cst_220 {dimension_numbers = #tpu.dot_dimension_numbers<[1], [0], [0], [1], [0, 0, 1, 1], [], []>} : vector<2x3xf32>, vector<3x32xf32>, vector<2x32xf32> -> vector<2x32xf32>
    %cst_221 = arith.constant dense<0.000000e+00> : vector<2x32xf32>
    %524 = tpu.matmul %519, %520, %cst_221 {dimension_numbers = #tpu.dot_dimension_numbers<[1], [0], [0], [1], [0, 0, 1, 1], [], []>} : vector<2x3xf32>, vector<3x32xf32>, vector<2x32xf32> -> vector<2x32xf32>
    %525 = vector.extract_strided_slice %522 {offsets = [0, 0], sizes = [1, 32], strides = [1, 1]} : vector<2x32xf32> to vector<1x32xf32>
    %526 = vector.extract_strided_slice %523 {offsets = [0, 0], sizes = [1, 32], strides = [1, 1]} : vector<2x32xf32> to vector<1x32xf32>
    %527 = vector.extract_strided_slice %524 {offsets = [0, 0], sizes = [1, 32], strides = [1, 1]} : vector<2x32xf32> to vector<1x32xf32>
    %528 = tpu.concatenate %525, %526, %527 in 0 : vector<1x32xf32>, vector<1x32xf32>, vector<1x32xf32> -> vector<3x32xf32>
    %cst_222 = arith.constant dense<0.000000e+00> : vector<32x32xf32>
    %529 = tpu.matmul %521, %528, %cst_222 {dimension_numbers = #tpu.dot_dimension_numbers<[1], [0], [0], [1], [0, 0, 1, 1], [], []>} : vector<32x3xf32>, vector<3x32xf32>, vector<32x32xf32> -> vector<32x32xf32>
    %c0_223 = arith.constant 0 : index
    %c0_224 = arith.constant 0 : index
    %c0_225 = arith.constant 0 : index
    %c0_226 = arith.constant 0 : index
    %530 = vector.load %arg13[%c0_223, %c0_224, %c0_225, %c0_226] : memref<1x2x32x32xf32, #tpu.memory_space<vmem>>, vector<1x1x32x32xf32>
    %531 = vector.shape_cast %530 : vector<1x1x32x32xf32> to vector<32x32xf32>
    %532 = vector.shape_cast %529 : vector<32x32xf32> to vector<1x1x32x32xf32>
    tpu.vector_store %arg13[%c0_223, %c0_224, %c0_225, %c0_226], %532 {strides = array<i32>} : memref<1x2x32x32xf32, #tpu.memory_space<vmem>>, vector<1x1x32x32xf32>,
    %533 = vector.extract_strided_slice %522 {offsets = [1, 0], sizes = [1, 32], strides = [1, 1]} : vector<2x32xf32> to vector<1x32xf32>
    %534 = vector.extract_strided_slice %523 {offsets = [1, 0], sizes = [1, 32], strides = [1, 1]} : vector<2x32xf32> to vector<1x32xf32>
    %535 = vector.extract_strided_slice %524 {offsets = [1, 0], sizes = [1, 32], strides = [1, 1]} : vector<2x32xf32> to vector<1x32xf32>
    %536 = tpu.concatenate %533, %534, %535 in 0 : vector<1x32xf32>, vector<1x32xf32>, vector<1x32xf32> -> vector<3x32xf32>
    %cst_227 = arith.constant dense<0.000000e+00> : vector<32x32xf32>
    %537 = tpu.matmul %521, %536, %cst_227 {dimension_numbers = #tpu.dot_dimension_numbers<[1], [0], [0], [1], [0, 0, 1, 1], [], []>} : vector<32x3xf32>, vector<3x32xf32>, vector<32x32xf32> -> vector<32x32xf32>
    %c0_228 = arith.constant 0 : index
    %c1_229 = arith.constant 1 : index
    %c0_230 = arith.constant 0 : index
    %c0_231 = arith.constant 0 : index
    %538 = vector.load %arg13[%c0_228, %c1_229, %c0_230, %c0_231] : memref<1x2x32x32xf32, #tpu.memory_space<vmem>>, vector<1x1x32x32xf32>
    %539 = vector.shape_cast %538 : vector<1x1x32x32xf32> to vector<32x32xf32>
    %540 = vector.shape_cast %537 : vector<32x32xf32> to vector<1x1x32x32xf32>
    tpu.vector_store %arg13[%c0_228, %c1_229, %c0_230, %c0_231], %540 {strides = array<i32>} : memref<1x2x32x32xf32, #tpu.memory_space<vmem>>, vector<1x1x32x32xf32>,
    return
  }
  func.func @transform_0(%arg0: i32) -> (i32, i32, i32, i32) {
    %c0_i32 = arith.constant 0 : i32
    %c0_i32_0 = arith.constant 0 : i32
    %c0_i32_1 = arith.constant 0 : i32
    %c0_i32_2 = arith.constant 0 : i32
    return %arg0, %c0_i32, %c0_i32_0, %c0_i32_1 : i32, i32, i32, i32
  }
  func.func @transform_1(%arg0: i32) -> (i32, i32) {
    %c0_i32 = arith.constant 0 : i32
    %c0_i32_0 = arith.constant 0 : i32
    %c0_i32_1 = arith.constant 0 : i32
    return %c0_i32, %c0_i32_0 : i32, i32
  }
  func.func @transform_2(%arg0: i32) -> (i32, i32, i32) {
    %c0_i32 = arith.constant 0 : i32
    %c0_i32_0 = arith.constant 0 : i32
    %c0_i32_1 = arith.constant 0 : i32
    %c0_i32_2 = arith.constant 0 : i32
    return %c0_i32, %c0_i32_0, %c0_i32_1 : i32, i32, i32
  }
  func.func @transform_3(%arg0: i32) -> (i32, i32) {
    %c0_i32 = arith.constant 0 : i32
    %c0_i32_0 = arith.constant 0 : i32
    %c0_i32_1 = arith.constant 0 : i32
    return %c0_i32, %c0_i32_0 : i32, i32
  }
  func.func @transform_4(%arg0: i32) -> (i32, i32) {
    %c0_i32 = arith.constant 0 : i32
    %c0_i32_0 = arith.constant 0 : i32
    %c0_i32_1 = arith.constant 0 : i32
    return %c0_i32, %c0_i32_0 : i32, i32
  }
  func.func @transform_5(%arg0: i32) -> (i32, i32) {
    %c0_i32 = arith.constant 0 : i32
    %c0_i32_0 = arith.constant 0 : i32
    %c0_i32_1 = arith.constant 0 : i32
    return %c0_i32, %c0_i32_0 : i32, i32
  }
  func.func @transform_6(%arg0: i32) -> (i32, i32) {
    %c0_i32 = arith.constant 0 : i32
    %c0_i32_0 = arith.constant 0 : i32
    %c0_i32_1 = arith.constant 0 : i32
    return %c0_i32, %c0_i32_0 : i32, i32
  }
  func.func @transform_7(%arg0: i32) -> (i32, i32) {
    %c0_i32 = arith.constant 0 : i32
    %c0_i32_0 = arith.constant 0 : i32
    %c0_i32_1 = arith.constant 0 : i32
    return %c0_i32, %c0_i32_0 : i32, i32
  }
  func.func @transform_8(%arg0: i32) -> (i32, i32) {
    %c0_i32 = arith.constant 0 : i32
    %c0_i32_0 = arith.constant 0 : i32
    %c0_i32_1 = arith.constant 0 : i32
    return %c0_i32, %c0_i32_0 : i32, i32
  }
  func.func @transform_9(%arg0: i32) -> (i32, i32) {
    %c0_i32 = arith.constant 0 : i32
    %c0_i32_0 = arith.constant 0 : i32
    %c0_i32_1 = arith.constant 0 : i32
    return %c0_i32, %c0_i32_0 : i32, i32
  }
  func.func @transform_10(%arg0: i32) -> (i32, i32) {
    %c0_i32 = arith.constant 0 : i32
    %c0_i32_0 = arith.constant 0 : i32
    %c0_i32_1 = arith.constant 0 : i32
    return %c0_i32, %c0_i32_0 : i32, i32
  }
  func.func @transform_11(%arg0: i32) -> (i32, i32) {
    %c0_i32 = arith.constant 0 : i32
    %c0_i32_0 = arith.constant 0 : i32
    %c0_i32_1 = arith.constant 0 : i32
    return %c0_i32, %c0_i32_0 : i32, i32
  }
  func.func @transform_12(%arg0: i32) -> (i32, i32, i32, i32) {
    %c0_i32 = arith.constant 0 : i32
    %c0_i32_0 = arith.constant 0 : i32
    %c0_i32_1 = arith.constant 0 : i32
    %c0_i32_2 = arith.constant 0 : i32
    return %arg0, %c0_i32, %c0_i32_0, %c0_i32_1 : i32, i32, i32, i32
  }
}

module attributes {stable_mosaic.version = 11 : i64} {
  func.func @_tail_kernel(%arg0: i32, %arg1: i32, %arg2: memref<1x8x1024xf32, #tpu.memory_space<vmem>>, %arg3: memref<1x2x1024xf32, #tpu.memory_space<vmem>>, %arg4: memref<2x8xf32, #tpu.memory_space<vmem>>, %arg5: memref<2x1xf32, #tpu.memory_space<vmem>>, %arg6: memref<8x2xf32, #tpu.memory_space<vmem>>, %arg7: memref<8x1xf32, #tpu.memory_space<vmem>>, %arg8: memref<1x8x1024xf32, #tpu.memory_space<vmem>>) attributes {dimension_semantics = [#tpu.dimension_semantics<parallel>, #tpu.dimension_semantics<parallel>], iteration_bounds = array<i64: 2, 1>, scalar_prefetch = 0 : i64, scratch_operands = 0 : i64, tpu.core_type = #tpu.core_type<tc>, window_params = [{transform_indices = @transform_0, window_bounds = array<i64: 1, 8, 1024>}, {transform_indices = @transform_1, window_bounds = array<i64: 1, 2, 1024>}, {pipeline_mode = #tpu.pipeline_mode<synchronous>, transform_indices = @transform_2, window_bounds = array<i64: 2, 8>}, {pipeline_mode = #tpu.pipeline_mode<synchronous>, transform_indices = @transform_3, window_bounds = array<i64: 2, 1>}, {pipeline_mode = #tpu.pipeline_mode<synchronous>, transform_indices = @transform_4, window_bounds = array<i64: 8, 2>}, {pipeline_mode = #tpu.pipeline_mode<synchronous>, transform_indices = @transform_5, window_bounds = array<i64: 8, 1>}, {transform_indices = @transform_6, window_bounds = array<i64: 1, 8, 1024>}]} {
    %c0 = arith.constant 0 : index
    %c0_0 = arith.constant 0 : index
    %c0_1 = arith.constant 0 : index
    %0 = vector.load %arg2[%c0, %c0_0, %c0_1] : memref<1x8x1024xf32, #tpu.memory_space<vmem>>, vector<1x8x1024xf32>
    %1 = vector.shape_cast %0 : vector<1x8x1024xf32> to vector<8x1024xf32>
    %c0_2 = arith.constant 0 : index
    %c0_3 = arith.constant 0 : index
    %2 = vector.load %arg4[%c0_2, %c0_3] : memref<2x8xf32, #tpu.memory_space<vmem>>, vector<2x8xf32>
    %cst = arith.constant dense<0.000000e+00> : vector<2x1024xf32>
    %3 = tpu.matmul %2, %1, %cst {dimension_numbers = #tpu.dot_dimension_numbers<[1], [0], [0], [1], [0, 0, 1, 1], [], []>} : vector<2x8xf32>, vector<8x1024xf32>, vector<2x1024xf32> -> vector<2x1024xf32>
    %c0_4 = arith.constant 0 : index
    %c0_5 = arith.constant 0 : index
    %4 = vector.load %arg5[%c0_4, %c0_5] : memref<2x1xf32, #tpu.memory_space<vmem>>, vector<2x1xf32>
    %5 = vector.broadcast %4 : vector<2x1xf32> to vector<2x1024xf32>
    %6 = arith.addf %3, %5 : vector<2x1024xf32>
    %c0_6 = arith.constant 0 : index
    %c0_7 = arith.constant 0 : index
    %c0_8 = arith.constant 0 : index
    %7 = vector.load %arg3[%c0_6, %c0_7, %c0_8] : memref<1x2x1024xf32, #tpu.memory_space<vmem>>, vector<1x2x1024xf32>
    %8 = vector.shape_cast %7 : vector<1x2x1024xf32> to vector<2x1024xf32>
    %9 = arith.addf %8, %6 : vector<2x1024xf32>
    %c0_9 = arith.constant 0 : index
    %c0_10 = arith.constant 0 : index
    %10 = vector.load %arg6[%c0_9, %c0_10] : memref<8x2xf32, #tpu.memory_space<vmem>>, vector<8x2xf32>
    %cst_11 = arith.constant dense<0.000000e+00> : vector<8x1024xf32>
    %11 = tpu.matmul %10, %9, %cst_11 {dimension_numbers = #tpu.dot_dimension_numbers<[1], [0], [0], [1], [0, 0, 1, 1], [], []>} : vector<8x2xf32>, vector<2x1024xf32>, vector<8x1024xf32> -> vector<8x1024xf32>
    %c0_12 = arith.constant 0 : index
    %c0_13 = arith.constant 0 : index
    %12 = vector.load %arg7[%c0_12, %c0_13] : memref<8x1xf32, #tpu.memory_space<vmem>>, vector<8x1xf32>
    %13 = vector.broadcast %12 : vector<8x1xf32> to vector<8x1024xf32>
    %14 = arith.addf %11, %13 : vector<8x1024xf32>
    %15 = arith.negf %14 : vector<8x1024xf32>
    %16 = math.exp %15 : vector<8x1024xf32>
    %cst_14 = arith.constant 1.000000e+00 : f32
    %17 = vector.broadcast %cst_14 : f32 to vector<8x1024xf32>
    %18 = arith.addf %17, %16 : vector<8x1024xf32>
    %19 = arith.divf %17, %18 : vector<8x1024xf32>
    %20 = arith.mulf %1, %19 : vector<8x1024xf32>
    %c0_15 = arith.constant 0 : index
    %c0_16 = arith.constant 0 : index
    %c0_17 = arith.constant 0 : index
    %21 = vector.load %arg8[%c0_15, %c0_16, %c0_17] : memref<1x8x1024xf32, #tpu.memory_space<vmem>>, vector<1x8x1024xf32>
    %22 = vector.shape_cast %21 : vector<1x8x1024xf32> to vector<8x1024xf32>
    %23 = vector.shape_cast %20 : vector<8x1024xf32> to vector<1x8x1024xf32>
    tpu.vector_store %arg8[%c0_15, %c0_16, %c0_17], %23 {strides = array<i32>} : memref<1x8x1024xf32, #tpu.memory_space<vmem>>, vector<1x8x1024xf32>,
    return
  }
  func.func @transform_0(%arg0: i32, %arg1: i32) -> (i32, i32, i32) {
    %c0_i32 = arith.constant 0 : i32
    %c0_i32_0 = arith.constant 0 : i32
    return %arg0, %c0_i32, %arg1 : i32, i32, i32
  }
  func.func @transform_1(%arg0: i32, %arg1: i32) -> (i32, i32, i32) {
    %c0_i32 = arith.constant 0 : i32
    %c0_i32_0 = arith.constant 0 : i32
    return %arg0, %c0_i32, %arg1 : i32, i32, i32
  }
  func.func @transform_2(%arg0: i32, %arg1: i32) -> (i32, i32) {
    %c0_i32 = arith.constant 0 : i32
    %c0_i32_0 = arith.constant 0 : i32
    %c0_i32_1 = arith.constant 0 : i32
    return %c0_i32, %c0_i32_0 : i32, i32
  }
  func.func @transform_3(%arg0: i32, %arg1: i32) -> (i32, i32) {
    %c0_i32 = arith.constant 0 : i32
    %c0_i32_0 = arith.constant 0 : i32
    %c0_i32_1 = arith.constant 0 : i32
    return %c0_i32, %c0_i32_0 : i32, i32
  }
  func.func @transform_4(%arg0: i32, %arg1: i32) -> (i32, i32) {
    %c0_i32 = arith.constant 0 : i32
    %c0_i32_0 = arith.constant 0 : i32
    %c0_i32_1 = arith.constant 0 : i32
    return %c0_i32, %c0_i32_0 : i32, i32
  }
  func.func @transform_5(%arg0: i32, %arg1: i32) -> (i32, i32) {
    %c0_i32 = arith.constant 0 : i32
    %c0_i32_0 = arith.constant 0 : i32
    %c0_i32_1 = arith.constant 0 : i32
    return %c0_i32, %c0_i32_0 : i32, i32
  }
  func.func @transform_6(%arg0: i32, %arg1: i32) -> (i32, i32, i32) {
    %c0_i32 = arith.constant 0 : i32
    %c0_i32_0 = arith.constant 0 : i32
    return %arg0, %c0_i32, %arg1 : i32, i32, i32
  }
}

</mosaic_0001>

<bundles_post_ra>
// kernel: esa_forward.3
= control target key start
LH: loop header
LB: loop body
LE: loop exit
PB: predicated region body
PF: predicated region fallthrough
CT: control target
= control target key end

     0   :  { %s1357_s21 = smov 0   ;;  %s1359_s22 = smov 0   ;;  %s1469_s0 = inlined_call_operand.vmem [shape: f32[2,8,1024], index: 0, kind: input, shape index: {}]   ;;  %s1470_s1 = inlined_call_operand.vmem [shape: f32[2,2,1024], index: 1, kind: input, shape index: {}]   ;;  %s1471_s2 = inlined_call_operand.vmem [shape: f32[2,8], index: 2, kind: input, shape index: {}]   ;;  %s1472_s3 = inlined_call_operand.vmem [shape: f32[2,1], index: 3, kind: input, shape index: {}]   ;;  %s1473_s4 = inlined_call_operand.vmem [shape: f32[8,2], index: 4, kind: input, shape index: {}]   ;;  %s1474_s5 = inlined_call_operand.vmem [shape: f32[8,1], index: 5, kind: input, shape index: {}]   ;;  %s1475_s6 = inlined_call_operand.vmem [shape: f32[2,8,1024], index: 6, kind: output, shape index: {}]  }
   0x1   :  { %s1361_s23 = smov 0  }
   0x2 LB: > { %s28_s24 = sadd.s32 1, %s1313_s22  ;;  %p1199_p0 = scmp.ge.s32.totalorder %s1317_s23, 1  ;;  %s1317_s23 = sphi %s1361_s23, %s16_s23   ;;  %s1313_s22 = sphi %s1359_s22, %s1477_s22   ;;  %s1309_s21 = sphi %s1357_s21, %s1476_s21  }
   0x3   : > { %p30_p1 = scmp.ge.s32.totalorder %s28_s24, 2  ;;  %p250_p2 = scmp.lt.s32.totalorder %s1317_s23, 3 }
   0x5   : > { %s1479_s24 = smov (%p30_p1, %s28_s24), 0  ;;  %p251_p3 = pnand %p1199_p0, %p250_p2 }
   0x6   : > { %p298_p4 = scmp.lt.s32.totalorder (!%p251_p3), %s1309_s21, 1  ;;  %v1319_v0 = vmov (!%p251_p3), 0.0   ;;  %v336_v1 = vld [vmem:[%s1472_s3] sm:$0x3] (!%p251_p3)  ;;  %v1320_v2 = vmov (!%p251_p3), 0   ;;  %vm342_vm0 = vcmask (!%p251_p3), 64512   ;;  %v645_v15 = vlaneseq (!%p251_p3) }
   0x7   : > { %254 = sbr.rel (%p251_p3) target bundleno = 499 (0x1f3), region = 44  ;;  %410 = vmatprep.mubr.f32.mxu0 (!%p251_p3), %v1319_v0  ;;  %481 = vmatprep.mubr.f32.mxu1 (!%p251_p3), %v1319_v0  ;;  %v335_v3 = vld [vmem:[%s1471_s2] sm:$0x3] (!%p251_p3)  ;;  %v1321_v13 = vmov (!%p251_p3), 1983009808   ;;  %vm725_vm1 = vcmask (!%p251_p3), 1041408  }
   0x8   : > { %1262 = vset.pattern.permute.xlu0 (!%p251_p3), %v1320_v2  ;;  %v679_v12 = vld [vmem:[%s1474_s5] sm:$0xff] (!%p251_p3)  ;;  %v643_v14 = vunpack.c.l.s4 (!%p251_p3), %v1321_v13  ;;  %v646_v17 = vshrl.u32 (!%p251_p3), %v645_v15, 7  ;;  %vm721_vm2 = vcmask (!%p251_p3), 15360  }
   0x9   : > { %339 = vperm.xlu0 (!%p251_p3), %1262, %v336_v1   ;;  %v678_v54 = vld [vmem:[%s1473_s4] sm:$0xff] (!%p251_p3) }
   0xa   : > { %v644_v16 = vunpack.c.0.s8 (!%p251_p3), %v643_v14 }
   0xc   : > { %v647_v26 = vsub.s32 (!%p251_p3), %v644_v16, %v646_v17 }
   0xd   : > { %682 = vperm.xlu0 (!%p251_p3), %1262, %v679_v12  }
   0xe   : > { %s1481_s21 = smov (!%p298_p4, %s1309_s21), 1 }
   0xf   : > { %s1232_s27 = sshll.u32 %s1481_s21, 6  ;;  %s1233_s11 = sshll.u32 %s1481_s21, 4 }
  0x10   : > { %s305_s30 = scalar_lea.vmem %s1469_s0, %s1232_s27  ;;  %s315_s14 = scalar_lea.vmem %s1470_s1, %s1233_s11 }
  0x11   : > { %v1391_v4 = vld [vmem:[%s305_s30 + $0x8] sm:$0xff]  ;;  %v1393_v5 = vld [vmem:[%s305_s30 + $0x18] sm:$0xff]  ;;  %v1395_v6 = vld [vmem:[%s305_s30] sm:$0xff]  ;;  %s325_s19 = scalar_lea.vmem %s1475_s6, %s1232_s27 }
  0x12   : > { %346 = vmatprep.subr.mxu0 %v1391_v4  ;;  %417 = vmatprep.subr.mxu1 %v1393_v5  ;;  %v1399_v7 = vld [vmem:[%s305_s30 + $0x10] sm:$0xff]  ;;  %v1401_v8 = vld [vmem:[%s305_s30 + $0x28] sm:$0xff]  ;;  %v1403_v9 = vld [vmem:[%s305_s30 + $0x38] sm:$0xff] }
  0x13   : > { %347 = vmatpush1.msra.mxu0 %v1395_v6  ;;  %418 = vmatpush1.msra.mxu1 %v1399_v7  ;;  %v1407_v10 = vld [vmem:[%s305_s30 + $0x20] sm:$0xff]  ;;  %v1411_v11 = vld [vmem:[%s305_s30 + $0x30] sm:$0xff]  ;;  %v631_v47 = vld [vmem:[%s315_s14 + $0x8] sm:$0xff] }
  0x14   : > { %1206 = vmatmul.mubr.msk.f32.vlgmr.msra.gmra.mrb[0].mxu0 %vm342_vm0, %v335_v3  ;;  %1207 = vmatmul.mubr.msk.f32.vlgmr.msra.gmra.mrb[0].mxu1 %vm342_vm0, %v335_v3  ;;  %v630_v40 = vld [vmem:[%s315_s14] sm:$0xff] }
  0x15   : > { %488 = vmatprep.subr.mxu0 %v1401_v8  ;;  %559 = vmatprep.subr.mxu1 %v1403_v9 }
  0x16   : > { %489 = vmatpush1.msra.mxu0 %v1407_v10  ;;  %552 = vmatprep.mubr.f32.mxu0 %v1319_v0 }
  0x17   : > { %560 = vmatpush1.msra.mxu1 %v1411_v11  ;;  %623 = vmatprep.mubr.f32.mxu1 %v1319_v0 }
  0x18   : > { %1208 = vmatmul.mubr.msk.f32.vlgmr.msra.gmra.mrb[2].mxu0 %vm342_vm0, %v335_v3  ;;  %1209 = vmatmul.mubr.msk.f32.vlgmr.msra.gmra.mrb[2].mxu1 %vm342_vm0, %v335_v3 }
  0x19   : > { %806 = vmatprep.mubr.f32.mxu0 %v1319_v0  ;;  %877 = vmatprep.mubr.f32.mxu1 %v1319_v0 }
  0x88   : > { %v340_v18 = vpop.permute.xlu0 %339 }
  0x8c   : > { %v683_v61 = vpop.permute.xlu0 %682 }
  0xe7   : > { %v412_v19 = vpop.f32.mrb[0].mxu0  ;;  %v483_v20 = vpop.f32.mrb[0].mxu1 }
  0xe8   : > { %v413_v21 = vadd.f32 %v412_v19, %v340_v18  ;;  %v484_v22 = vadd.f32 %v483_v20, %v340_v18  ;;  %v414_v23 = vpop.f32.mrb[1].mxu0  ;;  %v485_v24 = vpop.f32.mrb[1].mxu1 }
  0xe9   : > { %v415_v25 = vadd.f32 %v414_v23, %v340_v18  ;;  %v486_v27 = vadd.f32 %v485_v24, %v340_v18 }
  0xeb   : > { %v640_v28 = vcombine.low %v413_v21, %v415_v25  ;;  %v641_v29 = vcombine.low %v484_v22, %v486_v27  ;;  %v554_v30 = vpop.f32.mrb[2].mxu0  ;;  %v625_v31 = vpop.f32.mrb[2].mxu1 }
  0xec   : > { %v555_v32 = vadd.f32 %v554_v30, %v340_v18  ;;  %v626_v33 = vadd.f32 %v625_v31, %v340_v18  ;;  %v556_v34 = vpop.f32.mrb[3].mxu0  ;;  %v627_v35 = vpop.f32.mrb[3].mxu1 }
  0xed   : > { %v648_v36 = vrot.slane %v640_v28, %v647_v26  ;;  %v655_v37 = vrot.slane %v641_v29, %v647_v26  ;;  %v557_v38 = vadd.f32 %v556_v34, %v340_v18  ;;  %v628_v39 = vadd.f32 %v627_v35, %v340_v18 }
  0xef   : > { %v656_v41 = vcombine.low %v648_v36, %v655_v37  ;;  %v657_v42 = vcombine.low %v555_v32, %v557_v38  ;;  %v658_v43 = vcombine.low %v626_v33, %v628_v39 }
  0xf1   : > { %v676_v44 = vadd.f32 %v656_v41, %v630_v40  ;;  %v665_v45 = vrot.slane %v657_v42, %v647_v26  ;;  %v672_v46 = vrot.slane %v658_v43, %v647_v26 }
  0xf3   : > { %v687_v48 = vcombine.high %v676_v44, %v676_v44  ;;  %v673_v49 = vcombine.low %v665_v45, %v672_v46  ;;  %v694_v50 = vrot.slane %v676_v44, %v647_v26 }
  0xf5   : > { %v677_v51 = vadd.f32 %v673_v49, %v631_v47  ;;  %v702_v52 = vcombine.high %v694_v50, %v694_v50  ;;  %v701_v53 = vrot.slane %v687_v48, %v647_v26 }
  0xf7   : > { %v704_v55 = vcombine.high %v677_v51, %v677_v51  ;;  %1210 = vmatprep.subr.msk.mxu0 %vm725_vm1, %v702_v52  ;;  %v703_v56 = vcombine.high %v701_v53, %v701_v53  ;;  %v711_v57 = vrot.slane %v677_v51, %v647_v26 }
  0xf8   : > { %1211 = vmatpush1.msk.msra.mxu0 %vm725_vm1, %v694_v50 }
  0xf9   : > { %1212 = vmatmul.mubr.msk.f32.vlgmr.msra.gmra.mrb[4].mxu0 %vm721_vm2, %v678_v54  ;;  %1213 = vmatprep.subr.msk.mxu1 %vm725_vm1, %v703_v56  ;;  %v719_v58 = vcombine.high %v711_v57, %v711_v57  ;;  %v718_v59 = vrot.slane %v704_v55, %v647_v26 }
  0xfa   : > { %1214 = vmatpush1.msk.msra.mxu1 %vm725_vm1, %v701_v53  ;;  %948 = vmatprep.mubr.f32.mxu0 %v1319_v0 }
  0xfb   : > { %1215 = vmatmul.mubr.msk.f32.vlgmr.msra.gmra.mrb[4].mxu1 %vm721_vm2, %v678_v54  ;;  %1216 = vmatprep.subr.msk.mxu0 %vm725_vm1, %v719_v58  ;;  %v720_v60 = vcombine.high %v718_v59, %v718_v59 }
  0xfc   : > { %1217 = vmatpush1.msk.msra.mxu0 %vm725_vm1, %v711_v57  ;;  %1019 = vmatprep.mubr.f32.mxu1 %v1319_v0 }
  0xfd   : > { %1218 = vmatmul.mubr.msk.f32.vlgmr.msra.gmra.mrb[6].mxu0 %vm721_vm2, %v678_v54  ;;  %1219 = vmatprep.subr.msk.mxu1 %vm725_vm1, %v720_v60 }
  0xfe   : > { %1220 = vmatpush1.msk.msra.mxu1 %vm725_vm1, %v718_v59 }
  0xff   : > { %1221 = vmatmul.mubr.msk.f32.vlgmr.msra.gmra.mrb[6].mxu1 %vm721_vm2, %v678_v54 }
 0x1cc   : > { %v808_v62 = vpop.f32.mrb[4].mxu0 }
 0x1cd   : > { %v809_v63 = vadd.f32 %v808_v62, %v683_v61  ;;  %v810_v1 = vpop.f32.mrb[5].mxu0 }
 0x1ce   : > { %v811_v2 = vadd.f32 %v810_v1, %v683_v61  ;;  %v879_v3 = vpop.f32.mrb[4].mxu1 }
 0x1cf   : > { %v1222_v12 = vmul.f32 -1.442695, %v809_v63  ;;  %v880_v13 = vadd.f32 %v879_v3, %v683_v61  ;;  %v881_v14 = vpop.f32.mrb[5].mxu1 }
 0x1d0   : > { %v1223_v15 = vmul.f32 -1.442695, %v811_v2  ;;  %v882_v16 = vadd.f32 %v881_v14, %v683_v61  ;;  %v950_v0 = vpop.f32.mrb[6].mxu0 }
 0x1d1   : > { %1263 = vpow2.f32 %v1222_v12  ;;  %v1224_v17 = vmul.f32 -1.442695, %v880_v13  ;;  %v951_v18 = vadd.f32 %v950_v0, %v683_v61  ;;  %v952_v19 = vpop.f32.mrb[7].mxu0 }
 0x1d2   : > { %1265 = vpow2.f32 %v1223_v15  ;;  %v1225_v20 = vmul.f32 -1.442695, %v882_v16  ;;  %v953_v21 = vadd.f32 %v952_v19, %v683_v61  ;;  %v1021_v22 = vpop.f32.mrb[6].mxu1 }
 0x1d3   : > { %1267 = vpow2.f32 %v1224_v17  ;;  %v1226_v23 = vmul.f32 -1.442695, %v951_v18  ;;  %v1022_v24 = vadd.f32 %v1021_v22, %v683_v61  ;;  %v1023_v25 = vpop.f32.mrb[7].mxu1 }
 0x1d4   : > { %1269 = vpow2.f32 %v1225_v20  ;;  %v1227_v26 = vmul.f32 -1.442695, %v953_v21  ;;  %v1024_v27 = vadd.f32 %v1023_v25, %v683_v61 }
 0x1d5   : > { %1271 = vpow2.f32 %v1226_v23  ;;  %v1228_v28 = vmul.f32 -1.442695, %v1022_v24 }
 0x1d6   : > { %1273 = vpow2.f32 %v1227_v26  ;;  %v1229_v29 = vmul.f32 -1.442695, %v1024_v27 }
 0x1d7   : > { %1275 = vpow2.f32 %v1228_v28 }
 0x1d8   : > { %1277 = vpow2.f32 %v1229_v29 }
 0x1db   : > { %v1264_v30 = vpop.eup %1263 }
 0x1dc   : > { %v1266_v31 = vpop.eup %1265  ;;  %v1050_v32 = vadd.f32 1.0, %v1264_v30 }
 0x1dd   : > { %v1268_v33 = vpop.eup %1267  ;;  %v1051_v34 = vadd.f32 1.0, %v1266_v31 }
 0x1de   : > { %v1270_v35 = vpop.eup %1269  ;;  %1279 = vrcp.f32 %v1050_v32  ;;  %v1052_v36 = vadd.f32 1.0, %v1268_v33 }
 0x1df   : > { %v1272_v37 = vpop.eup %1271  ;;  %1281 = vrcp.f32 %v1051_v34  ;;  %v1053_v38 = vadd.f32 1.0, %v1270_v35 }
 0x1e0   : > { %v1274_v39 = vpop.eup %1273  ;;  %1283 = vrcp.f32 %v1052_v36  ;;  %v1054_v40 = vadd.f32 1.0, %v1272_v37 }
 0x1e1   : > { %v1276_v41 = vpop.eup %1275  ;;  %1285 = vrcp.f32 %v1053_v38  ;;  %v1055_v42 = vadd.f32 1.0, %v1274_v39 }
 0x1e2   : > { %v1278_v43 = vpop.eup %1277  ;;  %1287 = vrcp.f32 %v1054_v40  ;;  %v1056_v44 = vadd.f32 1.0, %v1276_v41 }
 0x1e3   : > { %1289 = vrcp.f32 %v1055_v42  ;;  %v1057_v45 = vadd.f32 1.0, %v1278_v43 }
 0x1e4   : > { %1291 = vrcp.f32 %v1056_v44 }
 0x1e5   : > { %1293 = vrcp.f32 %v1057_v45 }
 0x1e8   : > { %v1280_v46 = vpop.eup %1279 }
 0x1e9   : > { %v1282_v47 = vpop.eup %1281  ;;  %v1074_v48 = vmul.f32 %v1280_v46, %v1395_v6 }
 0x1ea   : > { %v1284_v49 = vpop.eup %1283  ;;  %v1075_v50 = vmul.f32 %v1282_v47, %v1391_v4 }
 0x1eb   : > { %v1286_v51 = vpop.eup %1285  ;;  %1082 = vst [vmem:[%s325_s19] sm:$0xff] %v1074_v48  ;;  %v1076_v52 = vmul.f32 %v1284_v49, %v1399_v7 }
 0x1ec   : > { %v1288_v53 = vpop.eup %1287  ;;  %1083 = vst [vmem:[%s325_s19 + $0x8] sm:$0xff] %v1075_v50  ;;  %v1077_v54 = vmul.f32 %v1286_v51, %v1393_v5 }
 0x1ed   : > { %v1290_v55 = vpop.eup %1289  ;;  %1084 = vst [vmem:[%s325_s19 + $0x10] sm:$0xff] %v1076_v52  ;;  %v1078_v56 = vmul.f32 %v1288_v53, %v1407_v10 }
 0x1ee   : > { %v1292_v57 = vpop.eup %1291  ;;  %1085 = vst [vmem:[%s325_s19 + $0x18] sm:$0xff] %v1077_v54  ;;  %v1079_v58 = vmul.f32 %v1290_v55, %v1401_v8 }
 0x1ef   : > { %v1294_v6 = vpop.eup %1293  ;;  %1086 = vst [vmem:[%s325_s19 + $0x20] sm:$0xff] %v1078_v56  ;;  %v1080_v4 = vmul.f32 %v1292_v57, %v1411_v11 }
 0x1f0   : > { %1087 = vst [vmem:[%s325_s19 + $0x28] sm:$0xff] %v1079_v58  ;;  %v1081_v59 = vmul.f32 %v1294_v6, %v1403_v9 }
 0x1f1   : > { %1088 = vst [vmem:[%s325_s19 + $0x30] sm:$0xff] %v1080_v4 }
 0x1f2   : > { %1089 = vst [vmem:[%s325_s19 + $0x38] sm:$0xff] %v1081_v59 }
 0x1f3 PF: > { %s16_s23 = sadd.s32 1, %s1317_s23   ;;  %s1476_s21 = smov %s1313_s22 }
 0x1f4   : > { %p13_p5 = scmp.ge.s32.totalorder %s16_s23, 4   ;;  %s1477_s22 = smov %s1479_s24 }
 0x1f6   :  { %15 = sbr.rel (!%p13_p5) target bundleno = 2 (0x2), region = 77 }

// kernel: esa_forward.2
= control target key start
LH: loop header
LB: loop body
LE: loop exit
PB: predicated region body
PF: predicated region fallthrough
CT: control target
= control target key end

     0   :  { %17 = vsyncpa [#allocation3], 0  ;;  %s9439_s0 = inlined_call_operand.hbm [shape: f32[2,8,32,32], index: 0, kind: input, shape index: {}]   ;;  %s9440_s1 = inlined_call_operand.vmem [shape: f32[6,24], index: 1, kind: input, shape index: {}]   ;;  %s9441_s2 = inlined_call_operand.vmem [shape: f32[3,32,15], index: 2, kind: input, shape index: {}]   ;;  %s9442_s3 = inlined_call_operand.vmem [shape: f32[2,1], index: 3, kind: input, shape index: {}]   ;;  %s9443_s4 = inlined_call_operand.vmem [shape: f32[2,18], index: 4, kind: input, shape index: {}]   ;;  %s9444_s5 = inlined_call_operand.vmem [shape: f32[2,1], index: 5, kind: input, shape index: {}]   ;;  %s9445_s6 = inlined_call_operand.vmem [shape: f32[2,18], index: 6, kind: input, shape index: {}]   ;;  %s9446_s7 = inlined_call_operand.vmem [shape: f32[2,1], index: 7, kind: input, shape index: {}]   ;;  %s9447_s8 = inlined_call_operand.vmem [shape: f32[2,18], index: 8, kind: input, shape index: {}]   ;;  %s9448_s9 = inlined_call_operand.vmem [shape: f32[2,1], index: 9, kind: input, shape index: {}]   ;;  %s9449_s10 = inlined_call_operand.vmem [shape: f32[3,32], index: 10, kind: input, shape index: {}]   ;;  %s9450_s11 = inlined_call_operand.vmem [shape: f32[32,3], index: 11, kind: input, shape index: {}]   ;;  %s9451_s12 = inlined_call_operand.vmem [shape: f32[2,2,32,32], index: 12, kind: output, shape index: {}]  }
   0x1   :  { %19 = vsyncpa [#allocation3 + $0x1], 0  ;;  %s7984_s21 = smov 0   ;;  %s7986_s22 = smov 0  }
   0x2   :  { %s7988_s23 = smov 0   ;;  %s7990_s24 = smov 0  }
   0x3 LB: > { %s8003_s25 = sadd.s32 4294967295, %s7907_s24   ;;  %s8006_s26 = sadd.s32 1, %s7907_s24   ;;  %s7907_s24 = sphi %s7990_s24, %s9458_s24   ;;  %s7903_s23 = sphi %s7988_s23, %s9457_s23   ;;  %s7899_s22 = sphi %s7986_s22, %s9456_s22   ;;  %s7895_s21 = sphi %s7984_s21, %s9455_s21  }
   0x4   : > { %s29_s27 = ssub.s32 %s7907_s24, %s8006_s26  ;;  %s32_s28 = sadd.s32 1, %s7903_s23 }
   0x5   : > { %p30_p0 = scmp.eq.s32.totalorder %s29_s27, 0  ;;  %p39_p1 = scmp.ne.s32.totalorder %s7903_s23, %s7899_s22 }
   0x6   : > { %p40_p2 = scmp.eq.s32.totalorder %s7907_s24, 0  ;;  %p45_p3 = scmp.ne.s32.totalorder %s7899_s22, %s7895_s21 }
   0x7   : > { %s8016_s29 = scalar_select %p30_p0, %s7903_s23, %s32_s28  }
   0x8   : > { %p41_p4 = por %p40_p2, %p39_p1  ;;  %p46_p5 = scmp.eq.s32.totalorder %s8003_s25, 0 }
   0x9   : > { %p7713_p6 = scmp.lt.s32.totalorder %s7907_s24, 2  ;;  %s359_s13 = sand.u32 1, %s7903_s23  }
   0xa   : > { %p8020_p7 = por %p46_p5, %p45_p3  ;;  %s6276_s14 = sshll.u32 %s359_s13, 8 }
   0xb   : > { %s6383_s15 = sshll.u32 %s7907_s24, 12  ;;  %s363_s19 = scalar_lea.vmem [#allocation2], %s6276_s14 }
   0xc   : > { %s8029_s18 = scalar_lea.hbm %s9439_s0, %s6383_s15  ;;  %s370_s20 = sshll.u32 %s363_s19, 4  ;;  %s8031_s20 = int_to_ptr.vmem [resolvable:$true] %s370_s20 }
   0xd   : > { %p8033_p8 = pnand %p7713_p6, %p41_p4  ;;  %s8038_s27 = scalar_lea.sflag [#allocation3], %s359_s13 }
   0xe   : > { %s7843_s28 = scalar_lea.hbm %s8029_s18, 4096  ;;  %s7848_s16 = scalar_lea.hbm %s9439_s0, 8192 }
   0xf   : > { %p7844_p10 = scmp.ne.s32.totalorder %s8029_s18, %s7843_s28  ;;  %p7845_p11 = pneg %p8033_p8 }
  0x10   : > { %p7849_p0 = scmp.lt.u32.totalorder %s8029_s18, %s9439_s0  ;;  %p7850_p1 = scmp.lt.u32.totalorder %s7848_s16, %s7843_s28 }
  0x11   : > { %p7846_p12 = pnand %p7845_p11, %p7844_p10  ;;  %p7852_p3 = scmp.lt.u32.totalorder %s7843_s28, %s8029_s18 }
  0x12   : > { %p7851_p2 = por %p7850_p1, %p7849_p0 }
  0x13   : > { %p7847_p13 = pneg %p7846_p12 }
  0x14   : > { %p7853_p4 = por %p7852_p3, %p7851_p2 }
  0x16   : > { %p7854_p5 = pnand %p7853_p4, %p7847_p13 }
  0x18   : > { %7857 = shalt.err (!%p7854_p5)
}
  0x19   : > { %s7858_s13 = scalar_lea.vmem %s8031_s20, 4096  ;;  %s7909_s14 = smov [#allocation2]  }
  0x1a   : > { %p7859_p6 = scmp.ne.s32.totalorder %s8031_s20, %s7858_s13  ;;  %s7863_s15 = sshll.u32 %s7909_s14, 4  ;;  %s7864_s15 = int_to_ptr.vmem [resolvable:$false] %s7863_s15 }
  0x1b   : > { %s7865_s17 = scalar_lea.vmem %s7864_s15, 8192  ;;  %p7866_p9 = scmp.lt.s32.totalorder %s8031_s20, %s7864_s15 }
  0x1c   : > { %p7861_p10 = pnand %p7859_p6, %p7845_p11  ;;  %p7867_p0 = scmp.lt.s32.totalorder %s7865_s17, %s7858_s13 }
  0x1e   : > { %p7862_p12 = pneg %p7861_p10  ;;  %p7868_p1 = por %p7867_p0, %p7866_p9 }
  0x20   : > { %p7869_p2 = pnand %p7868_p1, %p7862_p12 }
  0x22   : > { %7872 = shalt.err (!%p7869_p2)
}
  0x23   : > { %s7910_s28 = smov 128   ;;  %s7911_s16 = smov 8  }
  0x24   : > { %7712 = dma.hbm_to_vmem [thread:$0]  (!%p8033_p8), %s8029_s18, 4096, %s8031_s20, %s8038_s27, %s7910_s28, %s7910_s28, %s7911_s16  }
  0x25   : > { %p378_p11 = scmp.lt.s32.totalorder %s7907_s24, 3  ;;  %p9454_p13 = scmp.ge.s32.totalorder %s7907_s24, 1 }
  0x27   : > { %p379_p3 = pnand %p9454_p13, %p378_p11 }
  0x28   : > { %s384_s19 = sand.u32 (!%p379_p3), 1, %s7899_s22  }
  0x29   : > { %382 = sbr.rel (%p379_p3) target bundleno = 3908 (0xf44), region = 68  ;;  %s6280_s13 = sshll.u32 (!%p379_p3), %s384_s19, 8 }
  0x2a   : > { %s385_s14 = scalar_lea.sflag (!%p379_p3), [#allocation3], %s384_s19  ;;  %s8070_s15 = scalar_lea.vmem (!%p379_p3), [#allocation2], %s6280_s13 }
  0x30   : > { %7890 = dma.done.wait (%p8020_p7), %s385_s14, 4096  }
  0x31   : > { %7892 = vsyncadd (%p8020_p7), %s385_s14, 4294963200  ;;  %v7912_v0 = vmov 0.0|0.0   ;;  %vm7913_vm0 = vmmov 0   ;;  %v7914_v1 = vmov 0.0   ;;  %vm477_vm1 = vcmask 1041409   ;;  %v8083_v2 = vld [vmem:[%s8070_s15] sm:$0xff] }
  0x32   : > { %7342 = vmatprep.subr.bf16.mxu0 %v7912_v0  ;;  %7345 = vmatprep.subr.bf16.mxu1 %v7912_v0  ;;  %vm480_vm2 = vcmask 1042434   ;;  %vm483_vm3 = vcmask 1043459   ;;  %vm486_vm4 = vcmask 1044484   ;;  %v8086_v3 = vld [vmem:[%s8070_s15 + $0x20] sm:$0xff]  ;;  %vm489_vm5 = vcmask 1045509   ;;  %s7917_s17 = smov 127  }
  0x33   : > { %6690 = vmatprep.mubr.msk.f32.mxu0 %vm7913_vm0, %v7914_v1  ;;  %6701 = vmatprep.mubr.msk.f32.mxu1 %vm7913_vm0, %v7914_v1  ;;  %v8089_v4 = vld [vmem:[%s8070_s15 + $0x40] sm:$0xff]  ;;  %vm492_vm6 = vcmask 1046534   ;;  %vm495_vm7 = vcmask 1047559   ;;  %v476_v8 = vrot.slane %v8086_v3, 7  ;;  %v498_v10 = vrot.slane %v8083_v2, 1  ;;  %s7918_s28 = smov 126  }
  0x34   : > { %v8092_v5 = vld [vmem:[%s8070_s15 + $0x60] sm:$0xff]  ;;  %v479_v9 = vrot.slane %v8089_v4, 6  ;;  %v500_v16 = vrot.slane %v8089_v4, 7  ;;  %v513_v31 = vrot.slane %v8083_v2, 2  ;;  %v514_v32 = vrot.slane %v8086_v3, 1  ;;  %p429_p7 = scmp.lt.s32.totalorder %s8003_s25, 1 }
  0x35   : > { %v8095_v6 = vld [vmem:[%s8070_s15 + $0x80] sm:$0xff]  ;;  %v482_v13 = vrot.slane %v8092_v5, 5  ;;  %v478_v17 = vsel %vm477_vm1, %v476_v8, %v8083_v2  ;;  %v499_v20 = vsel %vm477_vm1, %v8086_v3, %v498_v10  ;;  %v502_v23 = vrot.slane %v8092_v5, 6 }
  0x36   : > { %v8098_v7 = vld [vmem:[%s8070_s15 + $0xa0] sm:$0xff]  ;;  %v485_v14 = vrot.slane %v8095_v6, 4  ;;  %v481_v21 = vsel %vm480_vm2, %v479_v9, %v478_v17  ;;  %v501_v22 = vsel %vm480_vm2, %v500_v16, %v499_v20  ;;  %v504_v24 = vrot.slane %v8095_v6, 5  ;;  %s9460_s25 = smov (!%p429_p7, %s8003_s25), 1 }
  0x37   : > { %v8104_v11 = vld [vmem:[%s8070_s15 + $0xc0] sm:$0xff]  ;;  %v488_v15 = vrot.slane %v8098_v7, 3  ;;  %v484_v25 = vsel %vm483_vm3, %v482_v13, %v481_v21  ;;  %v506_v26 = vrot.slane %v8098_v7, 4  ;;  %v503_v30 = vsel %vm483_vm3, %v502_v23, %v501_v22  ;;  %v603_v23 = vld [vmem:[%s9441_s2 + $0x8] sm:$0xff]  ;;  %s6384_s27 = sshll.u32 %s9460_s25, 6 }
  0x38   : > { %v8107_v12 = vld [vmem:[%s8070_s15 + $0xe0] sm:$0xff]  ;;  %v491_v18 = vrot.slane %v8104_v11, 2  ;;  %v508_v27 = vrot.slane %v8104_v11, 3  ;;  %v487_v29 = vsel %vm486_vm4, %v485_v14, %v484_v25  ;;  %v505_v34 = vsel %vm486_vm4, %v504_v24, %v503_v30  ;;  %v605_v30 = vld [vmem:[%s9441_s2 + $0x18] sm:$0xff] }
  0x39   : > { %v494_v19 = vrot.slane %v8107_v12, 1  ;;  %v510_v28 = vrot.slane %v8107_v12, 2  ;;  %v490_v33 = vsel %vm489_vm5, %v488_v15, %v487_v29  ;;  %v517_v35 = vrot.slane %v8092_v5, 7  ;;  %v8169_v10 = vld [vmem:[%s9440_s1] sm:$0x3f]  ;;  %v604_v29 = vld [vmem:[%s9441_s2 + $0x10] sm:$0xff] }
  0x3a   : > { %v519_v36 = vrot.slane %v8095_v6, 6  ;;  %v493_v37 = vsel %vm492_vm6, %v491_v18, %v490_v33  ;;  %v507_v38 = vsel %vm489_vm5, %v506_v26, %v505_v34  ;;  %v515_v39 = vsel %vm477_vm1, %v514_v32, %v513_v31  ;;  %v602_v22 = vld [vmem:[%s9441_s2] sm:$0xff] }
  0x3b   : > { %v521_v40 = vrot.slane %v8098_v7, 5  ;;  %v496_v41 = vsel %vm495_vm7, %v494_v19, %v493_v37  ;;  %v509_v42 = vsel %vm492_vm6, %v508_v27, %v507_v38  ;;  %v516_v43 = vsel %vm480_vm2, %v8089_v4, %v515_v39 }
  0x3c   : > { %v523_v44 = vrot.slane %v8104_v11, 4  ;;  %v511_v45 = vsel %vm495_vm7, %v510_v28, %v509_v42  ;;  %v518_v46 = vsel %vm483_vm3, %v517_v35, %v516_v43  ;;  %v525_v47 = vrot.slane %v8107_v12, 3  ;;  %v467_v35 = vld [vmem:[%s9442_s3] sm:$0x3]  ;;  %v6286_v43 = vld [vmem:[%s9441_s2 + $0x28] sm:$0xff] }
  0x3d   : > { %v844_v48 = vrot.slane %v8083_v2, 3  ;;  %v7343_v49 = vpack.c.bf16 %v511_v45, %v496_v41  ;;  %v520_v50 = vsel %vm486_vm4, %v519_v36, %v518_v46  ;;  %v845_v51 = vrot.slane %v8086_v3, 2  ;;  %v6285_v42 = vld [vmem:[%s9441_s2 + $0x20] sm:$0xff] }
  0x3e   : > { %v847_v52 = vrot.slane %v8089_v4, 1  ;;  %v522_v53 = vsel %vm489_vm5, %v521_v40, %v520_v50  ;;  %v850_v54 = vrot.slane %v8095_v6, 7  ;;  %v852_v55 = vrot.slane %v8098_v7, 6 }
  0x3f   : > { %7344 = vmatpush3.bf16.msra.mxu0 %v7343_v49  ;;  %v524_v56 = vsel %vm492_vm6, %v523_v44, %v522_v53  ;;  %v846_v57 = vsel %vm477_vm1, %v845_v51, %v844_v48  ;;  %v854_v58 = vrot.slane %v8104_v11, 5  ;;  %v859_v59 = vrot.slane %v8083_v2, 4  ;;  %v6288_v53 = vld [vmem:[%s9441_s2 + $0x38] sm:$0xff] }
  0x40   : > { %6688 = vmatprep.subr.mxu0 %v7914_v1  ;;  %v526_v60 = vsel %vm495_vm7, %v525_v47, %v524_v56  ;;  %v848_v61 = vsel %vm480_vm2, %v847_v52, %v846_v57  ;;  %v860_v62 = vrot.slane %v8086_v3, 3  ;;  %v862_v63 = vrot.slane %v8089_v4, 2  ;;  %v6287_v52 = vld [vmem:[%s9441_s2 + $0x30] sm:$0xff] }
  0x41   : > { %v849_v8 = vsel %vm483_vm3, %v8092_v5, %v848_v61  ;;  %v856_v9 = vrot.slane %v8107_v12, 4  ;;  %vm528_vm8 = vcmask 195584   ;;  %v864_v13 = vrot.slane %v8092_v5, 1 }
  0x42   : > { %v851_v14 = vsel %vm486_vm4, %v850_v54, %v849_v8  ;;  %v861_v15 = vsel %vm477_vm1, %v860_v62, %v859_v59  ;;  %v867_v16 = vrot.slane %v8098_v7, 7  ;;  %v869_v19 = vrot.slane %v8104_v11, 6  ;;  %v8277_v62 = vld [vmem:[%s8070_s15 + $0x28] sm:$0xff] }
  0x43   : > { %6689 = vmatpush3.msra.mxu0 %v526_v60  ;;  %v853_v17 = vsel %vm489_vm5, %v852_v55, %v851_v14  ;;  %v863_v18 = vsel %vm480_vm2, %v862_v63, %v861_v15  ;;  %v871_v26 = vrot.slane %v8107_v12, 5  ;;  %v8203_v32 = vpack.c.bf16 %v603_v23, %v602_v22 }
  0x44   : > { %v855_v20 = vsel %vm492_vm6, %v854_v58, %v853_v17  ;;  %6691 = vmatmul.mubr.msk.f32.vlgmr.msra.gmra.mrb[0].mxu0 %vm528_vm8, %v8169_v10  ;;  %7363 = vmatprep.subr.bf16.mxu0 %v7912_v0  ;;  %v865_v21 = vsel %vm483_vm3, %v864_v13, %v863_v18  ;;  %v8210_v34 = vpack.c.bf16 %v605_v30, %v604_v29  ;;  %v7915_v36 = vmov 0   ;;  %v8290_v17 = vld [vmem:[%s8070_s15 + $0x48] sm:$0xff] }
  0x45   : > { %v857_v24 = vsel %vm495_vm7, %v856_v9, %v855_v20  ;;  %v866_v25 = vsel %vm486_vm4, %v8095_v6, %v865_v21  ;;  %6732 = vmatprep.mubr.msk.f32.mxu0 %vm7913_vm0, %v7914_v1  ;;  %7347 = vmatpush3.bf16.msra.mxu1 %v8203_v32  ;;  %v1166_v37 = vrot.slane %v8083_v2, 5  ;;  %v1167_v38 = vrot.slane %v8086_v3, 4  ;;  %v6292_v20 = vld [vmem:[%s9441_s2 + $0x50] sm:$0xff]  ;;  %v6293_v21 = vld [vmem:[%s9441_s2 + $0x58] sm:$0xff]  ;;  %v8314_v29 = vld [vmem:[%s8070_s15 + $0x68] sm:$0xff] }
  0x46   : > { %v7364_v27 = vpack.c.bf16 %v857_v24, %v526_v60  ;;  %v868_v28 = vsel %vm489_vm5, %v867_v16, %v866_v25  ;;  %7348 = vmatprep.subr.bf16.mxu1 %v7912_v0  ;;  %7755 = vset.pattern.permute.xlu0 %v7915_v36  ;;  %v1169_v39 = vrot.slane %v8089_v4, 3  ;;  %v1171_v41 = vrot.slane %v8092_v5, 2  ;;  %v6290_v60 = vld [vmem:[%s9441_s2 + $0x40] sm:$0xff]  ;;  %v8305_v24 = vld [vmem:[%s8070_s15 + $0x8] sm:$0xff] }
  0x47   : > { %v870_v31 = vsel %vm492_vm6, %v869_v19, %v868_v28  ;;  %7816 = vset.pattern.permute.xlu1 %v7915_v36  ;;  %682 = vperm.xlu0 %7755, %v467_v35   ;;  %v1168_v40 = vsel %vm477_vm1, %v1167_v38, %v1166_v37  ;;  %v1173_v45 = vrot.slane %v8095_v6, 1  ;;  %v1181_v46 = vrot.slane %v8083_v2, 6 }
  0x48   : > { %7365 = vmatpush3.bf16.msra.mxu0 %v7364_v27  ;;  %v8207_v33 = vsel %vm495_vm7, %v871_v26, %v870_v31  ;;  %v1170_v44 = vsel %vm480_vm2, %v1169_v39, %v1168_v40  ;;  %v1182_v47 = vrot.slane %v8086_v3, 5  ;;  %vm606_vm9 = vcmask 261120   ;;  %v8334_v40 = vld [vmem:[%s8070_s15 + $0x88] sm:$0xff] }
  0x49   : > { %6730 = vmatprep.subr.mxu0 %v7914_v1  ;;  %7350 = vmatpush3.bf16.msra.mxu1 %v8210_v34  ;;  %v8243_v48 = vpack.c.bf16 %v6286_v43, %v6285_v42  ;;  %v1488_v49 = vrot.slane %v8083_v2, 7  ;;  %v1489_v50 = vrot.slane %v8086_v3, 6  ;;  %v1172_v51 = vsel %vm483_vm3, %v1171_v41, %v1170_v44 }
  0x4a   : > { %7351 = vmatprep.subr.bf16.mxu1 %v7912_v0  ;;  %v1184_v55 = vrot.slane %v8089_v4, 4  ;;  %v1183_v2 = vsel %vm477_vm1, %v1182_v47, %v1181_v46  ;;  %v1491_v3 = vrot.slane %v8089_v4, 5  ;;  %v1174_v57 = vsel %vm486_vm4, %v1173_v45, %v1172_v51  ;;  %v6291_v4 = vld [vmem:[%s9441_s2 + $0x48] sm:$0xff] }
  0x4b   : > { %v8263_v58 = vpack.c.bf16 %v6288_v53, %v6287_v52  ;;  %v1490_v59 = vsel %vm477_vm1, %v1489_v50, %v1488_v49  ;;  %v1186_v61 = vrot.slane %v8092_v5, 3  ;;  %v1176_v63 = vrot.slane %v8104_v11, 7  ;;  %v8351_v50 = vld [vmem:[%s8070_s15 + $0xa8] sm:$0xff] }
  0x4c   : > { %6731 = vmatpush3.msra.mxu0 %v8207_v33  ;;  %v1185_v8 = vsel %vm480_vm2, %v1184_v55, %v1183_v2  ;;  %v1493_v9 = vrot.slane %v8092_v5, 4  ;;  %v1175_v13 = vsel %vm489_vm5, %v8098_v7, %v1174_v57  ;;  %v1492_v14 = vsel %vm480_vm2, %v1491_v3, %v1490_v59  ;;  %v8377_v3 = vld [vmem:[%s8070_s15 + $0xe8] sm:$0xff] }
  0x4d   : > { %6733 = vmatmul.mubr.msk.f32.vlgmr.msra.gmra.mrb[2].mxu0 %vm528_vm8, %v8169_v10  ;;  %7366 = vmatprep.subr.bf16.mxu0 %v7912_v0  ;;  %v8286_v15 = vpack.c.bf16 %v6291_v4, %v6290_v60  ;;  %v1188_v16 = vrot.slane %v8095_v6, 2  ;;  %v1511_v18 = vrot.slane %v8277_v62, 7  ;;  %v1178_v19 = vrot.slane %v8107_v12, 6 }
  0x4e   : > { %7368 = vmatpush3.bf16.msra.mxu0 %v8203_v32  ;;  %6743 = vmatprep.mubr.msk.f32.mxu0 %vm7913_vm0, %v7914_v1  ;;  %v1187_v22 = vsel %vm483_vm3, %v1186_v61, %v1185_v8  ;;  %v1495_v23 = vrot.slane %v8095_v6, 3  ;;  %v1177_v25 = vsel %vm492_vm6, %v1176_v63, %v1175_v13  ;;  %v1494_v26 = vsel %vm483_vm3, %v1493_v9, %v1492_v14 }
  0x4f   : > { %7369 = vmatprep.subr.bf16.mxu0 %v7912_v0  ;;  %v1190_v28 = vrot.slane %v8098_v7, 1  ;;  %v1513_v30 = vrot.slane %v8290_v17, 6  ;;  %v8320_v6 = vpack.c.bf16 %v6293_v21, %v6292_v20  ;;  %v1189_v31 = vsel %vm486_vm4, %v1188_v16, %v1187_v22 }
  0x50   : > { %v1497_v35 = vrot.slane %v8098_v7, 2  ;;  %v1512_v36 = vsel %vm477_vm1, %v1511_v18, %v8305_v24  ;;  %v1179_v38 = vsel %vm495_vm7, %v1178_v19, %v1177_v25  ;;  %v1496_v39 = vsel %vm486_vm4, %v1495_v23, %v1494_v26 }
  0x51   : > { %v1515_v7 = vrot.slane %v8314_v29, 5  ;;  %v1191_v41 = vsel %vm489_vm5, %v1190_v28, %v1189_v31  ;;  %v1499_v42 = vrot.slane %v8104_v11, 1  ;;  %v1514_v43 = vsel %vm480_vm2, %v1513_v30, %v1512_v36 }
  0x52   : > { %7371 = vmatpush3.bf16.msra.mxu0 %v8210_v34  ;;  %v7385_v44 = vpack.c.bf16 %v1179_v38, %v8207_v33  ;;  %v1498_v46 = vsel %vm489_vm5, %v1497_v35, %v1496_v39  ;;  %v1193_v49 = vrot.slane %v8107_v12, 7  ;;  %v1517_v51 = vrot.slane %v8334_v40, 4 }
  0x53   : > { %7372 = vmatprep.subr.bf16.mxu0 %v7912_v0  ;;  %v1192_v33 = vsel %vm492_vm6, %v8104_v11, %v1191_v41  ;;  %v1516_v52 = vsel %vm483_vm3, %v1515_v7, %v1514_v43  ;;  %v1500_v53 = vsel %vm492_vm6, %v1499_v42, %v1498_v46  ;;  %v1519_v55 = vrot.slane %v8351_v50, 3 }
  0x54   : > { %v1194_v11 = vsel %vm495_vm7, %v1193_v49, %v1192_v33  ;;  %v1501_v2 = vsel %vm495_vm7, %v8107_v12, %v1500_v53  ;;  %v1523_v12 = vrot.slane %v8377_v3, 1  ;;  %v1818_v8 = vrot.slane %v8305_v24, 1 }
  0x55   : > { %v7406_v4 = vpack.c.bf16 %v1501_v2, %v1194_v11  ;;  %v1820_v9 = vrot.slane %v8290_v17, 7  ;;  %v1822_v16 = vrot.slane %v8314_v29, 6  ;;  %v1834_v20 = vrot.slane %v8277_v62, 1 }
  0x56   : > { %v1819_v13 = vsel %vm477_vm1, %v8277_v62, %v1818_v8  ;;  %v1824_v21 = vrot.slane %v8334_v40, 5  ;;  %v2140_v22 = vrot.slane %v8305_v24, 3  ;;  %v2141_v23 = vrot.slane %v8277_v62, 2 }
  0x57   : > { %v1821_v19 = vsel %vm480_vm2, %v1820_v9, %v1819_v13  ;;  %v2143_v35 = vrot.slane %v8290_v17, 1  ;;  %v1837_v39 = vrot.slane %v8314_v29, 7  ;;  %v1839_v49 = vrot.slane %v8334_v40, 6 }
  0x58   : > { %v1823_v25 = vsel %vm483_vm3, %v1822_v16, %v1821_v19  ;;  %v2156_v33 = vrot.slane %v8277_v62, 3  ;;  %v2160_v16 = vrot.slane %v8314_v29, 1  ;;  %vm4742_vm10 = vcmask 74776  }
  0x59   : > { %v1825_v36 = vsel %vm486_vm4, %v1824_v21, %v1823_v25  ;;  %v1845_v25 = vrot.slane %v8377_v3, 3  ;;  %vm4738_vm11 = vcmask 50176   ;;  %vm4746_vm12 = vcmask 99376  }
  0x5a   : > { %vm4750_vm13 = vcmask 7168   ;;  %vm4752_vm14 = vcmask 15360   ;;  %vm4795_vm15 = vcmask 31744  }
  0xc6   : > { %v8427_v28 = vpop.permute.xlu0 %682 }
 0x117   : > { %v8254_v54 = vpop.f32.mrb[0].mxu0 }
 0x118   : > { %v6692_v56 = vpop.f32.mrb[1].mxu0  ;;  %6702 = vmatmul.mubr.msk.f32.vlgmr.msra.gmra.mrb[0].mxu1 %vm606_vm9, %v8254_v54  ;;  %v691_v5 = vrot.slane %v8254_v54, 2  ;;  %v770_v47 = vrot.slane %v8254_v54, 4  ;;  %v8362_v54 = vld [vmem:[%s8070_s15 + $0xc8] sm:$0xff] }
 0x119   : > { %7353 = vmatpush3.bf16.msra.mxu1 %v8243_v48  ;;  %6712 = vmatprep.mubr.msk.f32.mxu1 %vm7913_vm0, %v7914_v1  ;;  %v1518_v56 = vsel %vm486_vm4, %v1517_v51, %v1516_v52  ;;  %v1521_v57 = vrot.slane %v8362_v54, 2  ;;  %v1828_v7 = vrot.slane %v8362_v54, 3  ;;  %v2155_v51 = vrot.slane %v8305_v24, 4 }
 0x11a   : > { %7354 = vmatprep.subr.bf16.mxu1 %v7912_v0  ;;  %v1520_v60 = vsel %vm489_vm5, %v1519_v55, %v1518_v56  ;;  %v1830_v52 = vrot.slane %v8377_v3, 2  ;;  %v2150_v19 = vrot.slane %v8362_v54, 5 }
 0x11b   : > { %v1522_v61 = vsel %vm492_vm6, %v1521_v57, %v1520_v60  ;;  %v2158_v60 = vrot.slane %v8290_v17, 2 }
 0x11c   : > { %v8398_v63 = vsel %vm495_vm7, %v1523_v12, %v1522_v61  ;;  %v2148_v12 = vrot.slane %v8351_v50, 6  ;;  %v2157_v61 = vsel %vm477_vm1, %v2156_v33, %v2155_v51  ;;  %v2463_v51 = vrot.slane %v8277_v62, 4 }
 0x11d   : > { %7356 = vmatpush3.bf16.msra.mxu1 %v8263_v58  ;;  %v2465_v33 = vrot.slane %v8290_v17, 3 }
 0x11e   : > { %7357 = vmatprep.subr.bf16.mxu1 %v7912_v0 }
 0x120   : > { %v8309_v27 = vpop.f32.mrb[2].mxu0  ;;  %6713 = vmatmul.mubr.msk.f32.vlgmr.msra.gmra.mrb[0].mxu1 %vm606_vm9, %v691_v5  ;;  %v1833_v5 = vrot.slane %v8305_v24, 2 }
 0x121   : > { %6744 = vmatmul.mubr.msk.f32.vlgmr.msra.gmra.mrb[4].mxu0 %vm606_vm9, %v8309_v27  ;;  %7359 = vmatpush3.bf16.msra.mxu1 %v8286_v15  ;;  %v6734_v37 = vpop.f32.mrb[3].mxu0  ;;  %v1018_v45 = vrot.slane %v8309_v27, 2  ;;  %v1092_v59 = vrot.slane %v8309_v27, 4  ;;  %v1826_v27 = vrot.slane %v8351_v50, 4 }
 0x122   : > { %7374 = vmatpush3.bf16.msra.mxu0 %v8243_v48  ;;  %7360 = vmatprep.subr.bf16.mxu1 %v7912_v0  ;;  %v1835_v31 = vsel %vm477_vm1, %v1834_v20, %v1833_v5  ;;  %v2142_v37 = vsel %vm477_vm1, %v2141_v23, %v2140_v22  ;;  %v2159_v5 = vsel %vm480_vm2, %v2158_v60, %v2157_v61  ;;  %v2478_v60 = vrot.slane %v8277_v62, 5 }
 0x123   : > { %7375 = vmatprep.subr.bf16.mxu0 %v7912_v0  ;;  %6754 = vmatprep.mubr.msk.f32.mxu0 %vm7913_vm0, %v7914_v1  ;;  %v2144_v46 = vsel %vm480_vm2, %v2143_v35, %v2142_v37  ;;  %v2785_v61 = vrot.slane %v8277_v62, 6 }
 0x124   : > { %6723 = vmatprep.mubr.msk.f32.mxu1 %vm7913_vm0, %v7914_v1  ;;  %v2145_v2 = vsel %vm483_vm3, %v8314_v29, %v2144_v46 }
 0x125   : > { %7362 = vmatpush3.bf16.msra.mxu1 %v8320_v6 }
 0x126   : > { %7377 = vmatpush3.bf16.msra.mxu0 %v8263_v58  ;;  %7384 = vmatprep.subr.bf16.mxu1 %v7912_v0 }
 0x127   : > { %7378 = vmatprep.subr.bf16.mxu0 %v7912_v0 }
 0x128   : > { %6724 = vmatmul.mubr.msk.f32.vlgmr.msra.gmra.mrb[0].mxu1 %vm606_vm9, %v770_v47 }
 0x129   : > { %6755 = vmatmul.mubr.msk.f32.vlgmr.msra.gmra.mrb[4].mxu0 %vm606_vm9, %v1018_v45  ;;  %7386 = vmatpush3.bf16.msra.mxu1 %v7385_v44  ;;  %v1836_v44 = vsel %vm480_vm2, %v8290_v17, %v1835_v31  ;;  %v1827_v45 = vsel %vm489_vm5, %v1826_v27, %v1825_v36 }
 0x12a   : > { %7380 = vmatpush3.bf16.msra.mxu0 %v8286_v15  ;;  %6772 = vmatprep.subr.mxu1 %v7914_v1  ;;  %v1838_v55 = vsel %vm483_vm3, %v1837_v39, %v1836_v44  ;;  %v1829_v56 = vsel %vm492_vm6, %v1828_v7, %v1827_v45  ;;  %v2167_v44 = vrot.slane %v8377_v3, 5 }
 0x12b   : > { %7381 = vmatprep.subr.bf16.mxu0 %v7912_v0  ;;  %6774 = vmatprep.mubr.msk.f32.mxu1 %vm7913_vm0, %v7914_v1  ;;  %v1831_v9 = vsel %vm495_vm7, %v1830_v52, %v1829_v56 }
 0x12c   : > { %6765 = vmatprep.mubr.msk.f32.mxu0 %vm7913_vm0, %v7914_v1  ;;  %v7427_v20 = vpack.c.bf16 %v1831_v9, %v8398_v63 }
 0x12d   : > { %6773 = vmatpush3.msra.mxu1 %v1194_v11  ;;  %v2146_v11 = vrot.slane %v8334_v40, 7 }
 0x12e   : > { %7383 = vmatpush3.bf16.msra.mxu0 %v8320_v6  ;;  %6775 = vmatmul.mubr.msk.f32.vlgmr.msra.gmra.mrb[2].mxu1 %vm528_vm8, %v8169_v10 }
 0x12f   : > { %7405 = vmatprep.subr.bf16.mxu0 %v7912_v0  ;;  %7387 = vmatprep.subr.bf16.mxu1 %v7912_v0  ;;  %v2147_v13 = vsel %vm486_vm4, %v2146_v11, %v2145_v2 }
 0x130   : > { %7389 = vmatpush3.bf16.msra.mxu1 %v8203_v32  ;;  %6785 = vmatprep.mubr.msk.f32.mxu1 %vm7913_vm0, %v7914_v1  ;;  %v2149_v22 = vsel %vm489_vm5, %v2148_v12, %v2147_v13  ;;  %v2784_v12 = vrot.slane %v8305_v24, 7  ;;  %v2480_v13 = vrot.slane %v8290_v17, 4 }
 0x131   : > { %6766 = vmatmul.mubr.msk.f32.vlgmr.msra.gmra.mrb[4].mxu0 %vm606_vm9, %v1092_v59  ;;  %7390 = vmatprep.subr.bf16.mxu1 %v7912_v0  ;;  %v1841_v59 = vrot.slane %v8351_v50, 5  ;;  %v2151_v31 = vsel %vm492_vm6, %v2150_v19, %v2149_v22 }
 0x132   : > { %7407 = vmatpush3.bf16.msra.mxu0 %v7406_v4  ;;  %6816 = vmatprep.mubr.msk.f32.mxu0 %vm7913_vm0, %v7914_v1  ;;  %v1840_v4 = vsel %vm486_vm4, %v1839_v49, %v1838_v55  ;;  %v2462_v49 = vrot.slane %v8305_v24, 5  ;;  %v2467_v55 = vrot.slane %v8314_v29, 2  ;;  %v2786_v62 = vsel %vm477_vm1, %v2785_v61, %v2784_v12 }
 0x133   : > { %6814 = vmatprep.subr.mxu0 %v7914_v1 }
 0x134   : > { %7392 = vmatpush3.bf16.msra.mxu1 %v8210_v34  ;;  %v2464_v52 = vsel %vm477_vm1, %v2463_v51, %v2462_v49 }
 0x135   : > { %7393 = vmatprep.subr.bf16.mxu1 %v7912_v0  ;;  %v2466_v2 = vsel %vm480_vm2, %v2465_v33, %v2464_v52  ;;  %v8627_v33 = vld [vmem:[%s8070_s15 + $0x90] sm:$0xff] }
 0x136   : > { %6815 = vmatpush3.msra.mxu0 %v8398_v63  ;;  %v2161_v63 = vsel %vm483_vm3, %v2160_v16, %v2159_v5  ;;  %v2482_v16 = vrot.slane %v8314_v29, 3  ;;  %v2813_v12 = vrot.slane %v8627_v33, 4 }
 0x137   : > { %6817 = vmatmul.mubr.msk.f32.vlgmr.msra.gmra.mrb[6].mxu0 %vm528_vm8, %v8169_v10  ;;  %7408 = vmatprep.subr.bf16.mxu0 %v7912_v0  ;;  %v2162_v36 = vsel %vm486_vm4, %v8334_v40, %v2161_v63 }
 0x138   : > { %7410 = vmatpush3.bf16.msra.mxu0 %v8203_v32  ;;  %6827 = vmatprep.mubr.msk.f32.mxu0 %vm7913_vm0, %v7914_v1 }
 0x139   : > { %7411 = vmatprep.subr.bf16.mxu0 %v7912_v0 }
 0x13c   : > { %7413 = vmatpush3.bf16.msra.mxu0 %v8210_v34 }
 0x13d   : > { %7414 = vmatprep.subr.bf16.mxu0 %v7912_v0 }
 0x1fb   : > { %v839_v14 = vpop.f32.mrb[0].mxu1 }
 0x1fc   : > { %v6725_v18 = vpop.f32.mrb[1].mxu1  ;;  %v8442_v41 = vadd.f32 %v839_v14, %v8427_v28  ;;  %v1843_v14 = vrot.slane %v8362_v54, 4 }
 0x1fd   : > { %v1842_v18 = vsel %vm489_vm5, %v1841_v59, %v1840_v4  ;;  %v2477_v59 = vrot.slane %v8305_v24, 6  ;;  %v2469_v4 = vrot.slane %v8334_v40, 1 }
 0x1fe   : > { %v1844_v27 = vsel %vm492_vm6, %v1843_v14, %v1842_v18  ;;  %v8580_v18 = vld [vmem:[%s8070_s15 + $0x30] sm:$0xff] }
 0x1ff   : > { %v1846_v35 = vsel %vm495_vm7, %v1845_v25, %v1844_v27  ;;  %v8591_v25 = vld [vmem:[%s8070_s15 + $0x50] sm:$0xff]  ;;  %v2807_v27 = vrot.slane %v8580_v18, 7 }
 0x201   : > { %v8424_v26 = vpop.f32.mrb[2].mxu1 }
 0x202   : > { %v6776_v30 = vpop.f32.mrb[3].mxu1  ;;  %6786 = vmatmul.mubr.msk.f32.vlgmr.msra.gmra.mrb[4].mxu1 %vm606_vm9, %v8424_v26  ;;  %v1340_v53 = vrot.slane %v8424_v26, 2  ;;  %v1414_v23 = vrot.slane %v8424_v26, 4  ;;  %v2163_v26 = vrot.slane %v8351_v50, 7 }
 0x203   : > { %7395 = vmatpush3.bf16.msra.mxu1 %v8243_v48  ;;  %6796 = vmatprep.mubr.msk.f32.mxu1 %vm7913_vm0, %v7914_v1  ;;  %v2152_v30 = vrot.slane %v8377_v3, 4 }
 0x204   : > { %v1161_v38 = vpop.f32.mrb[4].mxu0  ;;  %7396 = vmatprep.subr.bf16.mxu1 %v7912_v0  ;;  %v2164_v7 = vsel %vm489_vm5, %v2163_v26, %v2162_v36  ;;  %v8600_v26 = vld [vmem:[%s8070_s15 + $0x10] sm:$0xff] }
 0x205   : > { %v8445_v42 = vadd.f32 %v1161_v38, %v8427_v28  ;;  %v6767_v43 = vpop.f32.mrb[5].mxu0  ;;  %v2153_v37 = vsel %vm495_vm7, %v2152_v30, %v2151_v31  ;;  %v2165_v38 = vrot.slane %v8362_v54, 6  ;;  %v2474_v30 = vrot.slane %v8377_v3, 6 }
 0x206   : > { %v7448_v43 = vpack.c.bf16 %v2153_v37, %v1846_v35  ;;  %v2791_v31 = vrot.slane %v8334_v40, 3 }
 0x207   : > { %v4732_v47 = vmax.f32 %v8442_v41, %v8445_v42  ;;  %7398 = vmatpush3.bf16.msra.mxu1 %v8263_v58  ;;  %v2166_v45 = vsel %vm492_vm6, %v2165_v38, %v2164_v7  ;;  %v2479_v42 = vsel %vm477_vm1, %v2478_v60, %v2477_v59  ;;  %v2486_v38 = vrot.slane %v8351_v50, 1 }
 0x208   : > { %7399 = vmatprep.subr.bf16.mxu1 %v7912_v0  ;;  %v8531_v46 = vsel %vm495_vm7, %v2167_v44, %v2166_v45  ;;  %v2481_v5 = vsel %vm480_vm2, %v2480_v13, %v2479_v42  ;;  %v2809_v7 = vrot.slane %v8591_v25, 6  ;;  %v2808_v44 = vsel %vm477_vm1, %v2807_v27, %v8600_v26 }
 0x209   : > { %v2489_v60 = vrot.slane %v8377_v3, 7 }
 0x20a   : > { %v1592_v57 = vpop.f32.mrb[6].mxu0  ;;  %6797 = vmatmul.mubr.msk.f32.vlgmr.msra.gmra.mrb[4].mxu1 %vm606_vm9, %v1340_v53 }
 0x20b   : > { %6828 = vmatmul.mubr.msk.f32.vlgmr.msra.gmra.mrb[8].mxu0 %vm606_vm9, %v1592_v57  ;;  %7401 = vmatpush3.bf16.msra.mxu1 %v8286_v15  ;;  %v6818_v8 = vpop.f32.mrb[7].mxu0  ;;  %v1670_v21 = vrot.slane %v1592_v57, 2  ;;  %v1744_v39 = vrot.slane %v1592_v57, 4 }
 0x20c   : > { %7416 = vmatpush3.bf16.msra.mxu0 %v8243_v48  ;;  %7402 = vmatprep.subr.bf16.mxu1 %v7912_v0  ;;  %v2468_v8 = vsel %vm483_vm3, %v2467_v55, %v2466_v2  ;;  %v2810_v55 = vsel %vm480_vm2, %v2809_v7, %v2808_v44  ;;  %v3437_v7 = vrot.slane %v8580_v18, 2 }
 0x20d   : > { %7417 = vmatprep.subr.bf16.mxu0 %v7912_v0  ;;  %6838 = vmatprep.mubr.msk.f32.mxu0 %vm7913_vm0, %v7914_v1  ;;  %v2470_v14 = vsel %vm486_vm4, %v2469_v4, %v2468_v8  ;;  %v8644_v4 = vld [vmem:[%s8070_s15 + $0xb0] sm:$0xff] }
 0x20e   : > { %6807 = vmatprep.mubr.msk.f32.mxu1 %vm7913_vm0, %v7914_v1  ;;  %v2815_v13 = vrot.slane %v8644_v4, 3 }
 0x20f   : > { %7404 = vmatpush3.bf16.msra.mxu1 %v8320_v6 }
 0x210   : > { %7419 = vmatpush3.bf16.msra.mxu0 %v8263_v58  ;;  %7426 = vmatprep.subr.bf16.mxu1 %v7912_v0 }
 0x211   : > { %7420 = vmatprep.subr.bf16.mxu0 %v7912_v0 }
 0x212   : > { %6808 = vmatmul.mubr.msk.f32.vlgmr.msra.gmra.mrb[4].mxu1 %vm606_vm9, %v1414_v23  ;;  %v2484_v23 = vrot.slane %v8334_v40, 2 }
 0x213   : > { %6839 = vmatmul.mubr.msk.f32.vlgmr.msra.gmra.mrb[8].mxu0 %vm606_vm9, %v1670_v21  ;;  %7428 = vmatpush3.bf16.msra.mxu1 %v7427_v20  ;;  %v2789_v20 = vrot.slane %v8314_v29, 4  ;;  %v2471_v21 = vsel %vm489_vm5, %v8351_v50, %v2470_v14  ;;  %v2483_v29 = vsel %vm483_vm3, %v2482_v16, %v2481_v5 }
 0x214   : > { %7422 = vmatpush3.bf16.msra.mxu0 %v8286_v15  ;;  %6856 = vmatprep.subr.mxu1 %v7914_v1  ;;  %v2485_v40 = vsel %vm486_vm4, %v2484_v23, %v2483_v29 }
 0x215   : > { %7423 = vmatprep.subr.bf16.mxu0 %v7912_v0  ;;  %6858 = vmatprep.mubr.msk.f32.mxu1 %vm7913_vm0, %v7914_v1  ;;  %v2487_v52 = vsel %vm489_vm5, %v2486_v38, %v2485_v40  ;;  %v3436_v38 = vrot.slane %v8600_v26, 3 }
 0x216   : > { %6849 = vmatprep.mubr.msk.f32.mxu0 %vm7913_vm0, %v7914_v1 }
 0x217   : > { %6857 = vmatpush3.msra.mxu1 %v1846_v35 }
 0x218   : > { %7425 = vmatpush3.bf16.msra.mxu0 %v8320_v6  ;;  %6859 = vmatmul.mubr.msk.f32.vlgmr.msra.gmra.mrb[6].mxu1 %vm528_vm8, %v8169_v10 }
 0x219   : > { %7447 = vmatprep.subr.bf16.mxu0 %v7912_v0  ;;  %7429 = vmatprep.subr.bf16.mxu1 %v7912_v0 }
 0x21a   : > { %7431 = vmatpush3.bf16.msra.mxu1 %v8203_v32  ;;  %6869 = vmatprep.mubr.msk.f32.mxu1 %vm7913_vm0, %v7914_v1 }
 0x21b   : > { %6850 = vmatmul.mubr.msk.f32.vlgmr.msra.gmra.mrb[8].mxu0 %vm606_vm9, %v1744_v39  ;;  %7432 = vmatprep.subr.bf16.mxu1 %v7912_v0  ;;  %v8609_v39 = vld [vmem:[%s8070_s15 + $0x70] sm:$0xff] }
 0x21c   : > { %7449 = vmatpush3.bf16.msra.mxu0 %v7448_v43  ;;  %6900 = vmatprep.mubr.msk.f32.mxu0 %vm7913_vm0, %v7914_v1  ;;  %v2793_v43 = vrot.slane %v8351_v50, 2  ;;  %v2811_v50 = vrot.slane %v8609_v39, 5 }
 0x21d   : > { %6898 = vmatprep.subr.mxu0 %v7914_v1 }
 0x21e   : > { %7434 = vmatpush3.bf16.msra.mxu1 %v8210_v34  ;;  %v2812_v61 = vsel %vm483_vm3, %v2811_v50, %v2810_v55  ;;  %v3438_v50 = vsel %vm477_vm1, %v3437_v7, %v3436_v38 }
 0x21f   : > { %7435 = vmatprep.subr.bf16.mxu1 %v7912_v0 }
 0x220   : > { %6899 = vmatpush3.msra.mxu0 %v8531_v46 }
 0x221   : > { %6901 = vmatmul.mubr.msk.f32.vlgmr.msra.gmra.mrb[10].mxu0 %vm528_vm8, %v8169_v10  ;;  %7450 = vmatprep.subr.bf16.mxu0 %v7912_v0 }
 0x222   : > { %7452 = vmatpush3.bf16.msra.mxu0 %v8203_v32  ;;  %6911 = vmatprep.mubr.msk.f32.mxu0 %vm7913_vm0, %v7914_v1 }
 0x223   : > { %7453 = vmatprep.subr.bf16.mxu0 %v7912_v0 }
 0x226   : > { %7455 = vmatpush3.bf16.msra.mxu0 %v8210_v34 }
 0x227   : > { %7456 = vmatprep.subr.bf16.mxu0 %v7912_v0 }
 0x2e5   : > { %v1483_v53 = vpop.f32.mrb[4].mxu1 }
 0x2e6   : > { %v7644_v11 = vadd.f32 %v1483_v53, %v8427_v28  ;;  %v6809_v56 = vpop.f32.mrb[5].mxu1  ;;  %v2795_v53 = vrot.slane %v8362_v54, 1 }
 0x2e8   : > { %v8555_v57 = vmax.f32 %v4732_v47, %v7644_v11  ;;  %v2787_v47 = vrot.slane %v8290_v17, 5  ;;  %v2472_v17 = vrot.slane %v8362_v54, 7 }
 0x2ea   : > { %v2788_v22 = vsel %vm480_vm2, %v2787_v47, %v2786_v62  ;;  %v2473_v35 = vsel %vm492_vm6, %v2472_v17, %v2471_v21  ;;  %v8670_v47 = vld [vmem:[%s8070_s15 + $0xf0] sm:$0xff] }
 0x2eb   : > { %v8563_v9 = vpop.f32.mrb[6].mxu1  ;;  %v2790_v36 = vsel %vm483_vm3, %v2789_v20, %v2788_v22  ;;  %v2475_v49 = vsel %vm495_vm7, %v2474_v30, %v2473_v35  ;;  %v3114_v20 = vrot.slane %v8600_v26, 1  ;;  %v3118_v30 = vrot.slane %v8609_v39, 6 }
 0x2ec   : > { %v6860_v41 = vpop.f32.mrb[7].mxu1  ;;  %6870 = vmatmul.mubr.msk.f32.vlgmr.msra.gmra.mrb[8].mxu1 %vm606_vm9, %v8563_v9  ;;  %v1992_v63 = vrot.slane %v8563_v9, 2  ;;  %v2792_v51 = vsel %vm486_vm4, %v2791_v31, %v2790_v36  ;;  %v7469_v11 = vpack.c.bf16 %v2475_v49, %v8531_v46  ;;  %v2066_v59 = vrot.slane %v8563_v9, 4  ;;  %v8655_v9 = vld [vmem:[%s8070_s15 + $0xd0] sm:$0xff] }
 0x2ed   : > { %7437 = vmatpush3.bf16.msra.mxu1 %v8243_v48  ;;  %6880 = vmatprep.mubr.msk.f32.mxu1 %vm7913_vm0, %v7914_v1  ;;  %v2794_v2 = vsel %vm489_vm5, %v2793_v43, %v2792_v51  ;;  %v2488_v46 = vsel %vm492_vm6, %v8362_v54, %v2487_v52  ;;  %v2814_v41 = vsel %vm486_vm4, %v2813_v12, %v2812_v61  ;;  %v2817_v14 = vrot.slane %v8655_v9, 2 }
 0x2ee   : > { %v8575_v24 = vpop.f32.mrb[8].mxu0  ;;  %7438 = vmatprep.subr.bf16.mxu1 %v7912_v0  ;;  %v2796_v8 = vsel %vm492_vm6, %v2795_v53, %v2794_v2  ;;  %v2490_v54 = vsel %vm495_vm7, %v2489_v60, %v2488_v46  ;;  %v2816_v16 = vsel %vm489_vm5, %v2815_v13, %v2814_v41  ;;  %v3115_v22 = vsel %vm477_vm1, %v8580_v18, %v3114_v20 }
 0x2ef   : > { %v6851_v19 = vpop.f32.mrb[9].mxu0  ;;  %v2797_v42 = vsel %vm495_vm7, %v8377_v3, %v2796_v8  ;;  %v2819_v3 = vrot.slane %v8670_v47, 1  ;;  %v7645_v21 = vadd.f32 %v8575_v24, %v8427_v28  ;;  %v3129_v36 = vrot.slane %v8600_v26, 2 }
 0x2f0   : > { %v7490_v17 = vpack.c.bf16 %v2797_v42, %v2490_v54  ;;  %v2818_v19 = vsel %vm492_vm6, %v2817_v14, %v2816_v16  ;;  %v3130_v24 = vrot.slane %v8580_v18, 1  ;;  %v3122_v43 = vrot.slane %v8644_v4, 4 }
 0x2f1   : > { %7440 = vmatpush3.bf16.msra.mxu1 %v8263_v58  ;;  %v8691_v5 = vsel %vm495_vm7, %v2819_v3, %v2818_v19  ;;  %v4734_v27 = vmax.f32 %v8555_v57, %v7645_v21  ;;  %v3439_v49 = vrot.slane %v8591_v25, 1  ;;  %v3133_v53 = vrot.slane %v8609_v39, 7 }
 0x2f2   : > { %7441 = vmatprep.subr.bf16.mxu1 %v7912_v0  ;;  %v3124_v55 = vrot.slane %v8655_v9, 3  ;;  %v3135_v12 = vrot.slane %v8627_v33, 6  ;;  %v3451_v13 = vrot.slane %v8600_v26, 4  ;;  %v3126_v41 = vrot.slane %v8670_v47, 2 }
 0x2f3   : > { %v3440_v46 = vsel %vm480_vm2, %v3439_v49, %v3438_v50  ;;  %v3137_v19 = vrot.slane %v8644_v4, 5  ;;  %v3454_v20 = vrot.slane %v8591_v25, 2 }
 0x2f4   : > { %v8604_v37 = vpop.f32.mrb[10].mxu0  ;;  %6881 = vmatmul.mubr.msk.f32.vlgmr.msra.gmra.mrb[8].mxu1 %vm606_vm9, %v1992_v63 }
 0x2f5   : > { %6912 = vmatmul.mubr.msk.f32.vlgmr.msra.gmra.mrb[12].mxu0 %vm606_vm9, %v8604_v37  ;;  %7443 = vmatpush3.bf16.msra.mxu1 %v8286_v15  ;;  %v6902_v45 = vpop.f32.mrb[11].mxu0  ;;  %v2314_v56 = vrot.slane %v8604_v37, 2  ;;  %v2388_v62 = vrot.slane %v8604_v37, 4  ;;  %v3120_v37 = vrot.slane %v8627_v33, 5 }
 0x2f6   : > { %7458 = vmatpush3.bf16.msra.mxu0 %v8243_v48  ;;  %7444 = vmatprep.subr.bf16.mxu1 %v7912_v0  ;;  %v3131_v45 = vsel %vm477_vm1, %v3130_v24, %v3129_v36  ;;  %v3446_v36 = vrot.slane %v8655_v9, 5 }
 0x2f7   : > { %7459 = vmatprep.subr.bf16.mxu0 %v7912_v0  ;;  %6922 = vmatprep.mubr.msk.f32.mxu0 %vm7913_vm0, %v7914_v1 }
 0x2f8   : > { %6891 = vmatprep.mubr.msk.f32.mxu1 %vm7913_vm0, %v7914_v1 }
 0x2f9   : > { %7446 = vmatpush3.bf16.msra.mxu1 %v8320_v6 }
 0x2fa   : > { %7461 = vmatpush3.bf16.msra.mxu0 %v8263_v58  ;;  %7468 = vmatprep.subr.bf16.mxu1 %v7912_v0 }
 0x2fb   : > { %7462 = vmatprep.subr.bf16.mxu0 %v7912_v0 }
 0x2fc   : > { %6892 = vmatmul.mubr.msk.f32.vlgmr.msra.gmra.mrb[8].mxu1 %vm606_vm9, %v2066_v59  ;;  %v3132_v59 = vsel %vm480_vm2, %v8591_v25, %v3131_v45  ;;  %v3448_v45 = vrot.slane %v8670_v47, 4 }
 0x2fd   : > { %6923 = vmatmul.mubr.msk.f32.vlgmr.msra.gmra.mrb[12].mxu0 %vm606_vm9, %v2314_v56  ;;  %7470 = vmatpush3.bf16.msra.mxu1 %v7469_v11  ;;  %v3134_v14 = vsel %vm483_vm3, %v3133_v53, %v3132_v59  ;;  %v3461_v53 = vrot.slane %v8655_v9, 6  ;;  %v8816_v59 = vld [vmem:[%s9440_s1] sm:$0x3f] }
 0x2fe   : > { %7464 = vmatpush3.bf16.msra.mxu0 %v8286_v15  ;;  %6940 = vmatprep.subr.mxu1 %v7914_v1 }
 0x2ff   : > { %7465 = vmatprep.subr.bf16.mxu0 %v7912_v0  ;;  %6942 = vmatprep.mubr.msk.f32.mxu1 %vm7913_vm0, %v7914_v1 }
 0x300   : > { %6933 = vmatprep.mubr.msk.f32.mxu0 %vm7913_vm0, %v7914_v1 }
 0x301   : > { %6941 = vmatpush3.msra.mxu1 %v2490_v54  ;;  %v3452_v54 = vrot.slane %v8580_v18, 3 }
 0x302   : > { %7467 = vmatpush3.bf16.msra.mxu0 %v8320_v6  ;;  %6943 = vmatmul.mubr.msk.f32.vlgmr.msra.gmra.mrb[10].mxu1 %vm528_vm8, %v8169_v10 }
 0x303   : > { %7489 = vmatprep.subr.bf16.mxu0 %v7912_v0  ;;  %7471 = vmatprep.subr.bf16.mxu1 %v7912_v0 }
 0x304   : > { %7473 = vmatpush3.bf16.msra.mxu1 %v8203_v32  ;;  %6953 = vmatprep.mubr.msk.f32.mxu1 %vm7913_vm0, %v7914_v1 }
 0x305   : > { %6934 = vmatmul.mubr.msk.f32.vlgmr.msra.gmra.mrb[12].mxu0 %vm606_vm9, %v2388_v62  ;;  %7474 = vmatprep.subr.bf16.mxu1 %v7912_v0  ;;  %v3442_v62 = vrot.slane %v8627_v33, 7 }
 0x306   : > { %7491 = vmatpush3.bf16.msra.mxu0 %v7490_v17  ;;  %6984 = vmatprep.mubr.msk.f32.mxu0 %vm7913_vm0, %v7914_v1  ;;  %v3441_v17 = vsel %vm483_vm3, %v8609_v39, %v3440_v46 }
 0x307   : > { %6982 = vmatprep.subr.mxu0 %v7914_v1 }
 0x308   : > { %7476 = vmatpush3.bf16.msra.mxu1 %v8210_v34 }
 0x309   : > { %7477 = vmatprep.subr.bf16.mxu1 %v7912_v0 }
 0x30a   : > { %6983 = vmatpush3.msra.mxu0 %v8691_v5 }
 0x30b   : > { %6985 = vmatmul.mubr.msk.f32.vlgmr.msra.gmra.mrb[14].mxu0 %vm528_vm8, %v8169_v10  ;;  %7492 = vmatprep.subr.bf16.mxu0 %v7912_v0  ;;  %v3116_v10 = vrot.slane %v8591_v25, 7 }
 0x30c   : > { %7494 = vmatpush3.bf16.msra.mxu0 %v8203_v32  ;;  %6995 = vmatprep.mubr.msk.f32.mxu0 %vm7913_vm0, %v7914_v1 }
 0x30d   : > { %7495 = vmatprep.subr.bf16.mxu0 %v7912_v0  ;;  %v3117_v31 = vsel %vm480_vm2, %v3116_v10, %v3115_v22  ;;  %v3444_v10 = vrot.slane %v8644_v4, 6  ;;  %v3453_v22 = vsel %vm477_vm1, %v3452_v54, %v3451_v13  ;;  %v3758_v13 = vrot.slane %v8600_v26, 5 }
 0x30e   : > { %v3119_v57 = vsel %vm483_vm3, %v3118_v30, %v3117_v31  ;;  %v3443_v30 = vsel %vm486_vm4, %v3442_v62, %v3441_v17  ;;  %v3455_v24 = vsel %vm480_vm2, %v3454_v20, %v3453_v22  ;;  %v3759_v54 = vrot.slane %v8580_v18, 4 }
 0x30f   : > { %v3121_v51 = vsel %vm486_vm4, %v3120_v37, %v3119_v57  ;;  %v3445_v7 = vsel %vm489_vm5, %v3444_v10, %v3443_v30  ;;  %v3763_v62 = vrot.slane %v8609_v39, 2  ;;  %v3774_v10 = vrot.slane %v8580_v18, 5 }
 0x310   : > { %7497 = vmatpush3.bf16.msra.mxu0 %v8210_v34  ;;  %v3123_v60 = vsel %vm489_vm5, %v3122_v43, %v3121_v51  ;;  %v3141_v43 = vrot.slane %v8670_v47, 3  ;;  %v3447_v49 = vsel %vm492_vm6, %v3446_v36, %v3445_v7  ;;  %v3765_v22 = vrot.slane %v8627_v33, 1 }
 0x311   : > { %7498 = vmatprep.subr.bf16.mxu0 %v7912_v0  ;;  %v3125_v16 = vsel %vm492_vm6, %v3124_v55, %v3123_v60  ;;  %v3463_v60 = vrot.slane %v8670_v47, 5 }
 0x3cf   : > { %v2135_v23 = vpop.f32.mrb[8].mxu1 }
 0x3d0   : > { %v7646_v63 = vadd.f32 %v2135_v23, %v8427_v28  ;;  %v6893_v29 = vpop.f32.mrb[9].mxu1 }
 0x3d1   : > { %v3456_v29 = vrot.slane %v8609_v39, 1 }
 0x3d2   : > { %v8715_v35 = vmax.f32 %v4734_v27, %v7646_v63  ;;  %v4754_v11 = vmax.f32 %v7645_v21, %v7646_v63  ;;  %v3136_v21 = vsel %vm486_vm4, %v3135_v12, %v3134_v14  ;;  %v3127_v27 = vsel %vm495_vm7, %v3126_v41, %v3125_v16 }
 0x3d3   : > { %v3139_v63 = vrot.slane %v8655_v9, 4  ;;  %v3138_v31 = vsel %vm489_vm5, %v3137_v19, %v3136_v21  ;;  %v7511_v37 = vpack.c.bf16 %v3127_v27, %v8691_v5  ;;  %v3457_v5 = vsel %vm483_vm3, %v3456_v29, %v3455_v24 }
 0x3d4   : > { %v3458_v50 = vsel %vm486_vm4, %v8627_v33, %v3457_v5  ;;  %v3761_v41 = vrot.slane %v8591_v25, 3  ;;  %v3773_v21 = vrot.slane %v8600_v26, 6  ;;  %v4081_v27 = vrot.slane %v8580_v18, 6 }
 0x3d5   : > { %v8723_v40 = vpop.f32.mrb[10].mxu1 }
 0x3d6   : > { %v6944_v44 = vpop.f32.mrb[11].mxu1  ;;  %6954 = vmatmul.mubr.msk.f32.vlgmr.msra.gmra.mrb[12].mxu1 %vm606_vm9, %v8723_v40  ;;  %v2636_v42 = vrot.slane %v8723_v40, 2  ;;  %v2710_v57 = vrot.slane %v8723_v40, 4  ;;  %v3459_v40 = vrot.slane %v8644_v4, 7  ;;  %v3775_v18 = vsel %vm477_vm1, %v3774_v10, %v3773_v21 }
 0x3d7   : > { %7479 = vmatpush3.bf16.msra.mxu1 %v8243_v48  ;;  %6964 = vmatprep.mubr.msk.f32.mxu1 %vm7913_vm0, %v7914_v1  ;;  %v3140_v44 = vsel %vm492_vm6, %v3139_v63, %v3138_v31  ;;  %v4091_v10 = vrot.slane %v8655_v9, 1 }
 0x3d8   : > { %v2457_v52 = vpop.f32.mrb[12].mxu0  ;;  %7480 = vmatprep.subr.bf16.mxu1 %v7912_v0  ;;  %v3142_v51 = vsel %vm495_vm7, %v3141_v43, %v3140_v44  ;;  %v4085_v44 = vrot.slane %v8609_v39, 4 }
 0x3d9   : > { %v8739_v56 = vadd.f32 %v2457_v52, %v8427_v28  ;;  %v6935_v2 = vpop.f32.mrb[13].mxu0  ;;  %v3449_v52 = vsel %vm495_vm7, %v3448_v45, %v3447_v49 }
 0x3da   : > { %v7532_v2 = vpack.c.bf16 %v3449_v52, %v3142_v51  ;;  %v3770_v52 = vrot.slane %v8670_v47, 6 }
 0x3db   : > { %v4736_v61 = vmax.f32 %v8715_v35, %v8739_v56  ;;  %v8749_v8 = vmax.f32 %v4754_v11, %v8739_v56  ;;  %7482 = vmatpush3.bf16.msra.mxu1 %v8263_v58  ;;  %v3460_v11 = vsel %vm489_vm5, %v3459_v40, %v3458_v50  ;;  %v8905_v50 = vld [vmem:[%s8070_s15 + $0x58] sm:$0xff] }
 0x3dc   : > { %7483 = vmatprep.subr.bf16.mxu1 %v7912_v0  ;;  %v3462_v12 = vsel %vm492_vm6, %v3461_v53, %v3460_v11  ;;  %v4087_v11 = vrot.slane %v8627_v33, 3 }
 0x3dd   : > { %v8833_v46 = vsel %vm495_vm7, %v3463_v60, %v3462_v12 }
 0x3de   : > { %v2888_v3 = vpop.f32.mrb[14].mxu0  ;;  %6965 = vmatmul.mubr.msk.f32.vlgmr.msra.gmra.mrb[12].mxu1 %vm606_vm9, %v2636_v42  ;;  %v3760_v42 = vsel %vm477_vm1, %v3759_v54, %v3758_v13  ;;  %v3782_v54 = vrot.slane %v8644_v4, 1 }
 0x3df   : > { %6996 = vmatmul.mubr.msk.f32.vlgmr.msra.gmra.mrb[16].mxu0 %vm606_vm9, %v2888_v3  ;;  %7485 = vmatpush3.bf16.msra.mxu1 %v8286_v15  ;;  %v6986_v23 = vpop.f32.mrb[15].mxu0  ;;  %v2966_v38 = vrot.slane %v2888_v3, 2  ;;  %v3040_v55 = vrot.slane %v2888_v3, 4  ;;  %v3762_v3 = vsel %vm480_vm2, %v3761_v41, %v3760_v42  ;;  %v8923_v41 = vld [vmem:[%s8070_s15 + $0x78] sm:$0xff]  ;;  %v4105_v42 = vrot.slane %v8905_v50, 6 }
 0x3e0   : > { %7500 = vmatpush3.bf16.msra.mxu0 %v8243_v48  ;;  %7486 = vmatprep.subr.bf16.mxu1 %v7912_v0  ;;  %v4080_v23 = vrot.slane %v8600_v26, 7  ;;  %v3764_v30 = vsel %vm483_vm3, %v3763_v62, %v3762_v3  ;;  %v4083_v26 = vrot.slane %v8591_v25, 5 }
 0x3e1   : > { %7501 = vmatprep.subr.bf16.mxu0 %v7912_v0  ;;  %7006 = vmatprep.mubr.msk.f32.mxu0 %vm7913_vm0, %v7914_v1  ;;  %v3766_v29 = vsel %vm486_vm4, %v3765_v22, %v3764_v30 }
 0x3e2   : > { %6975 = vmatprep.mubr.msk.f32.mxu1 %vm7913_vm0, %v7914_v1  ;;  %v4082_v31 = vsel %vm477_vm1, %v4081_v27, %v4080_v23  ;;  %v3767_v45 = vsel %vm489_vm5, %v8644_v4, %v3766_v29 }
 0x3e3   : > { %7488 = vmatpush3.bf16.msra.mxu1 %v8320_v6  ;;  %v4084_v5 = vsel %vm480_vm2, %v4083_v26, %v4082_v31  ;;  %v8969_v26 = vld [vmem:[%s8070_s15 + $0xd8] sm:$0xff] }
 0x3e4   : > { %7503 = vmatpush3.bf16.msra.mxu0 %v8263_v58  ;;  %7510 = vmatprep.subr.bf16.mxu1 %v7912_v0  ;;  %v4086_v12 = vsel %vm483_vm3, %v4085_v44, %v4084_v5 }
 0x3e5   : > { %7504 = vmatprep.subr.bf16.mxu0 %v7912_v0 }
 0x3e6   : > { %6976 = vmatmul.mubr.msk.f32.vlgmr.msra.gmra.mrb[12].mxu1 %vm606_vm9, %v2710_v57 }
 0x3e7   : > { %7007 = vmatmul.mubr.msk.f32.vlgmr.msra.gmra.mrb[16].mxu0 %vm606_vm9, %v2966_v38  ;;  %7512 = vmatpush3.bf16.msra.mxu1 %v7511_v37  ;;  %v3778_v37 = vrot.slane %v8609_v39, 3  ;;  %v8886_v38 = vld [vmem:[%s8070_s15 + $0x38] sm:$0xff] }
 0x3e8   : > { %7506 = vmatpush3.bf16.msra.mxu0 %v8286_v15  ;;  %7024 = vmatprep.subr.mxu1 %v7914_v1  ;;  %v4103_v39 = vrot.slane %v8886_v38, 7 }
 0x3e9   : > { %7507 = vmatprep.subr.bf16.mxu0 %v7912_v0  ;;  %7026 = vmatprep.mubr.msk.f32.mxu1 %vm7913_vm0, %v7914_v1 }
 0x3ea   : > { %7017 = vmatprep.mubr.msk.f32.mxu0 %vm7913_vm0, %v7914_v1 }
 0x3eb   : > { %7025 = vmatpush3.msra.mxu1 %v3142_v51  ;;  %v3780_v51 = vrot.slane %v8627_v33, 2 }
 0x3ec   : > { %7509 = vmatpush3.bf16.msra.mxu0 %v8320_v6  ;;  %7027 = vmatmul.mubr.msk.f32.vlgmr.msra.gmra.mrb[14].mxu1 %vm528_vm8, %v8816_v59 }
 0x3ed   : > { %7531 = vmatprep.subr.bf16.mxu0 %v7912_v0  ;;  %7513 = vmatprep.subr.bf16.mxu1 %v7912_v0 }
 0x3ee   : > { %7515 = vmatpush3.bf16.msra.mxu1 %v8203_v32  ;;  %7037 = vmatprep.mubr.msk.f32.mxu1 %vm7913_vm0, %v7914_v1 }
 0x3ef   : > { %7018 = vmatmul.mubr.msk.f32.vlgmr.msra.gmra.mrb[16].mxu0 %vm606_vm9, %v3040_v55  ;;  %7516 = vmatprep.subr.bf16.mxu1 %v7912_v0 }
 0x3f0   : > { %7533 = vmatpush3.bf16.msra.mxu0 %v7532_v2  ;;  %7068 = vmatprep.mubr.msk.f32.mxu0 %vm7913_vm0, %v7914_v1  ;;  %v8914_v2 = vld [vmem:[%s8070_s15 + $0x18] sm:$0xff] }
 0x3f1   : > { %7066 = vmatprep.subr.mxu0 %v7914_v1  ;;  %v4104_v62 = vsel %vm477_vm1, %v4103_v39, %v8914_v2  ;;  %v4410_v5 = vrot.slane %v8914_v2, 1 }
 0x3f2   : > { %7518 = vmatpush3.bf16.msra.mxu1 %v8210_v34  ;;  %v4106_v22 = vsel %vm480_vm2, %v4105_v42, %v4104_v62  ;;  %v4426_v42 = vrot.slane %v8886_v38, 1 }
 0x3f3   : > { %7519 = vmatprep.subr.bf16.mxu1 %v7912_v0  ;;  %v4411_v39 = vsel %vm477_vm1, %v8886_v38, %v4410_v5 }
 0x3f4   : > { %7067 = vmatpush3.msra.mxu0 %v8833_v46 }
 0x3f5   : > { %7069 = vmatmul.mubr.msk.f32.vlgmr.msra.gmra.mrb[18].mxu0 %vm528_vm8, %v8816_v59  ;;  %7534 = vmatprep.subr.bf16.mxu0 %v7912_v0 }
 0x3f6   : > { %7536 = vmatpush3.bf16.msra.mxu0 %v8203_v32  ;;  %7079 = vmatprep.mubr.msk.f32.mxu0 %vm7913_vm0, %v7914_v1 }
 0x3f7   : > { %7537 = vmatprep.subr.bf16.mxu0 %v7912_v0 }
 0x3fa   : > { %7539 = vmatpush3.bf16.msra.mxu0 %v8210_v34 }
 0x3fb   : > { %7540 = vmatprep.subr.bf16.mxu0 %v7912_v0 }
 0x4b9   : > { %v2779_v14 = vpop.f32.mrb[12].mxu1 }
 0x4ba   : > { %v8853_v16 = vadd.f32 %v2779_v14, %v8427_v28  ;;  %v6977_v17 = vpop.f32.mrb[13].mxu1  ;;  %v4089_v14 = vrot.slane %v8644_v4, 2  ;;  %v4107_v4 = vrot.slane %v8923_v41, 5 }
 0x4bc   : > { %v4737_v19 = vmax.f32 %v4736_v61, %v8853_v16  ;;  %v4756_v20 = vmax.f32 %v8749_v8, %v8853_v16  ;;  %v3776_v61 = vrot.slane %v8591_v25, 4  ;;  %v3768_v25 = vrot.slane %v8655_v9, 7 }
 0x4be   : > { %v4743_v63 = vsel %vm4742_vm10, %v4737_v19, -inf  ;;  %v4739_v35 = vsel %vm4738_vm11, %v4737_v19, -inf  ;;  %v4747_v24 = vsel %vm4746_vm12, %v4737_v19, -inf  ;;  %v3777_v43 = vsel %vm480_vm2, %v3776_v61, %v3775_v18  ;;  %v8958_v61 = vld [vmem:[%s8070_s15 + $0xb8] sm:$0xff] }
 0x4bf   : > { %v8870_v56 = vpop.f32.mrb[14].mxu1  ;;  %4744 = vmax.xlane.f32.xlu1 %v4743_v63  ;;  %4740 = vmax.xlane.f32.xlu0 %v4739_v35  ;;  %v3779_v55 = vsel %vm483_vm3, %v3778_v37, %v3777_v43  ;;  %v3769_v60 = vsel %vm492_vm6, %v3768_v25, %v3767_v45  ;;  %v4088_v19 = vsel %vm486_vm4, %v4087_v11, %v4086_v12  ;;  %v3785_v35 = vrot.slane %v8670_v47, 7 }
 0x4c0   : > { %v7028_v8 = vpop.f32.mrb[15].mxu1  ;;  %7038 = vmatmul.mubr.msk.f32.vlgmr.msra.gmra.mrb[16].mxu1 %vm606_vm9, %v8870_v56  ;;  %v3288_v53 = vrot.slane %v8870_v56, 2  ;;  %v3781_v33 = vsel %vm486_vm4, %v3780_v51, %v3779_v55  ;;  %v3771_v3 = vsel %vm495_vm7, %v3770_v52, %v3769_v60  ;;  %v4090_v30 = vsel %vm489_vm5, %v4089_v14, %v4088_v19 }
 0x4c1   : > { %7521 = vmatpush3.bf16.msra.mxu1 %v8243_v48  ;;  %7048 = vmatprep.mubr.msk.f32.mxu1 %vm7913_vm0, %v7914_v1  ;;  %v3783_v21 = vsel %vm489_vm5, %v3782_v54, %v3781_v33  ;;  %v7553_v23 = vpack.c.bf16 %v3771_v3, %v8833_v46  ;;  %v3362_v63 = vrot.slane %v8870_v56, 4  ;;  %v4108_v18 = vsel %vm483_vm3, %v4107_v4, %v4106_v22 }
 0x4c2   : > { %v3109_v36 = vpop.f32.mrb[16].mxu0  ;;  %7522 = vmatprep.subr.bf16.mxu1 %v7912_v0  ;;  %v3784_v46 = vsel %vm492_vm6, %v8655_v9, %v3783_v21  ;;  %v4092_v56 = vsel %vm492_vm6, %v4091_v10, %v4090_v30  ;;  %v4111_v29 = vrot.slane %v8958_v61, 3  ;;  %v4113_v37 = vrot.slane %v8969_v26, 2 }
 0x4c3   : > { %v8890_v7 = vadd.f32 %v3109_v36, %v8427_v28  ;;  %4748 = vmax.xlane.f32.xlu1 %v4747_v24  ;;  %v7019_v57 = vpop.f32.mrb[17].mxu0  ;;  %v3786_v9 = vsel %vm495_vm7, %v3785_v35, %v3784_v46  ;;  %v4093_v36 = vsel %vm495_vm7, %v8670_v47, %v4092_v56  ;;  %v8984_v24 = vld [vmem:[%s8070_s15 + $0xf8] sm:$0xff]  ;;  %v4412_v51 = vrot.slane %v8905_v50, 7 }
 0x4c4   : > { %v7574_v43 = vpack.c.bf16 %v4093_v36, %v3786_v9  ;;  %v4115_v47 = vrot.slane %v8984_v24, 1  ;;  %v4425_v54 = vrot.slane %v8914_v2, 2 }
 0x4c5   : > { %v8898_v49 = vmax.f32 %v4756_v20, %v8890_v7  ;;  %v4771_v40 = vmax.f32 %v8853_v16, %v8890_v7  ;;  %7524 = vmatpush3.bf16.msra.mxu1 %v8263_v58  ;;  %v8941_v20 = vld [vmem:[%s8070_s15 + $0x98] sm:$0xff]  ;;  %v4413_v60 = vsel %vm480_vm2, %v4412_v51, %v4411_v39  ;;  %v4429_v7 = vrot.slane %v8923_v41, 7  ;;  %s7916_s15 = smov 1  }
 0x4c6   : > { %7525 = vmatprep.subr.bf16.mxu1 %v7912_v0  ;;  %v4109_v8 = vrot.slane %v8941_v20, 4  ;;  %v4416_v33 = vrot.slane %v8941_v20, 5 }
 0x4c8   : > { %v8918_v13 = vpop.f32.mrb[18].mxu0  ;;  %7049 = vmatmul.mubr.msk.f32.vlgmr.msra.gmra.mrb[16].mxu1 %vm606_vm9, %v3288_v53  ;;  %v4110_v31 = vsel %vm486_vm4, %v4109_v8, %v4108_v18  ;;  %v4414_v53 = vrot.slane %v8923_v41, 6  ;;  %v4431_v41 = vrot.slane %v8941_v20, 6  ;;  %v4433_v8 = vrot.slane %v8958_v61, 5 }
 0x4c9   : > { %7080 = vmatmul.mubr.msk.f32.vlgmr.msra.gmra.mrb[20].mxu0 %vm606_vm9, %v8918_v13  ;;  %7527 = vmatpush3.bf16.msra.mxu1 %v8286_v15  ;;  %v7070_v17 = vpop.f32.mrb[19].mxu0  ;;  %v3610_v27 = vrot.slane %v8918_v13, 2  ;;  %v3684_v25 = vrot.slane %v8918_v13, 4  ;;  %v4112_v57 = vsel %vm489_vm5, %v4111_v29, %v4110_v31 }
 0x4ca   : > { %7542 = vmatpush3.bf16.msra.mxu0 %v8243_v48  ;;  %7528 = vmatprep.subr.bf16.mxu1 %v7912_v0  ;;  %v4114_v44 = vsel %vm492_vm6, %v4113_v37, %v4112_v57  ;;  %v4415_v14 = vsel %vm483_vm3, %v4414_v53, %v4413_v60  ;;  %v4418_v17 = vrot.slane %v8958_v61, 4  ;;  %v4435_v61 = vrot.slane %v8969_v26, 4 }
 0x4cb   : > { %7543 = vmatprep.subr.bf16.mxu0 %v7912_v0  ;;  %7090 = vmatprep.mubr.msk.f32.mxu0 %vm7913_vm0, %v7914_v1  ;;  %v9005_v45 = vsel %vm495_vm7, %v4115_v47, %v4114_v44  ;;  %v4417_v16 = vsel %vm486_vm4, %v4416_v33, %v4415_v14  ;;  %v4437_v37 = vrot.slane %v8984_v24, 3 }
 0x4cc   : > { %7059 = vmatprep.mubr.msk.f32.mxu1 %vm7913_vm0, %v7914_v1  ;;  %v4419_v21 = vsel %vm489_vm5, %v4418_v17, %v4417_v16 }
 0x4cd   : > { %7530 = vmatpush3.bf16.msra.mxu1 %v8320_v6 }
 0x4ce   : > { %7545 = vmatpush3.bf16.msra.mxu0 %v8263_v58  ;;  %7552 = vmatprep.subr.bf16.mxu1 %v7912_v0 }
 0x4cf   : > { %7546 = vmatprep.subr.bf16.mxu0 %v7912_v0 }
 0x4d0   : > { %7060 = vmatmul.mubr.msk.f32.vlgmr.msra.gmra.mrb[16].mxu1 %vm606_vm9, %v3362_v63 }
 0x4d1   : > { %7091 = vmatmul.mubr.msk.f32.vlgmr.msra.gmra.mrb[20].mxu0 %vm606_vm9, %v3610_v27  ;;  %7554 = vmatpush3.bf16.msra.mxu1 %v7553_v23  ;;  %v4422_v23 = vrot.slane %v8984_v24, 2 }
 0x4d2   : > { %7548 = vmatpush3.bf16.msra.mxu0 %v8286_v15  ;;  %7108 = vmatprep.subr.mxu1 %v7914_v1 }
 0x4d3   : > { %7549 = vmatprep.subr.bf16.mxu0 %v7912_v0  ;;  %7110 = vmatprep.mubr.msk.f32.mxu1 %vm7913_vm0, %v7914_v1 }
 0x4d4   : > { %7101 = vmatprep.mubr.msk.f32.mxu0 %vm7913_vm0, %v7914_v1 }
 0x4d5   : > { %7109 = vmatpush3.msra.mxu1 %v3786_v9 }
 0x4d6   : > { %7551 = vmatpush3.bf16.msra.mxu0 %v8320_v6  ;;  %7111 = vmatmul.mubr.msk.f32.vlgmr.msra.gmra.mrb[18].mxu1 %vm528_vm8, %v8816_v59 }
 0x4d7   : > { %7573 = vmatprep.subr.bf16.mxu0 %v7912_v0  ;;  %7555 = vmatprep.subr.bf16.mxu1 %v7912_v0 }
 0x4d8   : > { %7557 = vmatpush3.bf16.msra.mxu1 %v8203_v32  ;;  %7121 = vmatprep.mubr.msk.f32.mxu1 %vm7913_vm0, %v7914_v1 }
 0x4d9   : > { %7102 = vmatmul.mubr.msk.f32.vlgmr.msra.gmra.mrb[20].mxu0 %vm606_vm9, %v3684_v25  ;;  %7558 = vmatprep.subr.bf16.mxu1 %v7912_v0 }
 0x4da   : > { %7575 = vmatpush3.bf16.msra.mxu0 %v7574_v43  ;;  %7152 = vmatprep.mubr.msk.f32.mxu0 %vm7913_vm0, %v7914_v1 }
 0x4db   : > { %7150 = vmatprep.subr.mxu0 %v7914_v1 }
 0x4dc   : > { %7560 = vmatpush3.bf16.msra.mxu1 %v8210_v34 }
 0x4dd   : > { %7561 = vmatprep.subr.bf16.mxu1 %v7912_v0 }
 0x4de   : > { %7151 = vmatpush3.msra.mxu0 %v9005_v45 }
 0x4df   : > { %7153 = vmatmul.mubr.msk.f32.vlgmr.msra.gmra.mrb[22].mxu0 %vm528_vm8, %v8816_v59  ;;  %7576 = vmatprep.subr.bf16.mxu0 %v7912_v0 }
 0x4e0   : > { %7578 = vmatpush3.bf16.msra.mxu0 %v8203_v32  ;;  %7163 = vmatprep.mubr.msk.f32.mxu0 %vm7913_vm0, %v7914_v1 }
 0x4e1   : > { %7579 = vmatprep.subr.bf16.mxu0 %v7912_v0 }
 0x4e4   : > { %7581 = vmatpush3.bf16.msra.mxu0 %v8210_v34 }
 0x4e5   : > { %7582 = vmatprep.subr.bf16.mxu0 %v7912_v0 }
 0x54c   : > { %v4741_v17 = vpop.xlane.xlu0 %4740 }
 0x5a3   : > { %v3431_v52 = vpop.f32.mrb[16].mxu1 }
 0x5a4   : > { %v7650_v55 = vadd.f32 %v3431_v52, %v8427_v28  ;;  %v7061_v11 = vpop.f32.mrb[17].mxu1 }
 0x5a6   : > { %v4758_v12 = vmax.f32 %v8898_v49, %v7650_v55  ;;  %v9030_v13 = vmax.f32 %v4771_v40, %v7650_v55  ;;  %v4427_v49 = vsel %vm477_vm1, %v4426_v42, %v4425_v54  ;;  %v4420_v40 = vrot.slane %v8969_v26, 3 }
 0x5a7   : > { %v4428_v4 = vsel %vm480_vm2, %v8905_v50, %v4427_v49  ;;  %vm4837_vm1 = vcmask 1041408   ;;  %vm4839_vm2 = vcmask 1043456  }
 0x5a8   : > { %v4430_v30 = vsel %vm483_vm3, %v4429_v7, %v4428_v4  ;;  %v4421_v50 = vsel %vm492_vm6, %v4420_v40, %v4419_v21  ;;  %v4810_v4 = vrot.slane %v7914_v1, 6  ;;  %vm4841_vm3 = vcmask 1045504  }
 0x5a9   : > { %v3854_v62 = vpop.f32.mrb[18].mxu1  ;;  %v4432_v20 = vsel %vm486_vm4, %v4431_v41, %v4430_v30  ;;  %v4423_v18 = vsel %vm495_vm7, %v4422_v23, %v4421_v50  ;;  %vm4851_vm4 = vcmask 146432  }
 0x5aa   : > { %v7112_v3 = vpop.f32.mrb[19].mxu1  ;;  %7122 = vmatmul.mubr.msk.f32.vlgmr.msra.gmra.mrb[20].mxu1 %vm606_vm9, %v3854_v62  ;;  %v3932_v27 = vrot.slane %v3854_v62, 2  ;;  %v4434_v29 = vsel %vm489_vm5, %v4433_v8, %v4432_v20  ;;  %v7595_v9 = vpack.c.bf16 %v4423_v18, %v9005_v45  ;;  %v4006_v36 = vrot.slane %v3854_v62, 4 }
 0x5ab   : > { %7563 = vmatpush3.bf16.msra.mxu1 %v8243_v48  ;;  %7132 = vmatprep.mubr.msk.f32.mxu1 %vm7913_vm0, %v7914_v1  ;;  %v4436_v25 = vsel %vm492_vm6, %v4435_v61, %v4434_v29  ;;  %vm5773_vm5 = vcmask 1042432   ;;  %vm5769_vm6 = vcmask 23552  }
 0x5ac   : > { %v3753_v38 = vpop.f32.mrb[20].mxu0  ;;  %7564 = vmatprep.subr.bf16.mxu1 %v7912_v0  ;;  %v4438_v57 = vsel %vm495_vm7, %v4437_v37, %v4436_v25  ;;  %vm5999_vm7 = vcmask 1040384  }
 0x5ad   : > { %v9047_v2 = vadd.f32 %v3753_v38, %v8427_v28  ;;  %v7103_v19 = vpop.f32.mrb[21].mxu0 }
 0x5af   : > { %v4759_v10 = vmax.f32 %v4758_v12, %v9047_v2  ;;  %v4773_v22 = vmax.f32 %v9030_v13, %v9047_v2  ;;  %7566 = vmatpush3.bf16.msra.mxu1 %v8263_v58 }
 0x5b0   : > { %7567 = vmatprep.subr.bf16.mxu1 %v7912_v0 }
 0x5b1   : > { %v4760_v63 = vsel %vm4738_vm11, %v4759_v10, -inf  ;;  %v4763_v56 = vsel %vm4742_vm10, %v4759_v10, -inf  ;;  %v4766_v26 = vsel %vm4746_vm12, %v4759_v10, -inf }
 0x5b2   : > { %v4184_v35 = vpop.f32.mrb[22].mxu0  ;;  %4761 = vmax.xlane.f32.xlu1 %v4760_v63  ;;  %7133 = vmatmul.mubr.msk.f32.vlgmr.msra.gmra.mrb[20].mxu1 %vm606_vm9, %v3932_v27 }
 0x5b3   : > { %7164 = vmatmul.mubr.msk.f32.vlgmr.msra.gmra.mrb[24].mxu0 %vm606_vm9, %v4184_v35  ;;  %7569 = vmatpush3.bf16.msra.mxu1 %v8286_v15  ;;  %v7154_v46 = vpop.f32.mrb[23].mxu0  ;;  %v4262_v31 = vrot.slane %v4184_v35, 2  ;;  %v4336_v24 = vrot.slane %v4184_v35, 4 }
 0x5b4   : > { %7584 = vmatpush3.bf16.msra.mxu0 %v8243_v48  ;;  %7570 = vmatprep.subr.bf16.mxu1 %v7912_v0 }
 0x5b5   : > { %7585 = vmatprep.subr.bf16.mxu0 %v7912_v0  ;;  %7174 = vmatprep.mubr.msk.f32.mxu0 %vm7913_vm0, %v7914_v1 }
 0x5b6   : > { %4764 = vmax.xlane.f32.xlu1 %v4763_v56  ;;  %7143 = vmatprep.mubr.msk.f32.mxu1 %vm7913_vm0, %v7914_v1 }
 0x5b7   : > { %7572 = vmatpush3.bf16.msra.mxu1 %v8320_v6 }
 0x5b8   : > { %7587 = vmatpush3.bf16.msra.mxu0 %v8263_v58  ;;  %7594 = vmatprep.subr.bf16.mxu1 %v7912_v0 }
 0x5b9   : > { %7588 = vmatprep.subr.bf16.mxu0 %v7912_v0 }
 0x5ba   : > { %4767 = vmax.xlane.f32.xlu1 %v4766_v26  ;;  %7144 = vmatmul.mubr.msk.f32.vlgmr.msra.gmra.mrb[20].mxu1 %vm606_vm9, %v4006_v36  ;;  %v5046_v36 = vrot.slane %v7914_v1, 2 }
 0x5bb   : > { %7175 = vmatmul.mubr.msk.f32.vlgmr.msra.gmra.mrb[24].mxu0 %vm606_vm9, %v4262_v31  ;;  %7596 = vmatpush3.bf16.msra.mxu1 %v7595_v9 }
 0x5bc   : > { %7590 = vmatpush3.bf16.msra.mxu0 %v8286_v15  ;;  %7192 = vmatprep.subr.mxu1 %v7914_v1 }
 0x5bd   : > { %7591 = vmatprep.subr.bf16.mxu0 %v7912_v0  ;;  %7194 = vmatprep.mubr.msk.f32.mxu1 %vm7913_vm0, %v7914_v1 }
 0x5be   : > { %7185 = vmatprep.mubr.msk.f32.mxu0 %vm7913_vm0, %v7914_v1 }
 0x5bf   : > { %7193 = vmatpush3.msra.mxu1 %v4438_v57 }
 0x5c0   : > { %7593 = vmatpush3.bf16.msra.mxu0 %v8320_v6  ;;  %7195 = vmatmul.mubr.msk.f32.vlgmr.msra.gmra.mrb[22].mxu1 %vm528_vm8, %v8816_v59  ;;  %v4745_v59 = vpop.xlane.xlu1 %4744 }
 0x5c1   : > { %7597 = vmatprep.subr.bf16.mxu1 %v7912_v0  ;;  %7205 = vmatprep.mubr.msk.f32.mxu1 %vm7913_vm0, %v7914_v1  ;;  %v4751_v3 = vsel %vm4750_vm13, %v4741_v17, %v4745_v59 }
 0x5c2   : > { %7599 = vmatpush3.bf16.msra.mxu1 %v8203_v32  ;;  %7615 = vmatprep.subr.bf16.mxu0 %v7912_v0 }
 0x5c3   : > { %7186 = vmatmul.mubr.msk.f32.vlgmr.msra.gmra.mrb[24].mxu0 %vm606_vm9, %v4336_v24  ;;  %7600 = vmatprep.subr.bf16.mxu1 %v7912_v0 }
 0x5c4   : > { %7236 = vmatprep.mubr.msk.f32.mxu0 %vm7913_vm0, %v7914_v1  ;;  %v4749_v43 = vpop.xlane.xlu1 %4748 }
 0x5c5   : > { %v4753_v49 = vsel %vm4752_vm14, %v4751_v3, %v4749_v43  ;;  %v4788_v3 = vld [vmem:[%s9443_s4] sm:$0x3] }
 0x5c6   : > { %7602 = vmatpush3.bf16.msra.mxu1 %v8210_v34 }
 0x5c7   : > { %7603 = vmatprep.subr.bf16.mxu1 %v7912_v0 }
 0x63f   : > { %v4762_v47 = vpop.xlane.xlu1 %4761 }
 0x643   : > { %v4765_v44 = vpop.xlane.xlu1 %4764 }
 0x644   : > { %v4769_v32 = vsel %vm4750_vm13, %v4762_v47, %v4765_v44 }
 0x647   : > { %v4768_v45 = vpop.xlane.xlu1 %4767 }
 0x648   : > { %v4770_v5 = vsel %vm4752_vm14, %v4769_v32, %v4768_v45 }
 0x649   : > { %4798 = vrot.lane.b32.xlu0 %v4770_v5, %s7916_s15 }
 0x68d   : > { %v4075_v51 = vpop.f32.mrb[20].mxu1 }
 0x68e   : > { %v7652_v39 = vadd.f32 %v4075_v51, %v8427_v28  ;;  %v7145_v34 = vpop.f32.mrb[21].mxu1 }
 0x690   : > { %v4774_v52 = vmax.f32 %v4773_v22, %v7652_v39  ;;  %v9149_v22 = vrot.slane %v7914_v1, 4 }
 0x693   : > { %v4506_v53 = vpop.f32.mrb[22].mxu1 }
 0x694   : > { %v7196_v55 = vpop.f32.mrb[23].mxu1  ;;  %7206 = vmatmul.mubr.msk.f32.vlgmr.msra.gmra.mrb[24].mxu1 %vm606_vm9, %v4506_v53  ;;  %v4584_v13 = vrot.slane %v4506_v53, 2 }
 0x695   : > { %7605 = vmatpush3.bf16.msra.mxu1 %v8243_v48  ;;  %7216 = vmatprep.mubr.msk.f32.mxu1 %vm7913_vm0, %v7914_v1  ;;  %v4658_v48 = vrot.slane %v4506_v53, 4 }
 0x696   : > { %v4405_v11 = vpop.f32.mrb[24].mxu0  ;;  %7606 = vmatprep.subr.bf16.mxu1 %v7912_v0 }
 0x697   : > { %v7653_v60 = vadd.f32 %v4405_v11, %v8427_v28  ;;  %v7187_v12 = vpop.f32.mrb[25].mxu0 }
 0x699   : > { %v4775_v54 = vmax.f32 %v4774_v52, %v7653_v60  ;;  %7608 = vmatpush3.bf16.msra.mxu1 %v8263_v58  ;;  %v4789_v60 = vld [vmem:[%s9444_s5] sm:$0x3] }
 0x69a   : > { %7609 = vmatprep.subr.bf16.mxu1 %v7912_v0 }
 0x69c   : > { %7217 = vmatmul.mubr.msk.f32.vlgmr.msra.gmra.mrb[24].mxu1 %vm606_vm9, %v4584_v13 }
 0x69d   : > { %7611 = vmatpush3.bf16.msra.mxu1 %v8286_v15  ;;  %7227 = vmatprep.mubr.msk.f32.mxu1 %vm7913_vm0, %v7914_v1 }
 0x69e   : > { %7612 = vmatprep.subr.bf16.mxu1 %v7912_v0 }
 0x6a1   : > { %7614 = vmatpush3.bf16.msra.mxu1 %v8320_v6 }
 0x6a2   : > { %7627 = vmatprep.subr.bf16.mxu1 %v7912_v0 }
 0x6a4   : > { %7228 = vmatmul.mubr.msk.f32.vlgmr.msra.gmra.mrb[24].mxu1 %vm606_vm9, %v4658_v48 }
 0x6a5   : > { %7272 = vmatprep.mubr.msk.f32.mxu1 %vm7913_vm0, %v7914_v1 }
 0x6bb   : > { %v4799_v38 = vpop.permute.xlu0 %4798 }
 0x6bc   : > { %v4801_v19 = vsel %vm4750_vm13, 0.0, %v4799_v38 }
 0x6bd   : > { %v9152_v41 = vsel %vm4795_vm15, %v4801_v19, 0.0 }
 0x6be   : > { %v4831_v63 = vrot.slane %v9152_v41, 2  ;;  %v4939_v20 = vrot.slane %v9152_v41, 6  ;;  %v4829_v45 = vrot.slane %v9152_v41, 4 }
 0x777   : > { %v4727_v58 = vpop.f32.mrb[24].mxu1 }
 0x778   : > { %v7654_v42 = vadd.f32 %v4727_v58, %v8427_v28  ;;  %v7229_v33 = vpop.f32.mrb[25].mxu1 }
 0x77a   : > { %v4776_v15 = vmax.f32 %v4775_v54, %v7654_v42 }
 0x77c   : > { %v4777_v14 = vsel %vm4738_vm11, %v4776_v15, -inf  ;;  %v4780_v62 = vsel %vm4742_vm10, %v4776_v15, -inf  ;;  %v4783_v6 = vsel %vm4746_vm12, %v4776_v15, -inf }
 0x77d   : > { %4778 = vmax.xlane.f32.xlu1 %v4777_v14 }
 0x781   : > { %4781 = vmax.xlane.f32.xlu1 %v4780_v62 }
 0x785   : > { %4784 = vmax.xlane.f32.xlu1 %v4783_v6 }
 0x796   : > { %4791 = vrot.lane.b32.xlu1 %v4753_v49, %s7916_s15 }
 0x80a   : > { %v4779_v16 = vpop.xlane.xlu1 %4778 }
 0x80e   : > { %v4782_v28 = vpop.xlane.xlu1 %4781 }
 0x80f   : > { %v4786_v7 = vsel %vm4750_vm13, %v4779_v16, %v4782_v28 }
 0x812   : > { %v4785_v40 = vpop.xlane.xlu1 %4784 }
 0x813   : > { %v4787_v2 = vsel %vm4752_vm14, %v4786_v7, %v4785_v40 }
 0x814   : > { %4804 = vrot.lane.b32.xlu1 %v4787_v2, %s7916_s15 }
 0x816   : > { %v4792_v21 = vpop.permute.xlu1 %4791 }
 0x817   : > { %v4794_v10 = vsel %vm4750_vm13, 0.0, %v4792_v21 }
 0x818   : > { %v4796_v23 = vsel %vm4795_vm15, %v4794_v10, 0.0 }
 0x819   : > { %v7756_v27 = vpack.i.bf16 %v4796_v23, %v4810_v4  ;;  %v4824_v30 = vrot.slane %v4796_v23, 6  ;;  %v4931_v8 = vrot.slane %v4796_v23, 4  ;;  %v4819_v44 = vrot.slane %v4796_v23, 2 }
 0x81b   : > { %7757 = vrot.lane.b32.xlu1 %v7756_v27, %s7917_s17  ;;  %v7761_v50 = vpack.i.bf16 %v9149_v22, %v4824_v30  ;;  %v7766_v35 = vpack.i.bf16 %v4824_v30, %v4831_v63  ;;  %v7771_v46 = vpack.i.bf16 %v4931_v8, %v4939_v20 }
 0x81d   : > { %7762 = vrot.lane.b32.xlu0 %v7761_v50, %s7918_s28 }
 0x81f   : > { %7767 = vrot.lane.b32.xlu1 %v7766_v35, %s7917_s17 }
 0x823   : > { %7772 = vrot.lane.b32.xlu1 %v7771_v46, %s7918_s28 }
 0x886   : > { %v4805_v18 = vpop.permute.xlu1 %4804 }
 0x887   : > { %v4807_v56 = vsel %vm4750_vm13, 0.0, %v4805_v18 }
 0x888   : > { %v9166_v61 = vsel %vm4795_vm15, %v4807_v56, 0.0 }
 0x889   : > { %v7781_v29 = vpack.i.bf16 %v9166_v61, %v4939_v20  ;;  %v4946_v9 = vrot.slane %v9166_v61, 2  ;;  %v5041_v57 = vrot.slane %v9166_v61, 6  ;;  %v4944_v15 = vrot.slane %v9166_v61, 4 }
 0x88b   : > { %7782 = vrot.lane.b32.xlu1 %v7781_v29, %s7917_s17  ;;  %v7776_v31 = vpack.i.bf16 %v4946_v9, %v9152_v41  ;;  %v7786_v34 = vpack.i.bf16 %v4829_v45, %v5041_v57 }
 0x88d   : > { %7777 = vrot.lane.b32.xlu0 %v7776_v31, %s7917_s17  ;;  %v7758_v37 = vpop.permute.xlu1 %7757 }
 0x88e   : > { %v7759_v26 = vunpack.i.l.bf16 %v7758_v37  ;;  %v7760_v24 = vunpack.i.h.bf16 %v7758_v37 }
 0x88f   : > { %v7763_v25 = vpop.permute.xlu0 %7762  ;;  %5047 = vrot.lane.b32.xlu1 %v5046_v36, %s7917_s17 }
 0x890   : > { %v4838_v59 = vsel %vm4837_vm1, 0.0, %v7759_v26  ;;  %v7765_v43 = vunpack.i.h.bf16 %v7763_v25  ;;  %v7764_v47 = vunpack.i.l.bf16 %v7763_v25 }
 0x891   : > { %4835 = vrot.lane.b32.xlu0 %v9152_v41, %s7918_s28  ;;  %v7768_v32 = vpop.permute.xlu1 %7767 }
 0x892   : > { %v9183_v5 = vsel %vm4839_vm2, %v4838_v59, %v7765_v43  ;;  %v4843_v51 = vsel %vm4837_vm1, %v7760_v24, %v7764_v47  ;;  %v7769_v39 = vunpack.i.l.bf16 %v7768_v32  ;;  %v7770_v54 = vunpack.i.h.bf16 %v7768_v32 }
 0x893   : > { %v4844_v52 = vsel %vm4839_vm2, %v4843_v51, %v4829_v45  ;;  %v4842_v53 = vsel %vm4841_vm3, %v9183_v5, %v4819_v44  ;;  %5050 = vrot.lane.b32.xlu1 %v7914_v1, %s7918_s28 }
 0x894   : > { %v4845_v55 = vsel %vm4841_vm3, %v4844_v52, %v7769_v39  ;;  %v4952_v58 = vsel %vm4837_vm1, %v4796_v23, %v7770_v54 }
 0x895   : > { %7787 = vrot.lane.b32.xlu0 %v7786_v34, %s7918_s28  ;;  %v7616_v11 = vpack.c.bf16 %v4845_v55, %v4842_v53  ;;  %v7773_v12 = vpop.permute.xlu1 %7772 }
 0x896   : > { %v7775_v13 = vunpack.i.h.bf16 %v7773_v12  ;;  %v7774_v42 = vunpack.i.l.bf16 %v7773_v12 }
 0x897   : > { %7617 = vmatpush3.bf16.msra.mxu0 %v7616_v11 }
 0x898   : > { %7234 = vmatprep.subr.mxu0 %v7914_v1  ;;  %v4953_v14 = vsel %vm4839_vm2, %v4952_v58, %v7775_v13 }
 0x899   : > { %4950 = vrot.lane.b32.xlu0 %v9166_v61, %s7918_s28  ;;  %v4954_v28 = vsel %vm4841_vm3, %v4953_v14, %v4831_v63 }
 0x89d   : > { %4848 = vperm.xlu0 %7755, %v4789_v60  }
 0x8fd   : > { %v7783_v62 = vpop.permute.xlu1 %7782 }
 0x8fe   : > { %v7784_v7 = vunpack.i.l.bf16 %v7783_v62  ;;  %v7785_v19 = vunpack.i.h.bf16 %v7783_v62 }
 0x8ff   : > { %v7778_v48 = vpop.permute.xlu0 %7777 }
 0x900   : > { %v7779_v33 = vunpack.i.l.bf16 %v7778_v48  ;;  %v7780_v6 = vunpack.i.h.bf16 %v7778_v48  ;;  %v5052_v10 = vsel %vm4837_vm1, %v9152_v41, %v7784_v7 }
 0x901   : > { %v9219_v23 = vpop.permute.xlu1 %5047 }
 0x902   : > { %v4955_v17 = vsel %vm4837_vm1, %v7779_v33, %v7774_v42 }
 0x903   : > { %v4956_v49 = vsel %vm4839_vm2, %v4955_v17, %v4944_v15  ;;  %v4836_v16 = vpop.permute.xlu0 %4835  ;;  %v5132_v15 = vld [vmem:[%s9446_s7] sm:$0x3] }
 0x904   : > { %v4957_v38 = vsel %vm4841_vm3, %v4956_v49, %v7780_v6  ;;  %7235 = vmatpush3.msk.msra.mxu0 %vm4837_vm1, %v4836_v16 }
 0x905   : > { %v7619_v40 = vpack.c.bf16 %v4957_v38, %v4954_v28  ;;  %7237 = vmatmul.mubr.msk.f32.vlgmr.msra.gmra.mrb[26].mxu0 %vm4851_vm4, %v4788_v3  ;;  %7618 = vmatprep.subr.bf16.mxu0 %v7912_v0  ;;  %v9235_v20 = vpop.permute.xlu1 %5050 }
 0x906   : > { %7245 = vmatprep.mubr.msk.f32.mxu0 %vm7913_vm0, %v7914_v1 }
 0x907   : > { %v7788_v2 = vpop.permute.xlu0 %7787  ;;  %7620 = vmatpush3.bf16.msra.mxu0 %v7619_v40 }
 0x908   : > { %v7790_v4 = vunpack.i.h.bf16 %v7788_v2  ;;  %v7789_v21 = vunpack.i.l.bf16 %v7788_v2  ;;  %7243 = vmatprep.subr.mxu0 %v7914_v1 }
 0x90a   : > { %v5053_v27 = vsel %vm4839_vm2, %v5052_v10, %v7790_v4  ;;  %v5055_v30 = vsel %vm4837_vm1, %v7785_v19, %v7789_v21 }
 0x90b   : > { %v4951_v50 = vpop.permute.xlu0 %4950  ;;  %v5054_v63 = vsel %vm4841_vm3, %v5053_v27, %v4946_v9  ;;  %v5056_v35 = vsel %vm4839_vm2, %v5055_v30, %v9149_v22 }
 0x90c   : > { %v5057_v8 = vsel %vm4841_vm3, %v5056_v35, %v9219_v23  ;;  %7244 = vmatpush3.msk.msra.mxu0 %vm4837_vm1, %v4951_v50 }
 0x90d   : > { %v7622_v41 = vpack.c.bf16 %v5057_v8, %v5054_v63  ;;  %7246 = vmatmul.mubr.msk.f32.vlgmr.msra.gmra.mrb[28].mxu0 %vm4851_vm4, %v4788_v3  ;;  %7621 = vmatprep.subr.bf16.mxu0 %v7912_v0 }
 0x90e   : > { %7254 = vmatprep.mubr.msk.f32.mxu0 %vm7913_vm0, %v7914_v1 }
 0x90f   : > { %7623 = vmatpush3.bf16.msra.mxu0 %v7622_v41 }
 0x910   : > { %7252 = vmatprep.subr.mxu0 %v7914_v1 }
 0x913   : > { %7253 = vmatpush3.msk.msra.mxu0 %vm4837_vm1, %v9235_v20 }
 0x914   : > { %7255 = vmatmul.mubr.msk.f32.vlgmr.msra.gmra.mrb[30].mxu0 %vm4851_vm4, %v4788_v3  ;;  %7624 = vmatprep.subr.bf16.mxu0 %v7912_v0 }
 0x915   : > { %7263 = vmatprep.mubr.msk.f32.mxu0 %vm7913_vm0, %v7914_v1 }
 0x91c   : > { %v4849_v46 = vpop.permute.xlu0 %4848 }
 0x9d8   : > { %v4923_v18 = vpop.f32.mrb[26].mxu0 }
 0x9d9   : > { %v4924_v56 = vadd.f32 %v4923_v18, %v4849_v46  ;;  %v7238_v61 = vpop.f32.mrb[27].mxu0 }
 0x9db   : > { %v4927_v29 = vmax.f32 %v4924_v56, 0.0 }
 0x9dd   : > { %5134 = vrot.lane.b32.xlu1 %v4927_v29, %s7916_s15 }
 0x9e0   : > { %v5026_v9 = vpop.f32.mrb[28].mxu0 }
 0x9e1   : > { %v5027_v31 = vadd.f32 %v5026_v9, %v4849_v46  ;;  %v7247_v36 = vpop.f32.mrb[29].mxu0 }
 0x9e3   : > { %v5030_v37 = vmax.f32 %v5027_v31, 0.0 }
 0x9e5   : > { %5140 = vrot.lane.b32.xlu0 %v5030_v37, %s7916_s15 }
 0x9e7   : > { %v5126_v26 = vpop.f32.mrb[30].mxu0 }
 0x9e8   : > { %v5127_v25 = vadd.f32 %v5126_v26, %v4849_v46  ;;  %v7256_v57 = vpop.f32.mrb[31].mxu0  ;;  %v5131_v26 = vld [vmem:[%s9445_s6] sm:$0x3] }
 0x9ea   : > { %v5130_v24 = vmax.f32 %v5127_v25, 0.0 }
 0x9ec   : > { %5146 = vrot.lane.b32.xlu1 %v5130_v24, %s7916_s15 }
 0xa4f   : > { %v5135_v59 = vpop.permute.xlu1 %5134 }
 0xa50   : > { %v5137_v43 = vsel %vm4750_vm13, 0.0, %v5135_v59 }
 0xa51   : > { %v5138_v47 = vsel %vm4795_vm15, %v5137_v43, 0.0 }
 0xa52   : > { %v5157_v45 = vrot.slane %v5138_v47, 6  ;;  %v5258_v54 = vrot.slane %v5138_v47, 4  ;;  %v5152_v49 = vrot.slane %v5138_v47, 2 }
 0xa54   : > { %v5170_v27 = vsel %vm4841_vm3, %v9183_v5, %v5152_v49 }
 0xa57   : > { %v5141_v44 = vpop.permute.xlu0 %5140 }
 0xa58   : > { %v5143_v32 = vsel %vm4750_vm13, 0.0, %v5141_v44 }
 0xa59   : > { %v5144_v51 = vsel %vm4795_vm15, %v5143_v32, 0.0 }
 0xa5a   : > { %v7791_v39 = vpack.i.bf16 %v5144_v51, %v5157_v45  ;;  %v5266_v34 = vrot.slane %v5144_v51, 6  ;;  %v5164_v52 = vrot.slane %v5144_v51, 2  ;;  %v5162_v42 = vrot.slane %v5144_v51, 4 }
 0xa5c   : > { %7792 = vrot.lane.b32.xlu0 %v7791_v39, %s7917_s17  ;;  %v7801_v53 = vpack.i.bf16 %v5266_v34, %v5157_v45  ;;  %v7796_v11 = vpack.i.bf16 %v5164_v52, %v5138_v47 }
 0xa5e   : > { %7802 = vrot.lane.b32.xlu1 %v7801_v53, %s7918_s28  ;;  %v5147_v55 = vpop.permute.xlu1 %5146 }
 0xa5f   : > { %v5149_v60 = vsel %vm4750_vm13, 0.0, %v5147_v55 }
 0xa60   : > { %v9255_v12 = vsel %vm4795_vm15, %v5149_v60, 0.0  ;;  %7797 = vrot.lane.b32.xlu0 %v7796_v11, %s7917_s17 }
 0xa61   : > { %v5273_v13 = vrot.slane %v9255_v12, 2  ;;  %v5368_v58 = vrot.slane %v9255_v12, 6  ;;  %v5271_v10 = vrot.slane %v9255_v12, 4 }
 0xa62   : > { %5259 = vrot.lane.b32.xlu1 %v5258_v54, %s7918_s28 }
 0xa63   : > { %v7806_v48 = vpack.i.bf16 %v5266_v34, %v5273_v13  ;;  %v7811_v33 = vpack.i.bf16 %v5162_v42, %v5368_v58 }
 0xa65   : > { %7807 = vrot.lane.b32.xlu0 %v7806_v48, %s7917_s17 }
 0xa66   : > { %5365 = vrot.lane.b32.xlu1 %v9255_v12, %s7917_s17 }
 0xa69   : > { %7812 = vrot.lane.b32.xlu0 %v7811_v33, %s7918_s28 }
 0xa6a   : > { %5168 = vrot.lane.b32.xlu1 %v5144_v51, %s7918_s28 }
 0xa6d   : > { %5277 = vrot.lane.b32.xlu0 %v9255_v12, %s7918_s28 }
 0xa6e   : > { %5176 = vperm.xlu1 %7816, %v5132_v15  }
 0xace   : > { %v7793_v14 = vpop.permute.xlu0 %7792 }
 0xacf   : > { %v7794_v6 = vunpack.i.l.bf16 %v7793_v14  ;;  %v7795_v38 = vunpack.i.h.bf16 %v7793_v14 }
 0xad0   : > { %v7803_v62 = vpop.permute.xlu1 %7802 }
 0xad1   : > { %v7805_v17 = vunpack.i.h.bf16 %v7803_v62  ;;  %v7804_v16 = vunpack.i.l.bf16 %v7803_v62  ;;  %v5279_v21 = vsel %vm4837_vm1, %v5138_v47, %v7794_v6 }
 0xad2   : > { %v7798_v3 = vpop.permute.xlu0 %7797 }
 0xad3   : > { %v7799_v28 = vunpack.i.l.bf16 %v7798_v3  ;;  %v7800_v40 = vunpack.i.h.bf16 %v7798_v3  ;;  %v5282_v19 = vsel %vm4837_vm1, %v7795_v38, %v7805_v17 }
 0xad4   : > { %v5260_v7 = vpop.permute.xlu1 %5259  ;;  %v5283_v18 = vsel %vm4839_vm2, %v5282_v19, %v5271_v10 }
 0xad5   : > { %v5171_v2 = vsel %vm4837_vm1, %v7799_v28, %v7804_v16  ;;  %v5280_v50 = vsel %vm4839_vm2, %v5279_v21, %v5260_v7 }
 0xad6   : > { %v5172_v4 = vsel %vm4839_vm2, %v5171_v2, %v5162_v42  ;;  %v5281_v56 = vsel %vm4841_vm3, %v5280_v50, %v5164_v52 }
 0xad7   : > { %v5173_v30 = vsel %vm4841_vm3, %v5172_v4, %v7800_v40  ;;  %v7808_v63 = vpop.permute.xlu0 %7807 }
 0xad8   : > { %v7625_v35 = vpack.c.bf16 %v5173_v30, %v5170_v27  ;;  %v7809_v8 = vunpack.i.l.bf16 %v7808_v63  ;;  %v5366_v41 = vpop.permute.xlu1 %5365  ;;  %v7810_v46 = vunpack.i.h.bf16 %v7808_v63  ;;  %v5450_v30 = vld [vmem:[%s9448_s9] sm:$0x3] }
 0xada   : > { %v5284_v61 = vsel %vm4841_vm3, %v5283_v18, %v7809_v8  ;;  %7626 = vmatpush3.bf16.msra.mxu0 %v7625_v35  ;;  %v5372_v25 = vsel %vm4837_vm1, %v5144_v51, %v7810_v46 }
 0xadb   : > { %v7628_v29 = vpack.c.bf16 %v5284_v61, %v5281_v56  ;;  %v7813_v9 = vpop.permute.xlu0 %7812  ;;  %7261 = vmatprep.subr.mxu0 %v7914_v1 }
 0xadc   : > { %v7815_v31 = vunpack.i.h.bf16 %v7813_v9  ;;  %v7814_v36 = vunpack.i.l.bf16 %v7813_v9  ;;  %v5169_v37 = vpop.permute.xlu1 %5168 }
 0xadd   : > { %7629 = vmatpush3.bf16.msra.mxu1 %v7628_v29 }
 0xade   : > { %v5373_v57 = vsel %vm4839_vm2, %v5372_v25, %v7815_v31  ;;  %v5375_v24 = vsel %vm4837_vm1, %v5366_v41, %v7814_v36  ;;  %7262 = vmatpush3.msk.msra.mxu0 %vm4837_vm1, %v5169_v37  ;;  %7270 = vmatprep.subr.mxu1 %v7914_v1 }
 0xadf   : > { %v5376_v59 = vsel %vm4839_vm2, %v5375_v24, %v9149_v22  ;;  %v5278_v43 = vpop.permute.xlu0 %5277  ;;  %7264 = vmatmul.mubr.msk.f32.vlgmr.msra.gmra.mrb[32].mxu0 %vm4851_vm4, %v5131_v26  ;;  %7630 = vmatprep.subr.bf16.mxu0 %v7912_v0  ;;  %v5374_v47 = vsel %vm4841_vm3, %v5373_v57, %v5273_v13 }
 0xae0   : > { %v5377_v44 = vsel %vm4841_vm3, %v5376_v59, %v9219_v23  ;;  %7281 = vmatprep.mubr.msk.f32.mxu0 %vm7913_vm0, %v7914_v1 }
 0xae1   : > { %7271 = vmatpush3.msk.msra.mxu1 %vm4837_vm1, %v5278_v43  ;;  %v7631_v32 = vpack.c.bf16 %v5377_v44, %v5374_v47 }
 0xae2   : > { %7273 = vmatmul.mubr.msk.f32.vlgmr.msra.gmra.mrb[26].mxu1 %vm4851_vm4, %v5131_v26  ;;  %7633 = vmatprep.subr.bf16.mxu1 %v7912_v0 }
 0xae3   : > { %7632 = vmatpush3.bf16.msra.mxu0 %v7631_v32  ;;  %7290 = vmatprep.mubr.msk.f32.mxu1 %vm7913_vm0, %v7914_v1 }
 0xae4   : > { %7279 = vmatprep.subr.mxu0 %v7914_v1 }
 0xae7   : > { %7280 = vmatpush3.msk.msra.mxu0 %vm4837_vm1, %v9235_v20 }
 0xae8   : > { %7282 = vmatmul.mubr.msk.f32.vlgmr.msra.gmra.mrb[34].mxu0 %vm4851_vm4, %v5131_v26  ;;  %7636 = vmatprep.subr.bf16.mxu0 %v7912_v0 }
 0xae9   : > { %7299 = vmatprep.mubr.msk.f32.mxu0 %vm7913_vm0, %v7914_v1 }
 0xaed   : > { %v5177_v45 = vpop.permute.xlu1 %5176 }
 0xbb2   : > { %v5250_v51 = vpop.f32.mrb[32].mxu0 }
 0xbb3   : > { %v5251_v39 = vadd.f32 %v5250_v51, %v5177_v45  ;;  %v7265_v34 = vpop.f32.mrb[33].mxu0 }
 0xbb5   : > { %v5254_v52 = vmax.f32 %v5251_v39, 0.0  ;;  %v5353_v53 = vpop.f32.mrb[26].mxu1 }
 0xbb6   : > { %v5354_v55 = vadd.f32 %v5353_v53, %v5177_v45  ;;  %v7274_v11 = vpop.f32.mrb[27].mxu1 }
 0xbb7   : > { %5452 = vrot.lane.b32.xlu0 %v5254_v52, %s7916_s15 }
 0xbb8   : > { %v5357_v60 = vmax.f32 %v5354_v55, 0.0 }
 0xbba   : > { %5458 = vrot.lane.b32.xlu1 %v5357_v60, %s7916_s15 }
 0xbbb   : > { %v5444_v12 = vpop.f32.mrb[34].mxu0 }
 0xbbc   : > { %v5445_v54 = vadd.f32 %v5444_v12, %v5177_v45  ;;  %v7283_v13 = vpop.f32.mrb[35].mxu0 }
 0xbbe   : > { %v5448_v48 = vmax.f32 %v5445_v54, 0.0 }
 0xbc0   : > { %5464 = vrot.lane.b32.xlu0 %v5448_v48, %s7916_s15  ;;  %v5449_v48 = vld [vmem:[%s9447_s8] sm:$0x3] }
 0xc29   : > { %v5453_v58 = vpop.permute.xlu0 %5452 }
 0xc2a   : > { %v5455_v42 = vsel %vm4750_vm13, 0.0, %v5453_v58 }
 0xc2b   : > { %v5456_v33 = vsel %vm4795_vm15, %v5455_v42, 0.0 }
 0xc2c   : > { %v5459_v15 = vpop.permute.xlu1 %5458  ;;  %v5475_v14 = vrot.slane %v5456_v33, 6  ;;  %v5575_v2 = vrot.slane %v5456_v33, 4  ;;  %v5470_v35 = vrot.slane %v5456_v33, 2 }
 0xc2d   : > { %v5461_v62 = vsel %vm4750_vm13, 0.0, %v5459_v15 }
 0xc2e   : > { %v5462_v6 = vsel %vm4795_vm15, %v5461_v62, 0.0  ;;  %v5488_v31 = vsel %vm4841_vm3, %v9183_v5, %v5470_v35 }
 0xc2f   : > { %v7817_v17 = vpack.i.bf16 %v5462_v6, %v5475_v14  ;;  %v5583_v3 = vrot.slane %v5462_v6, 6  ;;  %v5482_v49 = vrot.slane %v5462_v6, 2  ;;  %v5480_v10 = vrot.slane %v5462_v6, 4 }
 0xc31   : > { %7818 = vrot.lane.b32.xlu1 %v7817_v17, %s7917_s17  ;;  %v7827_v16 = vpack.i.bf16 %v5583_v3, %v5475_v14  ;;  %v7822_v7 = vpack.i.bf16 %v5482_v49, %v5456_v33 }
 0xc32   : > { %v5465_v28 = vpop.permute.xlu0 %5464 }
 0xc33   : > { %v5467_v38 = vsel %vm4750_vm13, 0.0, %v5465_v28  ;;  %7828 = vrot.lane.b32.xlu0 %v7827_v16, %s7918_s28  ;;  %v5765_v28 = vld [vmem:[%s9450_s11] sm:$0xff] }
 0xc34   : > { %v5468_v40 = vsel %vm4795_vm15, %v5467_v38, 0.0 }
 0xc35   : > { %7823 = vrot.lane.b32.xlu1 %v7822_v7, %s7917_s17  ;;  %v5684_v19 = vrot.slane %v5468_v40, 6  ;;  %v7832_v4 = vpack.i.bf16 %v5468_v40, %v5583_v3  ;;  %v5590_v27 = vrot.slane %v5468_v40, 2  ;;  %v5588_v47 = vrot.slane %v5468_v40, 4 }
 0xc37   : > { %v7837_v21 = vpack.i.bf16 %v5684_v19, %v5575_v2 }
 0xc39   : > { %7833 = vrot.lane.b32.xlu1 %v7832_v4, %s7917_s17  ;;  %7838 = vrot.lane.b32.xlu0 %v7837_v21, %s7918_s28 }
 0xc3d   : > { %5677 = vrot.lane.b32.xlu1 %v5480_v10, %s7918_s28  ;;  %5591 = vrot.lane.b32.xlu0 %v5590_v27, %s7917_s17 }
 0xc41   : > { %5594 = vrot.lane.b32.xlu1 %v5468_v40, %s7918_s28  ;;  %5486 = vrot.lane.b32.xlu0 %v5462_v6, %s7918_s28  ;;  %s433_s28 = scalar_lea.vmem %s9451_s12, %s6384_s27 }
 0xc45   : > { %5494 = vperm.xlu0 %7755, %v5450_v30  }
 0xca3   : > { %v7819_v50 = vpop.permute.xlu1 %7818 }
 0xca4   : > { %v7821_v56 = vunpack.i.h.bf16 %v7819_v50  ;;  %v7820_v61 = vunpack.i.l.bf16 %v7819_v50 }
 0xca5   : > { %v7829_v63 = vpop.permute.xlu0 %7828 }
 0xca6   : > { %v7831_v8 = vunpack.i.h.bf16 %v7829_v63  ;;  %v7830_v46 = vunpack.i.l.bf16 %v7829_v63  ;;  %v5596_v45 = vsel %vm4837_vm1, %v5456_v33, %v7820_v61 }
 0xca7   : > { %v7824_v41 = vpop.permute.xlu1 %7823 }
 0xca8   : > { %v7825_v18 = vunpack.i.l.bf16 %v7824_v41  ;;  %v7826_v29 = vunpack.i.h.bf16 %v7824_v41  ;;  %v5599_v25 = vsel %vm4837_vm1, %v7821_v56, %v7831_v8  ;;  %v5766_v8 = vld [vmem:[%s9450_s11 + $0x8] sm:$0xff]  ;;  %v5767_v41 = vld [vmem:[%s9450_s11 + $0x10] sm:$0xff] }
 0xca9   : > { %v5600_v55 = vsel %vm4839_vm2, %v5599_v25, %v5588_v47 }
 0xcaa   : > { %v5489_v9 = vsel %vm4837_vm1, %v7825_v18, %v7830_v46  ;;  %v5768_v46 = vld [vmem:[%s9450_s11 + $0x18] sm:$0xff] }
 0xcab   : > { %v5490_v36 = vsel %vm4839_vm2, %v5489_v9, %v5480_v10  ;;  %v7834_v37 = vpop.permute.xlu1 %7833  ;;  %v7839_v26 = vpop.permute.xlu0 %7838 }
 0xcac   : > { %v5491_v57 = vsel %vm4841_vm3, %v5490_v36, %v7826_v29  ;;  %v7836_v24 = vunpack.i.h.bf16 %v7834_v37  ;;  %v7835_v59 = vunpack.i.l.bf16 %v7834_v37  ;;  %v7841_v43 = vunpack.i.h.bf16 %v7839_v26 }
 0xcad   : > { %v7634_v44 = vpack.c.bf16 %v5491_v57, %v5488_v31  ;;  %v7840_v32 = vunpack.i.l.bf16 %v7839_v26 }
 0xcae   : > { %v5691_v51 = vsel %vm4837_vm1, %v7836_v24, %v7841_v43  ;;  %v5688_v5 = vsel %vm4837_vm1, %v5462_v6, %v7835_v59 }
 0xcaf   : > { %v5678_v39 = vpop.permute.xlu1 %5677  ;;  %v5692_v34 = vsel %vm4839_vm2, %v5691_v51, %v9149_v22  ;;  %v5592_v52 = vpop.permute.xlu0 %5591  ;;  %v5597_v53 = vsel %vm4839_vm2, %v5596_v45, %v7840_v32  ;;  %7635 = vmatpush3.bf16.msra.mxu1 %v7634_v44 }
 0xcb0   : > { %v5689_v11 = vsel %vm4839_vm2, %v5688_v5, %v5678_v39  ;;  %v5598_v60 = vsel %vm4841_vm3, %v5597_v53, %v5482_v49  ;;  %v5601_v12 = vsel %vm4841_vm3, %v5600_v55, %v5592_v52  ;;  %7288 = vmatprep.subr.mxu1 %v7914_v1  ;;  %v5693_v13 = vsel %vm4841_vm3, %v5692_v34, %v9219_v23 }
 0xcb1   : > { %v5690_v54 = vsel %vm4841_vm3, %v5689_v11, %v5590_v27  ;;  %v7637_v22 = vpack.c.bf16 %v5601_v12, %v5598_v60 }
 0xcb2   : > { %v7640_v42 = vpack.c.bf16 %v5693_v13, %v5690_v54 }
 0xcb3   : > { %v5487_v58 = vpop.permute.xlu0 %5486  ;;  %7638 = vmatpush3.bf16.msra.mxu0 %v7637_v22  ;;  %v5595_v33 = vpop.permute.xlu1 %5594 }
 0xcb4   : > { %7289 = vmatpush3.msk.msra.mxu1 %vm4837_vm1, %v5487_v58  ;;  %7297 = vmatprep.subr.mxu0 %v7914_v1 }
 0xcb5   : > { %7291 = vmatmul.mubr.msk.f32.vlgmr.msra.gmra.mrb[28].mxu1 %vm4851_vm4, %v5449_v48  ;;  %7639 = vmatprep.subr.bf16.mxu1 %v7912_v0  ;;  %v5764_v0 = vld [vmem:[%s9449_s10] sm:$0x7] }
 0xcb6   : > { %7641 = vmatpush3.bf16.msra.mxu1 %v7640_v42  ;;  %7308 = vmatprep.mubr.msk.f32.mxu1 %vm7913_vm0, %v7914_v1 }
 0xcb7   : > { %7298 = vmatpush3.msk.msra.mxu0 %vm4837_vm1, %v5595_v33  ;;  %7306 = vmatprep.subr.mxu1 %v7914_v1 }
 0xcb8   : > { %7300 = vmatmul.mubr.msk.f32.vlgmr.msra.gmra.mrb[36].mxu0 %vm4851_vm4, %v5449_v48  ;;  %7311 = vmatprep.subr.mxu0 %v7914_v1 }
 0xcb9   : > { %7313 = vmatprep.mubr.msk.f32.mxu0 %vm7913_vm0, %v7914_v1  ;;  %7312 = vmatpush3.msk.msra.mxu0 %vm5773_vm5, %v5764_v0 }
 0xcba   : > { %7307 = vmatpush3.msk.msra.mxu1 %vm4837_vm1, %v9235_v20  ;;  %7321 = vmatprep.subr.mxu0 %v7914_v1 }
 0xcbb   : > { %7309 = vmatmul.mubr.msk.f32.vlgmr.msra.gmra.mrb[30].mxu1 %vm4851_vm4, %v5449_v48  ;;  %7316 = vmatprep.subr.mxu1 %v7914_v1 }
 0xcbc   : > { %7318 = vmatprep.mubr.msk.f32.mxu1 %vm7913_vm0, %v7914_v1  ;;  %7317 = vmatpush3.msk.msra.mxu1 %vm5773_vm5, %v5764_v0 }
 0xcc4   : > { %v5495_v23 = vpop.permute.xlu0 %5494 }
 0xd88   : > { %v5568_v20 = vpop.f32.mrb[28].mxu1 }
 0xd89   : > { %v5569_v15 = vadd.f32 %v5568_v20, %v5495_v23  ;;  %v7292_v14 = vpop.f32.mrb[29].mxu1 }
 0xd8b   : > { %v5670_v62 = vpop.f32.mrb[36].mxu0  ;;  %7314 = vmatmul.mubr.msk.f32.vlgmr.msra.gmra.mrb[38].mxu0 %vm5769_vm6, %v5569_v15 }
 0xd8c   : > { %v5671_v6 = vadd.f32 %v5670_v62, %v5495_v23  ;;  %v7301_v17 = vpop.f32.mrb[37].mxu0  ;;  %7322 = vmatpush3.msk.msra.mxu0 %vm5773_vm5, %v5764_v0  ;;  %7323 = vmatprep.mubr.msk.f32.mxu0 %vm7913_vm0, %v7914_v1 }
 0xd8e   : > { %v5760_v3 = vpop.f32.mrb[30].mxu1  ;;  %7319 = vmatmul.mubr.msk.f32.vlgmr.msra.gmra.mrb[32].mxu1 %vm5769_vm6, %v5671_v6 }
 0xd8f   : > { %v5761_v49 = vadd.f32 %v5760_v3, %v5495_v23  ;;  %v7310_v16 = vpop.f32.mrb[31].mxu1  ;;  %7328 = vmatprep.mubr.msk.f32.mxu1 %vm5769_vm6, %v5765_v28 }
 0xd91   : > { %7324 = vmatmul.mubr.msk.f32.vlgmr.msra.gmra.mrb[40].mxu0 %vm5769_vm6, %v5761_v49 }
 0xd92   : > { %7336 = vmatprep.mubr.msk.f32.mxu0 %vm5769_vm6, %v5765_v28 }
 0xe5e   : > { %v5843_v38 = vpop.f32.mrb[38].mxu0 }
 0xe5f   : > { %v6107_v7 = vrot.slane %v5843_v38, 1  ;;  %v7315_v40 = vpop.f32.mrb[39].mxu0 }
 0xe61   : > { %v5916_v1 = vpop.f32.mrb[32].mxu1 }
 0xe62   : > { %v5994_v2 = vrot.slane %v5916_v1, 7  ;;  %v6111_v19 = vsel %vm5999_vm7, %v6107_v7, %v5916_v1  ;;  %v7320_v4 = vpop.f32.mrb[33].mxu1 }
 0xe64   : > { %v5989_v21 = vpop.f32.mrb[40].mxu0  ;;  %v6000_v10 = vsel %vm5999_vm7, %v5843_v38, %v5994_v2 }
 0xe65   : > { %v5997_v27 = vrot.slane %v5989_v21, 6  ;;  %v6109_v30 = vrot.slane %v5989_v21, 7  ;;  %v7325_v50 = vpop.f32.mrb[41].mxu0 }
 0xe67   : > { %v6001_v63 = vsel %vm4837_vm1, %v6000_v10, %v5997_v27  ;;  %v6112_v35 = vsel %vm4837_vm1, %v6111_v19, %v6109_v30 }
 0xe68   : > { %7326 = vmatprep.subr.msk.mxu1 %vm5773_vm5, %v6001_v63  ;;  %7334 = vmatprep.subr.msk.mxu0 %vm5773_vm5, %v6112_v35 }
 0xe69   : > { %7327 = vmatpush3.msk.msra.mxu1 %vm5773_vm5, %v6001_v63  ;;  %7335 = vmatpush3.msk.msra.mxu0 %vm5773_vm5, %v6112_v35 }
 0xe6a   : > { %7329 = vmatmul.mubr.msk.f32.vlgmr.msra.gmra.mrb[34].mxu1 %vm5769_vm6, %v5766_v8  ;;  %7337 = vmatmul.mubr.msk.f32.vlgmr.msra.gmra.mrb[42].mxu0 %vm5769_vm6, %v5766_v8 }
 0xe6b   : > { %7331 = vmatprep.mubr.msk.f32.mxu1 %vm5769_vm6, %v5767_v41  ;;  %7339 = vmatprep.mubr.msk.f32.mxu0 %vm5769_vm6, %v5767_v41 }
 0xe6e   : > { %7332 = vmatmul.mubr.msk.f32.gmra.mrb[36].mxu1 %vm5769_vm6, %v5768_v46  ;;  %7340 = vmatmul.mubr.msk.f32.gmra.mrb[44].mxu0 %vm5769_vm6, %v5768_v46 }
 0xf3d   : > { %v7330_v18 = vpop.f32.mrb[34].mxu1  ;;  %v7338_v56 = vpop.f32.mrb[42].mxu0 }
 0xf3e   : > { %6103 = vst.msk [vmem:[%s433_s28 + $0x8] sm:$0xff] %vm606_vm9, %v7330_v18  ;;  %6378 = vst.msk [vmem:[%s433_s28 + $0x28] sm:$0xff] %vm606_vm9, %v7338_v56  ;;  %v6083_v61 = vpop.f32.mrb[35].mxu1  ;;  %v6182_v29 = vpop.f32.mrb[43].mxu0 }
 0xf3f   : > { %6102 = vst.msk [vmem:[%s433_s28] sm:$0xff] %vm606_vm9, %v6083_v61  ;;  %6377 = vst.msk [vmem:[%s433_s28 + $0x20] sm:$0xff] %vm606_vm9, %v6182_v29 }
 0xf41   : > { %v7333_v9 = vpop.f32.mrb[36].mxu1  ;;  %v7341_v31 = vpop.f32.mrb[44].mxu0 }
 0xf42   : > { %6105 = vst.msk [vmem:[%s433_s28 + $0x18] sm:$0xff] %vm606_vm9, %v7333_v9  ;;  %6380 = vst.msk [vmem:[%s433_s28 + $0x38] sm:$0xff] %vm606_vm9, %v7341_v31  ;;  %v6093_v36 = vpop.f32.mrb[37].mxu1  ;;  %v6192_v37 = vpop.f32.mrb[45].mxu0 }
 0xf43   : > { %6104 = vst.msk [vmem:[%s433_s28 + $0x10] sm:$0xff] %vm606_vm9, %v6093_v36  ;;  %6379 = vst.msk [vmem:[%s433_s28 + $0x30] sm:$0xff] %vm606_vm9, %v6192_v37 }
 0xf44 PF: > { %p22_p8 = scmp.ge.s32.totalorder %s8006_s26, 4   ;;  %s9455_s21 = smov %s7899_s22 }
 0xf45   : > { %s9456_s22 = smov %s7903_s23  ;;  %s9457_s23 = smov %s8016_s29 }
 0xf46   : > { %s9458_s24 = smov %s8006_s26  ;;  %24 = sbr.rel (!%p22_p8) target bundleno = 3 (0x3), region = 111 }
 0xf4d   :  { %6227 = vsyncpa [#allocation3], 1 }
 0xf4e   :  { %6229 = vsyncpa [#allocation3 + $0x1], 1 }

</bundles_post_ra>
